<compile_context>
chip_gen: v6e
topology: v6e:2x2x1
jax: 0.10.0
libtpu: 0.0.40
codegen_flags: <defaults>
</compile_context>

<pallas_src>
import numpy as np
import jax
import jax.numpy as jnp
from jax.experimental import pallas as pl
from jax.experimental.pallas import tpu as pltpu

# ----------------------------- configuration ------------------------------
SIGMA_DATA = 0.5
STOP_RATIO = 0.8
NUM_STEPS  = 10
RHO        = 7.0
SIGMA_MIN  = 0.1                 # EDMScorer.__init__ overrides sigma_min to 0.1
SIGMA_MAX  = 80.0 * STOP_RATIO   # sigma_max * stop_ratio

B, C, H, W = 2, 4, 16, 16        # small NCHW input
HID        = 32                  # hidden width of the synthetic net


def make_sigma_coeffs():
    """Host-side (float64, exactly like the torch buffer) sigma schedule and
    per-sigma preconditioning constants [c_skip, c_out, c_in, c_noise]."""
    step_indices = np.arange(NUM_STEPS, dtype=np.float64)
    t_steps = (SIGMA_MAX ** (1.0 / RHO)
               + step_indices / (NUM_STEPS - 1)
               * (SIGMA_MIN ** (1.0 / RHO) - SIGMA_MAX ** (1.0 / RHO))) ** RHO
    sig = t_steps
    c_skip  = SIGMA_DATA ** 2 / (sig ** 2 + SIGMA_DATA ** 2)
    c_out   = sig * SIGMA_DATA / np.sqrt(sig ** 2 + SIGMA_DATA ** 2)
    c_in    = 1.0 / np.sqrt(SIGMA_DATA ** 2 + sig ** 2)
    c_noise = np.log(sig) / 4.0
    coeffs = np.stack([c_skip, c_out, c_in, c_noise], axis=1).astype(np.float32)
    return t_steps, jnp.asarray(coeffs)


def pick_row_tile(rows):
    """Generation-aware row tile (lane dimension).

    v5e / v6e have a single TensorCore -> one tile over all rows (grid=(1,),
    no per-grid-step overhead).  v7x has 2 TCs/chip -> two tiles so the
    "parallel" grid axis can shard one tile per core.
    """
    assert rows % 128 == 0, "rows (B*H*W) must be a multiple of 128"
    kind = ""
    try:
        kind = jax.devices()[0].device_kind.lower()
    except Exception:   # best-effort device query only
        pass
    if "v7" in kind and rows % 256 == 0:
        return rows // 2            # two lane-dense tiles, one per TensorCore
    return rows                     # single tile, grid=(1,)


def fold_params(coeffs, w1, b1, emb, w2, b2):
    """Fold the RGB encode and every per-sigma constant into the weights.

      layer 1 row s*HID+j :  c_in[s] * W1^T[j,:] / 127.5                (S*HID, C)
      layer 1 bias        : -c_in[s]*sum_c W1^T[j,c] + b1[j] + c_noise[s]*emb[j]
      layer 2 block-diag  :  c_out[s] * W2^T                            (S*C, S*HID)
      layer 2 bias        :  c_out[s] * b2                              (S*C, 1)

    The kernel output row s*C+c is then exactly c_out[s]*F(c_in[s]*x_enc, c_noise[s]),
    i.e. the EDMScorer score (c_skip*x terms cancel algebraically).
    """
    c_out   = coeffs[:, 1]
    c_in    = coeffs[:, 2]
    c_noise = coeffs[:, 3]

    w1t = jnp.transpose(w1)                       # (HID, C)
    w2t = jnp.transpose(w2)                       # (C, HID)

    # x_enc = x/127.5 - 1  =>  W1^T @ x_enc = (W1^T/127.5) @ x_raw - rowsum(W1^T)
    enc_bias = -jnp.sum(w1t, axis=1)              # (HID,)

    w1_big = (c_in[:, None, None] * (w1t / 127.5)[None, :, :]
              ).reshape(NUM_STEPS * HID, C)
    b1_big = (c_in[:, None] * enc_bias[None, :]
              + b1.reshape(1, HID)
              + c_noise[:, None] * emb.reshape(1, HID)
              ).reshape(NUM_STEPS * HID, 1)

    w2_blk = jnp.zeros((NUM_STEPS * C, NUM_STEPS * HID), jnp.float32)
    for s in range(NUM_STEPS):                    # host-side, 10 iterations
        w2_blk = w2_blk.at[s * C:(s + 1) * C, s * HID:(s + 1) * HID].set(
            c_out[s] * w2t)
    b2_big = (c_out[:, None] * b2.reshape(1, C)).reshape(NUM_STEPS * C, 1)

    return (w1_big.astype(jnp.float32), b1_big.astype(jnp.float32),
            w2_blk.astype(jnp.float32), b2_big.astype(jnp.float32))


# ------------------------------ Pallas kernel ------------------------------
def edm_scorer_kernel(x_ref, w1_ref, b1_ref, w2_ref, b2_ref, out_ref):
    # Layer 1 for ALL sigma steps at once (encode + c_in + c_noise folded on host).
    h = jnp.dot(w1_ref[...], x_ref[...],
                preferred_element_type=jnp.float32) + b1_ref[...]    # (S*HID, TM)
    h = h * jax.nn.sigmoid(h)                                        # SiLU (EUP)
    # Layer 2: block-diagonal across sigma steps, c_out folded => score = c_out*F.
    out = jnp.dot(w2_ref[...], h,
                  preferred_element_type=jnp.float32) + b2_ref[...]  # (S*C, TM)
    # One lane/sublane-dense, unmasked store per row tile.
    out_ref[...] = out.astype(out_ref.dtype)


def edm_scorer(x_nchw, coeffs, w1, b1, emb, w2, b2):
    b, c, h, w = x_nchw.shape
    rows = b * h * w
    assert c == C

    tm = pick_row_tile(rows)
    grid = (rows // tm,)

    # NCHW -> feature-major (C, rows), rows ordered (b, h, w); rows in lanes.
    x_cm = jnp.transpose(x_nchw, (1, 0, 2, 3)).reshape(c, rows).astype(jnp.float32)

    w1_big, b1_big, w2_blk, b2_big = fold_params(coeffs, w1, b1, emb, w2, b2)
    SC, SH = NUM_STEPS * c, NUM_STEPS * HID

    out = pl.pallas_call(
        edm_scorer_kernel,
        out_shape=jax.ShapeDtypeStruct((SC, rows), jnp.float32),
        grid=grid,
        in_specs=[
            pl.BlockSpec((c, tm),  lambda i: (0, i)),    # x (feature-major)
            pl.BlockSpec((SH, c),  lambda i: (0, 0)),    # folded W1 (replicated, c_in/encode)
            pl.BlockSpec((SH, 1),  lambda i: (0, 0)),    # folded layer-1 bias
            pl.BlockSpec((SC, SH), lambda i: (0, 0)),    # block-diag W2 (c_out folded)
            pl.BlockSpec((SC, 1),  lambda i: (0, 0)),    # folded layer-2 bias
        ],
        out_specs=pl.BlockSpec((SC, tm), lambda i: (0, i)),
        compiler_params=pltpu.CompilerParams(
            dimension_semantics=("parallel",)),          # shard row tiles across v7x TCs
    )(x_cm, w1_big, b1_big, w2_blk, b2_big)

    # (NUM_STEPS*C, rows) -> (B, NUM_STEPS, C, H, W) == torch.stack(..., dim=1)
    out = out.reshape(NUM_STEPS, c, b, h, w)
    return jnp.transpose(out, (2, 0, 1, 3, 4))


# --------------------------- pure-JAX reference ----------------------------
def edm_scorer_ref(x_nchw, coeffs, w1, b1, emb, w2, b2):
    b, c, h, w = x_nchw.shape
    x = jnp.transpose(x_nchw, (0, 2, 3, 1)).reshape(-1, c).astype(jnp.float32)
    x = x / 127.5 - 1.0
    scores = []
    for s in range(NUM_STEPS):
        c_skip, c_out, c_in, c_noise = [coeffs[s, j] for j in range(4)]
        hdd = (x * c_in) @ w1 + b1 + c_noise * emb
        hdd = hdd * jax.nn.sigmoid(hdd)
        f = hdd @ w2 + b2
        xhat = c_skip * x + c_out * f          # original EDM preconditioning
        scores.append(xhat - c_skip * x)       # original EDMScorer epilogue
    out = jnp.stack(scores, axis=0).reshape(NUM_STEPS, b, h, w, c)
    return jnp.transpose(out, (1, 0, 4, 2, 3))


# ---------------------------------- main -----------------------------------
if __name__ == "__main__":
    key = jax.random.PRNGKey(0)
    k1, k2, k3, k4, k5, kx = jax.random.split(key, 6)

    # Deterministic synthetic-net parameters (see TODO(synk) above)
    w1  = jax.random.normal(k1, (C, HID), jnp.float32) * 0.1
    b1  = jax.random.normal(k2, (1, HID), jnp.float32) * 0.01
    emb = jax.random.normal(k3, (1, HID), jnp.float32) * 0.1
    w2  = jax.random.normal(k4, (HID, C), jnp.float32) * 0.1
    b2  = jax.random.normal(k5, (1, C),  jnp.float32) * 0.01

    # Raw "RGB-like" input in [0, 255], NCHW like PyTorch
    x = jax.random.uniform(kx, (B, C, H, W), jnp.float32, 0.0, 255.0)

    _, coeffs = make_sigma_coeffs()

    out = edm_scorer(x, coeffs, w1, b1, emb, w2, b2)
    out = jax.block_until_ready(out)

    ref = edm_scorer_ref(x, coeffs, w1, b1, emb, w2, b2)
    np.testing.assert_allclose(np.asarray(out), np.asarray(ref),
                               rtol=5e-5, atol=5e-5)
    assert out.shape == (B, NUM_STEPS, C, H, W)
    print("KERNEL_OK")
</pallas_src>

<mosaic_0001>
module attributes {stable_mosaic.version = 11 : i64} {
  func.func @edm_scorer_kernel(%arg0: i32, %arg1: memref<4x512xf32, #tpu.memory_space<vmem>>, %arg2: memref<320x4xf32, #tpu.memory_space<vmem>>, %arg3: memref<320x1xf32, #tpu.memory_space<vmem>>, %arg4: memref<40x320xf32, #tpu.memory_space<vmem>>, %arg5: memref<40x1xf32, #tpu.memory_space<vmem>>, %arg6: memref<40x512xf32, #tpu.memory_space<vmem>>) attributes {dimension_semantics = [#tpu.dimension_semantics<parallel>], iteration_bounds = array<i64: 1>, scalar_prefetch = 0 : i64, scratch_operands = 0 : i64, tpu.core_type = #tpu.core_type<tc>, window_params = [{transform_indices = @transform_0, window_bounds = array<i64: 4, 512>}, {pipeline_mode = #tpu.pipeline_mode<synchronous>, transform_indices = @transform_1, window_bounds = array<i64: 320, 4>}, {pipeline_mode = #tpu.pipeline_mode<synchronous>, transform_indices = @transform_2, window_bounds = array<i64: 320, 1>}, {pipeline_mode = #tpu.pipeline_mode<synchronous>, transform_indices = @transform_3, window_bounds = array<i64: 40, 320>}, {pipeline_mode = #tpu.pipeline_mode<synchronous>, transform_indices = @transform_4, window_bounds = array<i64: 40, 1>}, {transform_indices = @transform_5, window_bounds = array<i64: 40, 512>}]} {
    %c0 = arith.constant 0 : index
    %c0_0 = arith.constant 0 : index
    %0 = vector.load %arg2[%c0, %c0_0] : memref<320x4xf32, #tpu.memory_space<vmem>>, vector<320x4xf32>
    %c0_1 = arith.constant 0 : index
    %c0_2 = arith.constant 0 : index
    %1 = vector.load %arg1[%c0_1, %c0_2] : memref<4x512xf32, #tpu.memory_space<vmem>>, vector<4x512xf32>
    %cst = arith.constant dense<0.000000e+00> : vector<320x512xf32>
    %2 = tpu.matmul %0, %1, %cst {dimension_numbers = #tpu.dot_dimension_numbers<[1], [0], [0], [1], [0, 0, 1, 1], [], []>} : vector<320x4xf32>, vector<4x512xf32>, vector<320x512xf32> -> vector<320x512xf32>
    %c0_3 = arith.constant 0 : index
    %c0_4 = arith.constant 0 : index
    %3 = vector.load %arg3[%c0_3, %c0_4] : memref<320x1xf32, #tpu.memory_space<vmem>>, vector<320x1xf32>
    %4 = vector.broadcast %3 : vector<320x1xf32> to vector<320x512xf32>
    %5 = arith.addf %2, %4 : vector<320x512xf32>
    %6 = arith.negf %5 : vector<320x512xf32>
    %7 = math.exp %6 : vector<320x512xf32>
    %cst_5 = arith.constant 1.000000e+00 : f32
    %8 = vector.broadcast %cst_5 : f32 to vector<320x512xf32>
    %9 = arith.addf %8, %7 : vector<320x512xf32>
    %10 = arith.divf %8, %9 : vector<320x512xf32>
    %11 = arith.mulf %5, %10 : vector<320x512xf32>
    %c0_6 = arith.constant 0 : index
    %c0_7 = arith.constant 0 : index
    %12 = vector.load %arg4[%c0_6, %c0_7] : memref<40x320xf32, #tpu.memory_space<vmem>>, vector<40x320xf32>
    %cst_8 = arith.constant dense<0.000000e+00> : vector<40x512xf32>
    %13 = tpu.matmul %12, %11, %cst_8 {dimension_numbers = #tpu.dot_dimension_numbers<[1], [0], [0], [1], [0, 0, 1, 1], [], []>} : vector<40x320xf32>, vector<320x512xf32>, vector<40x512xf32> -> vector<40x512xf32>
    %c0_9 = arith.constant 0 : index
    %c0_10 = arith.constant 0 : index
    %14 = vector.load %arg5[%c0_9, %c0_10] : memref<40x1xf32, #tpu.memory_space<vmem>>, vector<40x1xf32>
    %15 = vector.broadcast %14 : vector<40x1xf32> to vector<40x512xf32>
    %16 = arith.addf %13, %15 : vector<40x512xf32>
    %c0_11 = arith.constant 0 : index
    %c0_12 = arith.constant 0 : index
    %17 = vector.load %arg6[%c0_11, %c0_12] : memref<40x512xf32, #tpu.memory_space<vmem>>, vector<40x512xf32>
    tpu.vector_store %arg6[%c0_11, %c0_12], %16 {strides = array<i32>} : memref<40x512xf32, #tpu.memory_space<vmem>>, vector<40x512xf32>,
    return
  }
  func.func @transform_0(%arg0: i32) -> (i32, i32) {
    %c0_i32 = arith.constant 0 : i32
    %c0_i32_0 = arith.constant 0 : i32
    return %c0_i32, %arg0 : i32, i32
  }
  func.func @transform_1(%arg0: i32) -> (i32, i32) {
    %c0_i32 = arith.constant 0 : i32
    %c0_i32_0 = arith.constant 0 : i32
    %c0_i32_1 = arith.constant 0 : i32
    return %c0_i32, %c0_i32_0 : i32, i32
  }
  func.func @transform_2(%arg0: i32) -> (i32, i32) {
    %c0_i32 = arith.constant 0 : i32
    %c0_i32_0 = arith.constant 0 : i32
    %c0_i32_1 = arith.constant 0 : i32
    return %c0_i32, %c0_i32_0 : i32, i32
  }
  func.func @transform_3(%arg0: i32) -> (i32, i32) {
    %c0_i32 = arith.constant 0 : i32
    %c0_i32_0 = arith.constant 0 : i32
    %c0_i32_1 = arith.constant 0 : i32
    return %c0_i32, %c0_i32_0 : i32, i32
  }
  func.func @transform_4(%arg0: i32) -> (i32, i32) {
    %c0_i32 = arith.constant 0 : i32
    %c0_i32_0 = arith.constant 0 : i32
    %c0_i32_1 = arith.constant 0 : i32
    return %c0_i32, %c0_i32_0 : i32, i32
  }
  func.func @transform_5(%arg0: i32) -> (i32, i32) {
    %c0_i32 = arith.constant 0 : i32
    %c0_i32_0 = arith.constant 0 : i32
    return %c0_i32, %arg0 : i32, i32
  }
}

</mosaic_0001>

<bundles_post_ra>
// kernel: tpu_custom_call.1
= control target key start
LH: loop header
LB: loop body
LE: loop exit
PB: predicated region body
PF: predicated region fallthrough
CT: control target
= control target key end

     0   :  { %vm428_vm0 = vcmask 1043456   ;;  %v5702_v4 = vmov 0.0   ;;  %vm307_vm1 = vcmask 31744   ;;  %v3570_v6 = vmov 0   ;;  %s5696_s0 = inlined_call_operand.vmem [shape: f32[4,512], index: 0, kind: input, shape index: {}]   ;;  %s5697_s1 = inlined_call_operand.vmem [shape: f32[320,4], index: 1, kind: input, shape index: {}]   ;;  %s5698_s2 = inlined_call_operand.vmem [shape: f32[320,1], index: 2, kind: input, shape index: {}]   ;;  %s5699_s3 = inlined_call_operand.vmem [shape: f32[40,320], index: 3, kind: input, shape index: {}]   ;;  %s5700_s4 = inlined_call_operand.vmem [shape: f32[40,1], index: 4, kind: input, shape index: {}]   ;;  %s5701_s5 = inlined_call_operand.hbm [shape: f32[40,512], index: 5, kind: output, shape index: {}]  }
   0x1   :  { %v61_v0 = vld [vmem:[%s5696_s0] sm:$0xff]  ;;  %v62_v1 = vld [vmem:[%s5696_s0 + $0x8] sm:$0xff]  ;;  %501 = vmatprep.mubr.f32.mxu0 %v5702_v4  ;;  %806 = vmatprep.mubr.f32.mxu1 %v5702_v4  ;;  %v78_v8 = vld [vmem:[%s5698_s2 + $0x78] sm:$0xff] }
   0x2   :  { %v305_v2 = vcombine.high %v61_v0, %v61_v0  ;;  %v306_v3 = vcombine.high %v62_v1, %v62_v1  ;;  %v21_v5 = vld [vmem:[%s5697_s1] sm:$0xff]  ;;  %2904 = vset.pattern.permute.xlu1 %v3570_v6  ;;  %2903 = vset.pattern.permute.xlu0 %v3570_v6  ;;  %v76_v7 = vld [vmem:[%s5698_s2 + $0x68] sm:$0xff]  ;;  %v77_v11 = vld [vmem:[%s5698_s2 + $0x70] sm:$0xff] }
   0x3   :  { %v22_v9 = vld [vmem:[%s5697_s1 + $0x8] sm:$0xff]  ;;  %170 = vperm.xlu1 %2904, %v76_v7   ;;  %180 = vperm.xlu0 %2903, %v78_v8   ;;  %v75_v10 = vld [vmem:[%s5698_s2 + $0x60] sm:$0xff]  ;;  %v23_v12 = vld [vmem:[%s5697_s1 + $0x10] sm:$0xff] }
   0x4   :  { %2644 = vmatprep.subr.msk.mxu0 %vm428_vm0, %v305_v2  ;;  %2686 = vmatprep.subr.msk.mxu1 %vm428_vm0, %v306_v3  ;;  %v73_v13 = vld [vmem:[%s5698_s2 + $0x50] sm:$0xff]  ;;  %v74_v14 = vld [vmem:[%s5698_s2 + $0x58] sm:$0xff]  ;;  %v71_v16 = vld [vmem:[%s5698_s2 + $0x40] sm:$0xff] }
   0x5   :  { %2645 = vmatpush1.msk.msra.mxu0 %vm428_vm0, %v61_v0  ;;  %2687 = vmatpush1.msk.msra.mxu1 %vm428_vm0, %v62_v1  ;;  %v24_v15 = vld [vmem:[%s5697_s1 + $0x18] sm:$0xff]  ;;  %v72_v17 = vld [vmem:[%s5698_s2 + $0x48] sm:$0xff]  ;;  %v25_v18 = vld [vmem:[%s5697_s1 + $0x20] sm:$0xff] }
   0x6   :  { %2646 = vmatmul.mubr.msk.f32.vlgmr.msra.gmra.mxu0 %vm307_vm1, %v21_v5  ;;  %2688 = vmatmul.mubr.msk.f32.vlgmr.msra.gmra.mxu1 %vm307_vm1, %v21_v5  ;;  %v69_v19 = vld [vmem:[%s5698_s2 + $0x30] sm:$0xff]  ;;  %v70_v20 = vld [vmem:[%s5698_s2 + $0x38] sm:$0xff]  ;;  %v26_v21 = vld [vmem:[%s5697_s1 + $0x28] sm:$0xff] }
   0x7   :  { %507 = vmatprep.mubr.f32.mxu0 %v5702_v4  ;;  %812 = vmatprep.mubr.f32.mxu1 %v5702_v4  ;;  %v67_v22 = vld [vmem:[%s5698_s2 + $0x20] sm:$0xff]  ;;  %v68_v23 = vld [vmem:[%s5698_s2 + $0x28] sm:$0xff]  ;;  %v27_v24 = vld [vmem:[%s5697_s1 + $0x30] sm:$0xff] }
   0x8   :  { %165 = vperm.xlu1 %2904, %v75_v10   ;;  %175 = vperm.xlu0 %2903, %v77_v11   ;;  %v65_v25 = vld [vmem:[%s5698_s2 + $0x10] sm:$0xff]  ;;  %v66_v26 = vld [vmem:[%s5698_s2 + $0x18] sm:$0xff] }
   0xa   :  { %2647 = vmatmul.mubr.msk.f32.gmra.mxu0 %vm307_vm1, %v22_v9  ;;  %2689 = vmatmul.mubr.msk.f32.gmra.mxu1 %vm307_vm1, %v22_v9 }
   0xb   :  { %513 = vmatprep.mubr.f32.mxu0 %v5702_v4  ;;  %818 = vmatprep.mubr.f32.mxu1 %v5702_v4 }
   0xc   :  { %155 = vperm.xlu1 %2904, %v73_v13   ;;  %160 = vperm.xlu0 %2903, %v74_v14  }
   0xe   :  { %2648 = vmatmul.mubr.msk.f32.gmra.mxu0 %vm307_vm1, %v23_v12  ;;  %2690 = vmatmul.mubr.msk.f32.gmra.mxu1 %vm307_vm1, %v23_v12 }
   0xf   :  { %519 = vmatprep.mubr.f32.mxu0 %v5702_v4  ;;  %824 = vmatprep.mubr.f32.mxu1 %v5702_v4 }
  0x10   :  { %145 = vperm.xlu1 %2904, %v71_v16   ;;  %150 = vperm.xlu0 %2903, %v72_v17  }
  0x12   :  { %2649 = vmatmul.mubr.msk.f32.gmra.mxu0 %vm307_vm1, %v24_v15  ;;  %2691 = vmatmul.mubr.msk.f32.gmra.mxu1 %vm307_vm1, %v24_v15 }
  0x13   :  { %525 = vmatprep.mubr.f32.mxu0 %v5702_v4  ;;  %830 = vmatprep.mubr.f32.mxu1 %v5702_v4 }
  0x14   :  { %135 = vperm.xlu1 %2904, %v69_v19   ;;  %140 = vperm.xlu0 %2903, %v70_v20  }
  0x16   :  { %2650 = vmatmul.mubr.msk.f32.gmra.mxu0 %vm307_vm1, %v25_v18  ;;  %2692 = vmatmul.mubr.msk.f32.gmra.mxu1 %vm307_vm1, %v25_v18 }
  0x17   :  { %531 = vmatprep.mubr.f32.mxu0 %v5702_v4  ;;  %836 = vmatprep.mubr.f32.mxu1 %v5702_v4 }
  0x18   :  { %125 = vperm.xlu1 %2904, %v67_v22   ;;  %130 = vperm.xlu0 %2903, %v68_v23  }
  0x1a   :  { %2651 = vmatmul.mubr.msk.f32.gmra.mxu0 %vm307_vm1, %v26_v21  ;;  %2693 = vmatmul.mubr.msk.f32.gmra.mxu1 %vm307_vm1, %v26_v21 }
  0x1b   :  { %537 = vmatprep.mubr.f32.mxu0 %v5702_v4  ;;  %842 = vmatprep.mubr.f32.mxu1 %v5702_v4 }
  0x1c   :  { %10 = vsyncpa [#allocation3], 0  ;;  %v28_v27 = vld [vmem:[%s5697_s1 + $0x38] sm:$0xff]  ;;  %115 = vperm.xlu1 %2904, %v65_v25   ;;  %120 = vperm.xlu0 %2903, %v66_v26   ;;  %v63_v28 = vld [vmem:[%s5698_s2] sm:$0xff]  ;;  %vm2212_vm2 = vcmask 523264  }
  0x1d   :  { %v64_v29 = vld [vmem:[%s5698_s2 + $0x8] sm:$0xff]  ;;  %v29_v30 = vld [vmem:[%s5697_s1 + $0x40] sm:$0xff]  ;;  %v94_v31 = vld [vmem:[%s5698_s2 + $0xf8] sm:$0xff] }
  0x1e   :  { %2652 = vmatmul.mubr.msk.f32.gmra.mxu0 %vm307_vm1, %v27_v24  ;;  %2694 = vmatmul.mubr.msk.f32.gmra.mxu1 %vm307_vm1, %v27_v24  ;;  %v93_v32 = vld [vmem:[%s5698_s2 + $0xf0] sm:$0xff]  ;;  %v30_v33 = vld [vmem:[%s5697_s1 + $0x48] sm:$0xff]  ;;  %v91_v35 = vld [vmem:[%s5698_s2 + $0xe0] sm:$0xff] }
  0x1f   :  { %543 = vmatprep.mubr.f32.mxu0 %v5702_v4  ;;  %848 = vmatprep.mubr.f32.mxu1 %v5702_v4  ;;  %v92_v34 = vld [vmem:[%s5698_s2 + $0xe8] sm:$0xff]  ;;  %v31_v36 = vld [vmem:[%s5697_s1 + $0x50] sm:$0xff]  ;;  %v90_v37 = vld [vmem:[%s5698_s2 + $0xd8] sm:$0xff] }
  0x20   :  { %105 = vperm.xlu1 %2904, %v63_v28   ;;  %110 = vperm.xlu0 %2903, %v64_v29   ;;  %v89_v38 = vld [vmem:[%s5698_s2 + $0xd0] sm:$0xff]  ;;  %v32_v39 = vld [vmem:[%s5697_s1 + $0x58] sm:$0xff]  ;;  %v88_v40 = vld [vmem:[%s5698_s2 + $0xc8] sm:$0xff] }
  0x21   :  { %v87_v41 = vld [vmem:[%s5698_s2 + $0xc0] sm:$0xff]  ;;  %v86_v43 = vld [vmem:[%s5698_s2 + $0xb8] sm:$0xff]  ;;  %v85_v44 = vld [vmem:[%s5698_s2 + $0xb0] sm:$0xff] }
  0x22   :  { %2653 = vmatmul.mubr.msk.f32.gmra.mxu0 %vm307_vm1, %v28_v27  ;;  %2695 = vmatmul.mubr.msk.f32.gmra.mxu1 %vm307_vm1, %v28_v27  ;;  %v33_v42 = vld [vmem:[%s5697_s1 + $0x60] sm:$0xff]  ;;  %v34_v45 = vld [vmem:[%s5697_s1 + $0x68] sm:$0xff]  ;;  %v35_v48 = vld [vmem:[%s5697_s1 + $0x70] sm:$0xff] }
  0x23   :  { %549 = vmatprep.mubr.f32.mxu0 %v5702_v4  ;;  %854 = vmatprep.mubr.f32.mxu1 %v5702_v4  ;;  %v84_v46 = vld [vmem:[%s5698_s2 + $0xa8] sm:$0xff]  ;;  %v83_v47 = vld [vmem:[%s5698_s2 + $0xa0] sm:$0xff]  ;;  %v82_v49 = vld [vmem:[%s5698_s2 + $0x98] sm:$0xff] }
  0x24   :  { %260 = vperm.xlu0 %2903, %v94_v31   ;;  %255 = vperm.xlu1 %2904, %v93_v32   ;;  %v81_v50 = vld [vmem:[%s5698_s2 + $0x90] sm:$0xff]  ;;  %v36_v51 = vld [vmem:[%s5697_s1 + $0x78] sm:$0xff]  ;;  %v80_v52 = vld [vmem:[%s5698_s2 + $0x88] sm:$0xff] }
  0x25   :  { %v79_v53 = vld [vmem:[%s5698_s2 + $0x80] sm:$0xff]  ;;  %v102_v55 = vld [vmem:[%s5698_s2 + $0x138] sm:$0xff]  ;;  %v101_v56 = vld [vmem:[%s5698_s2 + $0x130] sm:$0xff] }
  0x26   :  { %2654 = vmatmul.mubr.msk.f32.gmra.mxu0 %vm307_vm1, %v29_v30  ;;  %2696 = vmatmul.mubr.msk.f32.gmra.mxu1 %vm307_vm1, %v29_v30  ;;  %v37_v54 = vld [vmem:[%s5697_s1 + $0x80] sm:$0xff]  ;;  %v38_v57 = vld [vmem:[%s5697_s1 + $0x88] sm:$0xff]  ;;  %v39_v60 = vld [vmem:[%s5697_s1 + $0x90] sm:$0xff] }
  0x27   :  { %555 = vmatprep.mubr.f32.mxu0 %v5702_v4  ;;  %860 = vmatprep.mubr.f32.mxu1 %v5702_v4  ;;  %v100_v58 = vld [vmem:[%s5698_s2 + $0x128] sm:$0xff]  ;;  %v99_v59 = vld [vmem:[%s5698_s2 + $0x120] sm:$0xff]  ;;  %v98_v61 = vld [vmem:[%s5698_s2 + $0x118] sm:$0xff] }
  0x28   :  { %250 = vperm.xlu0 %2903, %v92_v34   ;;  %245 = vperm.xlu1 %2904, %v91_v35   ;;  %v97_v62 = vld [vmem:[%s5698_s2 + $0x110] sm:$0xff]  ;;  %v40_v63 = vld [vmem:[%s5697_s1 + $0x98] sm:$0xff]  ;;  %v96_v0 = vld [vmem:[%s5698_s2 + $0x108] sm:$0xff] }
  0x29   :  { %v95_v1 = vld [vmem:[%s5698_s2 + $0x100] sm:$0xff]  ;;  %v2183_v5 = vld [vmem:[%s5700_s4 + $0x8] sm:$0xff]  ;;  %v2184_v7 = vld [vmem:[%s5700_s4 + $0x10] sm:$0xff] }
  0x2a   :  { %2655 = vmatmul.mubr.msk.f32.gmra.mxu0 %vm307_vm1, %v30_v33  ;;  %2697 = vmatmul.mubr.msk.f32.gmra.mxu1 %vm307_vm1, %v30_v33  ;;  %v41_v2 = vld [vmem:[%s5697_s1 + $0xa0] sm:$0xff]  ;;  %v42_v6 = vld [vmem:[%s5697_s1 + $0xa8] sm:$0xff]  ;;  %v2185_v8 = vld [vmem:[%s5700_s4 + $0x18] sm:$0xff] }
  0x2b   :  { %561 = vmatprep.mubr.f32.mxu0 %v5702_v4  ;;  %866 = vmatprep.mubr.f32.mxu1 %v5702_v4  ;;  %v2182_v3 = vld [vmem:[%s5700_s4] sm:$0xff]  ;;  %v43_v9 = vld [vmem:[%s5697_s1 + $0xb0] sm:$0xff]  ;;  %v44_v11 = vld [vmem:[%s5697_s1 + $0xb8] sm:$0xff] }
  0x2c   :  { %240 = vperm.xlu0 %2903, %v90_v37   ;;  %235 = vperm.xlu1 %2904, %v89_v38   ;;  %v2186_v10 = vld [vmem:[%s5700_s4 + $0x20] sm:$0xff]  ;;  %v46_v13 = vld [vmem:[%s5697_s1 + $0xc8] sm:$0xff]  ;;  %v47_v14 = vld [vmem:[%s5697_s1 + $0xd0] sm:$0xff] }
  0x2d   :  { %v45_v12 = vld [vmem:[%s5697_s1 + $0xc0] sm:$0xff]  ;;  %v48_v15 = vld [vmem:[%s5697_s1 + $0xd8] sm:$0xff]  ;;  %v50_v17 = vld [vmem:[%s5697_s1 + $0xe8] sm:$0xff] }
  0x2e   :  { %2656 = vmatmul.mubr.msk.f32.gmra.mxu0 %vm307_vm1, %v31_v36  ;;  %2698 = vmatmul.mubr.msk.f32.gmra.mxu1 %vm307_vm1, %v31_v36  ;;  %v49_v16 = vld [vmem:[%s5697_s1 + $0xe0] sm:$0xff]  ;;  %v51_v18 = vld [vmem:[%s5697_s1 + $0xf0] sm:$0xff]  ;;  %v52_v19 = vld [vmem:[%s5697_s1 + $0xf8] sm:$0xff] }
  0x2f   :  { %567 = vmatprep.mubr.f32.mxu0 %v5702_v4  ;;  %872 = vmatprep.mubr.f32.mxu1 %v5702_v4  ;;  %v53_v20 = vld [vmem:[%s5697_s1 + $0x100] sm:$0xff]  ;;  %v54_v21 = vld [vmem:[%s5697_s1 + $0x108] sm:$0xff]  ;;  %v55_v22 = vld [vmem:[%s5697_s1 + $0x110] sm:$0xff] }
  0x30   :  { %230 = vperm.xlu0 %2903, %v88_v40   ;;  %225 = vperm.xlu1 %2904, %v87_v41   ;;  %v56_v23 = vld [vmem:[%s5697_s1 + $0x118] sm:$0xff]  ;;  %v57_v24 = vld [vmem:[%s5697_s1 + $0x120] sm:$0xff]  ;;  %v58_v25 = vld [vmem:[%s5697_s1 + $0x128] sm:$0xff] }
  0x31   :  { %v59_v26 = vld [vmem:[%s5697_s1 + $0x130] sm:$0xff]  ;;  %v60_v28 = vld [vmem:[%s5697_s1 + $0x138] sm:$0xff] }
  0x32   :  { %2657 = vmatmul.mubr.msk.f32.gmra.mxu0 %vm307_vm1, %v32_v39  ;;  %2699 = vmatmul.mubr.msk.f32.gmra.mxu1 %vm307_vm1, %v32_v39 }
  0x33   :  { %573 = vmatprep.mubr.f32.mxu0 %v5702_v4  ;;  %878 = vmatprep.mubr.f32.mxu1 %v5702_v4 }
  0x34   :  { %220 = vperm.xlu0 %2903, %v86_v43   ;;  %215 = vperm.xlu1 %2904, %v85_v44  }
  0x36   :  { %2658 = vmatmul.mubr.msk.f32.gmra.mxu0 %vm307_vm1, %v33_v42  ;;  %2700 = vmatmul.mubr.msk.f32.gmra.mxu1 %vm307_vm1, %v33_v42 }
  0x37   :  { %579 = vmatprep.mubr.f32.mxu0 %v5702_v4  ;;  %884 = vmatprep.mubr.f32.mxu1 %v5702_v4 }
  0x38   :  { %210 = vperm.xlu0 %2903, %v84_v46   ;;  %205 = vperm.xlu1 %2904, %v83_v47  }
  0x3a   :  { %2659 = vmatmul.mubr.msk.f32.gmra.mxu0 %vm307_vm1, %v34_v45  ;;  %2701 = vmatmul.mubr.msk.f32.gmra.mxu1 %vm307_vm1, %v34_v45 }
  0x3b   :  { %585 = vmatprep.mubr.f32.mxu0 %v5702_v4  ;;  %890 = vmatprep.mubr.f32.mxu1 %v5702_v4 }
  0x3c   :  { %200 = vperm.xlu0 %2903, %v82_v49   ;;  %195 = vperm.xlu1 %2904, %v81_v50  }
  0x3e   :  { %2660 = vmatmul.mubr.msk.f32.gmra.mxu0 %vm307_vm1, %v35_v48  ;;  %2702 = vmatmul.mubr.msk.f32.gmra.mxu1 %vm307_vm1, %v35_v48 }
  0x3f   :  { %591 = vmatprep.mubr.f32.mxu0 %v5702_v4  ;;  %896 = vmatprep.mubr.f32.mxu1 %v5702_v4 }
  0x40   :  { %190 = vperm.xlu0 %2903, %v80_v52   ;;  %185 = vperm.xlu1 %2904, %v79_v53  }
  0x42   :  { %2661 = vmatmul.mubr.msk.f32.gmra.mxu0 %vm307_vm1, %v36_v51  ;;  %2703 = vmatmul.mubr.msk.f32.gmra.mxu1 %vm307_vm1, %v36_v51 }
  0x43   :  { %597 = vmatprep.mubr.f32.mxu0 %v5702_v4  ;;  %902 = vmatprep.mubr.f32.mxu1 %v5702_v4 }
  0x44   :  { %300 = vperm.xlu0 %2903, %v102_v55   ;;  %295 = vperm.xlu1 %2904, %v101_v56  }
  0x46   :  { %2662 = vmatmul.mubr.msk.f32.gmra.mxu0 %vm307_vm1, %v37_v54  ;;  %2704 = vmatmul.mubr.msk.f32.gmra.mxu1 %vm307_vm1, %v37_v54 }
  0x47   :  { %603 = vmatprep.mubr.f32.mxu0 %v5702_v4  ;;  %908 = vmatprep.mubr.f32.mxu1 %v5702_v4 }
  0x48   :  { %290 = vperm.xlu0 %2903, %v100_v58   ;;  %285 = vperm.xlu1 %2904, %v99_v59  }
  0x4a   :  { %2663 = vmatmul.mubr.msk.f32.gmra.mxu0 %vm307_vm1, %v38_v57  ;;  %2705 = vmatmul.mubr.msk.f32.gmra.mxu1 %vm307_vm1, %v38_v57 }
  0x4b   :  { %609 = vmatprep.mubr.f32.mxu0 %v5702_v4  ;;  %914 = vmatprep.mubr.f32.mxu1 %v5702_v4 }
  0x4c   :  { %280 = vperm.xlu0 %2903, %v98_v61   ;;  %275 = vperm.xlu1 %2904, %v97_v62  }
  0x4e   :  { %2664 = vmatmul.mubr.msk.f32.gmra.mxu0 %vm307_vm1, %v39_v60  ;;  %2706 = vmatmul.mubr.msk.f32.gmra.mxu1 %vm307_vm1, %v39_v60 }
  0x4f   :  { %615 = vmatprep.mubr.f32.mxu0 %v5702_v4  ;;  %920 = vmatprep.mubr.f32.mxu1 %v5702_v4 }
  0x50   :  { %270 = vperm.xlu0 %2903, %v96_v0   ;;  %265 = vperm.xlu1 %2904, %v95_v1  }
  0x52   :  { %2665 = vmatmul.mubr.msk.f32.gmra.mxu0 %vm307_vm1, %v40_v63  ;;  %2707 = vmatmul.mubr.msk.f32.gmra.mxu1 %vm307_vm1, %v40_v63 }
  0x53   :  { %621 = vmatprep.mubr.f32.mxu0 %v5702_v4  ;;  %926 = vmatprep.mubr.f32.mxu1 %v5702_v4 }
  0x54   :  { %2189 = vperm.xlu0 %2903, %v2182_v3   ;;  %2194 = vperm.xlu1 %2904, %v2183_v5  }
  0x56   :  { %2666 = vmatmul.mubr.msk.f32.gmra.mxu0 %vm307_vm1, %v41_v2  ;;  %2708 = vmatmul.mubr.msk.f32.gmra.mxu1 %vm307_vm1, %v41_v2 }
  0x57   :  { %627 = vmatprep.mubr.f32.mxu0 %v5702_v4  ;;  %932 = vmatprep.mubr.f32.mxu1 %v5702_v4 }
  0x58   :  { %2199 = vperm.xlu0 %2903, %v2184_v7   ;;  %2204 = vperm.xlu1 %2904, %v2185_v8  }
  0x5a   :  { %2667 = vmatmul.mubr.msk.f32.gmra.mxu0 %vm307_vm1, %v42_v6  ;;  %2709 = vmatmul.mubr.msk.f32.gmra.mxu1 %vm307_vm1, %v42_v6 }
  0x5b   :  { %633 = vmatprep.mubr.f32.mxu0 %v5702_v4  ;;  %938 = vmatprep.mubr.f32.mxu1 %v5702_v4 }
  0x5c   :  { %2209 = vperm.xlu0 %2903, %v2186_v10  }
  0x5e   :  { %2668 = vmatmul.mubr.msk.f32.gmra.mxu0 %vm307_vm1, %v43_v9  ;;  %2710 = vmatmul.mubr.msk.f32.gmra.mxu1 %vm307_vm1, %v43_v9 }
  0x5f   :  { %639 = vmatprep.mubr.f32.mxu0 %v5702_v4  ;;  %944 = vmatprep.mubr.f32.mxu1 %v5702_v4 }
  0x62   :  { %2669 = vmatmul.mubr.msk.f32.gmra.mxu0 %vm307_vm1, %v44_v11  ;;  %2711 = vmatmul.mubr.msk.f32.gmra.mxu1 %vm307_vm1, %v44_v11 }
  0x63   :  { %645 = vmatprep.mubr.f32.mxu0 %v5702_v4  ;;  %950 = vmatprep.mubr.f32.mxu1 %v5702_v4 }
  0x66   :  { %2670 = vmatmul.mubr.msk.f32.gmra.mxu0 %vm307_vm1, %v45_v12  ;;  %2712 = vmatmul.mubr.msk.f32.gmra.mxu1 %vm307_vm1, %v45_v12 }
  0x67   :  { %651 = vmatprep.mubr.f32.mxu0 %v5702_v4  ;;  %956 = vmatprep.mubr.f32.mxu1 %v5702_v4 }
  0x6a   :  { %2671 = vmatmul.mubr.msk.f32.gmra.mxu0 %vm307_vm1, %v46_v13  ;;  %2713 = vmatmul.mubr.msk.f32.gmra.mxu1 %vm307_vm1, %v46_v13 }
  0x6b   :  { %657 = vmatprep.mubr.f32.mxu0 %v5702_v4  ;;  %962 = vmatprep.mubr.f32.mxu1 %v5702_v4 }
  0x6e   :  { %2672 = vmatmul.mubr.msk.f32.gmra.mxu0 %vm307_vm1, %v47_v14  ;;  %2714 = vmatmul.mubr.msk.f32.gmra.mxu1 %vm307_vm1, %v47_v14 }
  0x6f   :  { %663 = vmatprep.mubr.f32.mxu0 %v5702_v4  ;;  %968 = vmatprep.mubr.f32.mxu1 %v5702_v4 }
  0x72   :  { %2673 = vmatmul.mubr.msk.f32.gmra.mxu0 %vm307_vm1, %v48_v15  ;;  %2715 = vmatmul.mubr.msk.f32.gmra.mxu1 %vm307_vm1, %v48_v15 }
  0x73   :  { %669 = vmatprep.mubr.f32.mxu0 %v5702_v4  ;;  %974 = vmatprep.mubr.f32.mxu1 %v5702_v4 }
  0x76   :  { %2674 = vmatmul.mubr.msk.f32.gmra.mxu0 %vm307_vm1, %v49_v16  ;;  %2716 = vmatmul.mubr.msk.f32.gmra.mxu1 %vm307_vm1, %v49_v16 }
  0x77   :  { %675 = vmatprep.mubr.f32.mxu0 %v5702_v4  ;;  %980 = vmatprep.mubr.f32.mxu1 %v5702_v4 }
  0x7a   :  { %2675 = vmatmul.mubr.msk.f32.gmra.mxu0 %vm307_vm1, %v50_v17  ;;  %2717 = vmatmul.mubr.msk.f32.gmra.mxu1 %vm307_vm1, %v50_v17 }
  0x7b   :  { %681 = vmatprep.mubr.f32.mxu0 %v5702_v4  ;;  %986 = vmatprep.mubr.f32.mxu1 %v5702_v4 }
  0x7e   :  { %2676 = vmatmul.mubr.msk.f32.gmra.mxu0 %vm307_vm1, %v51_v18  ;;  %2718 = vmatmul.mubr.msk.f32.gmra.mxu1 %vm307_vm1, %v51_v18  ;;  %v4016_v27 = vpop.permute.xlu1 %170  ;;  %v4025_v29 = vpop.permute.xlu0 %180 }
  0x7f   :  { %687 = vmatprep.mubr.f32.mxu0 %v5702_v4  ;;  %992 = vmatprep.mubr.f32.mxu1 %v5702_v4 }
  0x82   :  { %2677 = vmatmul.mubr.msk.f32.gmra.mxu0 %vm307_vm1, %v52_v19  ;;  %2719 = vmatmul.mubr.msk.f32.gmra.mxu1 %vm307_vm1, %v52_v19 }
  0x83   :  { %693 = vmatprep.mubr.f32.mxu0 %v5702_v4  ;;  %998 = vmatprep.mubr.f32.mxu1 %v5702_v4  ;;  %v4027_v30 = vpop.permute.xlu1 %165  ;;  %v4031_v31 = vpop.permute.xlu0 %175 }
  0x86   :  { %2678 = vmatmul.mubr.msk.f32.gmra.mxu0 %vm307_vm1, %v53_v20  ;;  %2720 = vmatmul.mubr.msk.f32.gmra.mxu1 %vm307_vm1, %v53_v20 }
  0x87   :  { %699 = vmatprep.mubr.f32.mxu0 %v5702_v4  ;;  %1004 = vmatprep.mubr.f32.mxu1 %v5702_v4  ;;  %v4033_v32 = vpop.permute.xlu1 %155  ;;  %v4035_v33 = vpop.permute.xlu0 %160 }
  0x8a   :  { %2679 = vmatmul.mubr.msk.f32.gmra.mxu0 %vm307_vm1, %v54_v21  ;;  %2721 = vmatmul.mubr.msk.f32.gmra.mxu1 %vm307_vm1, %v54_v21 }
  0x8b   :  { %705 = vmatprep.mubr.f32.mxu0 %v5702_v4  ;;  %1010 = vmatprep.mubr.f32.mxu1 %v5702_v4  ;;  %v4037_v34 = vpop.permute.xlu1 %145  ;;  %v4039_v35 = vpop.permute.xlu0 %150 }
  0x8e   :  { %2680 = vmatmul.mubr.msk.f32.gmra.mxu0 %vm307_vm1, %v55_v22  ;;  %2722 = vmatmul.mubr.msk.f32.gmra.mxu1 %vm307_vm1, %v55_v22 }
  0x8f   :  { %711 = vmatprep.mubr.f32.mxu0 %v5702_v4  ;;  %1016 = vmatprep.mubr.f32.mxu1 %v5702_v4  ;;  %v4041_v36 = vpop.permute.xlu1 %135  ;;  %v4043_v37 = vpop.permute.xlu0 %140 }
  0x92   :  { %2681 = vmatmul.mubr.msk.f32.gmra.mxu0 %vm307_vm1, %v56_v23  ;;  %2723 = vmatmul.mubr.msk.f32.gmra.mxu1 %vm307_vm1, %v56_v23 }
  0x93   :  { %717 = vmatprep.mubr.f32.mxu0 %v5702_v4  ;;  %1022 = vmatprep.mubr.f32.mxu1 %v5702_v4  ;;  %v4045_v38 = vpop.permute.xlu1 %125  ;;  %v4047_v39 = vpop.permute.xlu0 %130 }
  0x96   :  { %2682 = vmatmul.mubr.msk.f32.gmra.mxu0 %vm307_vm1, %v57_v24  ;;  %2724 = vmatmul.mubr.msk.f32.gmra.mxu1 %vm307_vm1, %v57_v24 }
  0x97   :  { %723 = vmatprep.mubr.f32.mxu0 %v5702_v4  ;;  %1028 = vmatprep.mubr.f32.mxu1 %v5702_v4  ;;  %v116_v40 = vpop.permute.xlu1 %115  ;;  %v4049_v41 = vpop.permute.xlu0 %120 }
  0x9a   :  { %2683 = vmatmul.mubr.msk.f32.gmra.mxu0 %vm307_vm1, %v58_v25  ;;  %2725 = vmatmul.mubr.msk.f32.gmra.mxu1 %vm307_vm1, %v58_v25 }
  0x9b   :  { %729 = vmatprep.mubr.f32.mxu0 %v5702_v4  ;;  %1034 = vmatprep.mubr.f32.mxu1 %v5702_v4  ;;  %v106_v42 = vpop.permute.xlu1 %105  ;;  %v111_v49 = vpop.permute.xlu0 %110 }
  0x9e   :  { %2684 = vmatmul.mubr.msk.f32.gmra.mxu0 %vm307_vm1, %v59_v26  ;;  %2726 = vmatmul.mubr.msk.f32.gmra.mxu1 %vm307_vm1, %v59_v26 }
  0x9f   :  { %735 = vmatprep.mubr.f32.mxu0 %v5702_v4  ;;  %1040 = vmatprep.mubr.f32.mxu1 %v5702_v4 }
  0xa2   :  { %2685 = vmatmul.mubr.msk.f32.gmra.mxu0 %vm307_vm1, %v60_v28  ;;  %2727 = vmatmul.mubr.msk.f32.gmra.mxu1 %vm307_vm1, %v60_v28 }
  0xc6   :  { %v503_v43 = vpop.f32.mrf.mxu0  ;;  %v808_v44 = vpop.f32.mrf.mxu1 }
  0xc7   :  { %v4051_v45 = vadd.f32 %v503_v43, %v106_v42  ;;  %v4053_v48 = vadd.f32 %v808_v44, %v106_v42 }
  0xc8   :  { %v505_v46 = vpop.f32.mrf.mxu0  ;;  %v810_v47 = vpop.f32.mrf.mxu1 }
  0xc9   :  { %5822 = vst [vmem:[#allocation5_spill] sm:$0xff] %v4051_v45  ;;  %5823 = vst [vmem:[#allocation6_spill] sm:$0xff] %v4053_v48  ;;  %v4055_v50 = vadd.f32 %v505_v46, %v106_v42  ;;  %v4057_v53 = vadd.f32 %v810_v47, %v106_v42  ;;  %v2728_v54 = vmul.f32 -1.442695, %v4051_v45  ;;  %v2730_v58 = vmul.f32 -1.442695, %v4053_v48 }
  0xca   :  { %v509_v51 = vpop.f32.mrf.mxu0  ;;  %v814_v52 = vpop.f32.mrf.mxu1 }
  0xcb   :  { %5824 = vst [vmem:[#allocation7_spill] sm:$0xff] %v4055_v50  ;;  %5825 = vst [vmem:[#allocation8_spill] sm:$0xff] %v4057_v53  ;;  %v4060_v55 = vadd.f32 %v509_v51, %v111_v49  ;;  %v4063_v59 = vadd.f32 %v814_v52, %v111_v49  ;;  %v2729_v60 = vmul.f32 -1.442695, %v4055_v50  ;;  %v2731_v0 = vmul.f32 -1.442695, %v4057_v53 }
  0xcc   :  { %v511_v56 = vpop.f32.mrf.mxu0  ;;  %v816_v57 = vpop.f32.mrf.mxu1  ;;  %2907 = vpow2.f32 %v2728_v54 }
  0xcd   :  { %5826 = vst [vmem:[#allocation9_spill] sm:$0xff] %v4060_v55  ;;  %5827 = vst [vmem:[#allocation10_spill] sm:$0xff] %v4063_v59  ;;  %v4066_v61 = vadd.f32 %v511_v56, %v111_v49  ;;  %v4069_v1 = vadd.f32 %v816_v57, %v111_v49  ;;  %v2732_v2 = vmul.f32 -1.442695, %v4060_v55  ;;  %2909 = vpow2.f32 %v2730_v58 }
  0xce   :  { %v515_v62 = vpop.f32.mrf.mxu0  ;;  %v820_v63 = vpop.f32.mrf.mxu1  ;;  %v2734_v7 = vmul.f32 -1.442695, %v4063_v59  ;;  %2911 = vpow2.f32 %v2729_v60 }
  0xcf   :  { %5828 = vst [vmem:[#allocation11_spill] sm:$0xff] %v4069_v1  ;;  %v4072_v3 = vadd.f32 %v515_v62, %v116_v40  ;;  %v4075_v8 = vadd.f32 %v820_v63, %v116_v40  ;;  %v2733_v9 = vmul.f32 -1.442695, %v4066_v61  ;;  %2913 = vpow2.f32 %v2731_v0 }
  0xd0   :  { %v517_v5 = vpop.f32.mrf.mxu0  ;;  %v822_v6 = vpop.f32.mrf.mxu1  ;;  %v2735_v13 = vmul.f32 -1.442695, %v4069_v1  ;;  %2915 = vpow2.f32 %v2732_v2 }
  0xd1   :  { %5829 = vst [vmem:[#allocation12_spill] sm:$0xff] %v4075_v8  ;;  %v4078_v10 = vadd.f32 %v517_v5, %v116_v40  ;;  %v4081_v14 = vadd.f32 %v822_v6, %v116_v40  ;;  %v2736_v15 = vmul.f32 -1.442695, %v4072_v3  ;;  %2917 = vpow2.f32 %v2734_v7 }
  0xd2   :  { %v521_v11 = vpop.f32.mrf.mxu0  ;;  %v826_v12 = vpop.f32.mrf.mxu1  ;;  %v2738_v18 = vmul.f32 -1.442695, %v4075_v8  ;;  %2919 = vpow2.f32 %v2733_v9 }
  0xd3   :  { %5830 = vst [vmem:[#allocation13_spill] sm:$0xff] %v4081_v14  ;;  %v2737_v19 = vmul.f32 -1.442695, %v4078_v10  ;;  %2921 = vpow2.f32 %v2735_v13  ;;  %v2739_v22 = vmul.f32 -1.442695, %v4081_v14  ;;  %v4088_v23 = vadd.f32 %v521_v11, %v4049_v41 }
  0xd4   :  { %v523_v16 = vpop.f32.mrf.mxu0  ;;  %v828_v17 = vpop.f32.mrf.mxu1  ;;  %2923 = vpow2.f32 %v2736_v15  ;;  %v4091_v26 = vadd.f32 %v826_v12, %v4049_v41 }
  0xd5   :  { %2925 = vpow2.f32 %v2738_v18  ;;  %v4094_v28 = vadd.f32 %v523_v16, %v4049_v41  ;;  %v4099_v43 = vadd.f32 %v828_v17, %v4049_v41  ;;  %v2740_v44 = vmul.f32 -1.442695, %v4088_v23 }
  0xd6   :  { %v527_v20 = vpop.f32.mrf.mxu0  ;;  %v832_v21 = vpop.f32.mrf.mxu1  ;;  %5831 = vst [vmem:[#allocation14_spill] sm:$0xff] %v4091_v26  ;;  %2927 = vpow2.f32 %v2737_v19  ;;  %v2742_v51 = vmul.f32 -1.442695, %v4091_v26 }
  0xd7   :  { %2929 = vpow2.f32 %v2739_v22  ;;  %5832 = vst [vmem:[#allocation15_spill] sm:$0xff] %v4099_v43  ;;  %v2741_v54 = vmul.f32 -1.442695, %v4094_v28  ;;  %v2743_v58 = vmul.f32 -1.442695, %v4099_v43 }
  0xd8   :  { %v529_v24 = vpop.f32.mrf.mxu0  ;;  %v834_v25 = vpop.f32.mrf.mxu1  ;;  %2931 = vpow2.f32 %v2740_v44 }
  0xd9   :  { %v2908_v49 = vpop.eup %2907  ;;  %2933 = vpow2.f32 %v2742_v51 }
  0xda   :  { %v533_v40 = vpop.f32.mrf.mxu0  ;;  %v4096_v42 = vpop.f32.mrf.mxu1  ;;  %v1527_v62 = vadd.f32 1.0, %v2908_v49  ;;  %2935 = vpow2.f32 %v2741_v54  ;;  %v4120_v54 = vadd.f32 %v527_v20, %v4045_v38 }
  0xdb   :  { %v2910_v52 = vpop.eup %2909  ;;  %2937 = vpow2.f32 %v2743_v58  ;;  %v4123_v58 = vadd.f32 %v832_v21, %v4045_v38  ;;  %v4137_v21 = vadd.f32 %v533_v40, %v4047_v39 }
  0xdc   :  { %v4102_v46 = vpop.f32.mrf.mxu0  ;;  %v4104_v47 = vpop.f32.mrf.mxu1  ;;  %v1529_v0 = vadd.f32 1.0, %v2910_v52  ;;  %2939 = vrcp.f32 %v1527_v62  ;;  %5833 = vst [vmem:[#allocation16_spill] sm:$0xff] %v4120_v54  ;;  %v4126_v62 = vadd.f32 %v529_v24, %v4045_v38  ;;  %v2744_v20 = vmul.f32 -1.442695, %v4120_v54 }
  0xdd   :  { %v2912_v57 = vpop.eup %2911  ;;  %5834 = vst [vmem:[#allocation17_spill] sm:$0xff] %v4123_v58  ;;  %5837 = vst [vmem:[#allocation20_spill] sm:$0xff] %v4137_v21  ;;  %v2746_v24 = vmul.f32 -1.442695, %v4123_v58 }
  0xde   :  { %v4108_v56 = vpop.f32.mrf.mxu0  ;;  %v4111_v60 = vpop.f32.mrf.mxu1  ;;  %v1528_v5 = vadd.f32 1.0, %v2912_v57  ;;  %2941 = vrcp.f32 %v1529_v0  ;;  %5835 = vst [vmem:[#allocation18_spill] sm:$0xff] %v4126_v62 }
  0xdf   :  { %v2914_v41 = vpop.eup %2913 }
  0xe0   :  { %v2916_v63 = vpop.eup %2915  ;;  %v541_v6 = vpop.f32.mrf.mxu0  ;;  %v1530_v9 = vadd.f32 1.0, %v2914_v41  ;;  %2943 = vrcp.f32 %v1528_v5 }
  0xe1   :  { %v2918_v2 = vpop.eup %2917  ;;  %v4113_v11 = vpop.f32.mrf.mxu1  ;;  %v1531_v13 = vadd.f32 1.0, %v2916_v63 }
  0xe2   :  { %v2920_v7 = vpop.eup %2919  ;;  %v1533_v16 = vadd.f32 1.0, %v2918_v2  ;;  %v4115_v19 = vpop.f32.mrf.mxu0  ;;  %2945 = vrcp.f32 %v1530_v9  ;;  %v4131_v2 = vadd.f32 %v834_v25, %v4045_v38  ;;  %v4142_v9 = vadd.f32 %v4096_v42, %v4047_v39 }
  0xe3   :  { %v2922_v12 = vpop.eup %2921  ;;  %v1532_v18 = vadd.f32 1.0, %v2920_v7  ;;  %v4117_v49 = vpop.f32.mrf.mxu1  ;;  %2947 = vrcp.f32 %v1531_v13  ;;  %v2745_v38 = vmul.f32 -1.442695, %v4126_v62  ;;  %v4147_v25 = vadd.f32 %v4102_v46, %v4047_v39 }
  0xe4   :  { %v2924_v15 = vpop.eup %2923  ;;  %v1534_v44 = vadd.f32 1.0, %v2922_v12  ;;  %2949 = vrcp.f32 %v1533_v16  ;;  %v4128_v63 = vpop.f32.mrf.mxu0  ;;  %5836 = vst [vmem:[#allocation19_spill] sm:$0xff] %v4131_v2  ;;  %5838 = vst [vmem:[#allocation21_spill] sm:$0xff] %v4142_v9  ;;  %v4154_v16 = vadd.f32 %v4104_v47, %v4047_v39  ;;  %v4161_v46 = vadd.f32 %v4108_v56, %v4041_v36 }
  0xe5   :  { %v2926_v17 = vpop.eup %2925  ;;  %v1535_v52 = vadd.f32 1.0, %v2924_v15  ;;  %2951 = vrcp.f32 %v1532_v18  ;;  %v4133_v5 = vpop.f32.mrf.mxu1  ;;  %5839 = vst [vmem:[#allocation22_spill] sm:$0xff] %v4147_v25  ;;  %v2747_v15 = vmul.f32 -1.442695, %v4131_v2  ;;  %v2748_v18 = vmul.f32 -1.442695, %v4137_v21 }
  0xe6   :  { %v2928_v22 = vpop.eup %2927  ;;  %v1537_v57 = vadd.f32 1.0, %v2926_v17  ;;  %2953 = vrcp.f32 %v1534_v44  ;;  %v4149_v13 = vpop.f32.mrf.mxu0  ;;  %5840 = vst [vmem:[#allocation23_spill] sm:$0xff] %v4154_v16  ;;  %5841 = vst [vmem:[#allocation24_spill] sm:$0xff] %v4161_v46  ;;  %v2750_v44 = vmul.f32 -1.442695, %v4142_v9 }
  0xe7   :  { %v2930_v51 = vpop.eup %2929  ;;  %v1536_v41 = vadd.f32 1.0, %v2928_v22  ;;  %2955 = vrcp.f32 %v1535_v52  ;;  %v4156_v42 = vpop.f32.mrf.mxu1  ;;  %v2749_v47 = vmul.f32 -1.442695, %v4147_v25  ;;  %v4174_v52 = vadd.f32 %v541_v6, %v4041_v36 }
  0xe8   :  { %v1538_v0 = vadd.f32 1.0, %v2930_v51  ;;  %v2932_v7 = vpop.eup %2931  ;;  %2957 = vrcp.f32 %v1537_v57  ;;  %v4168_v51 = vadd.f32 %v4111_v60, %v4041_v36  ;;  %v4176_v57 = vpop.f32.mrf.mxu0 }
  0xe9   :  { %v2934_v12 = vpop.eup %2933  ;;  %2959 = vrcp.f32 %v1536_v41  ;;  %5845 = vst [vmem:[#allocation28_spill] sm:$0xff] %v4174_v52  ;;  %v2751_v41 = vmul.f32 -1.442695, %v4154_v16  ;;  %v4185_v60 = vpop.f32.mrf.mxu1 }
  0xea   :  { %v2936_v40 = vpop.eup %2935  ;;  %2961 = vrcp.f32 %v1538_v0  ;;  %5843 = vst [vmem:[#allocation26_spill] sm:$0xff] %v4168_v51  ;;  %v4183_v0 = vadd.f32 %v4113_v11, %v4041_v36  ;;  %v1541_v53 = vadd.f32 1.0, %v2934_v12  ;;  %v4227_v12 = vadd.f32 %v4133_v5, %v4043_v37 }
  0xeb   :  { %v2938_v17 = vpop.eup %2937  ;;  %2963 = vpow2.f32 %v2744_v20  ;;  %v1540_v45 = vadd.f32 1.0, %v2936_v40 }
  0xec   :  { %v4163_v22 = vpop.eup %2939  ;;  %2965 = vpow2.f32 %v2746_v24  ;;  %5847 = vst [vmem:[#allocation30_spill] sm:$0xff] %v4183_v0  ;;  %v2752_v24 = vmul.f32 -1.442695, %v4161_v46  ;;  %v2755_v11 = vmul.f32 -1.442695, %v4183_v0  ;;  %5856 = vst [vmem:[#allocation39_spill] sm:$0xff] %v4227_v12 }
  0xed   :  { %5842 = vst [vmem:[#allocation25_spill] sm:$0xff] %v4163_v22  ;;  %v4170_v39 = vpop.eup %2941  ;;  %2967 = vpow2.f32 %v2745_v38  ;;  %v2754_v38 = vmul.f32 -1.442695, %v4168_v51  ;;  %v4213_v22 = vadd.f32 %v4117_v49, %v4043_v37 }
  0xee   :  { %5844 = vst [vmem:[#allocation27_spill] sm:$0xff] %v4170_v39  ;;  %v4178_v56 = vpop.eup %2943  ;;  %2969 = vpow2.f32 %v2747_v15  ;;  %v2753_v15 = vmul.f32 -1.442695, %v4174_v52  ;;  %v4196_v39 = vpop.f32.mrf.mxu0 }
  0xef   :  { %5846 = vst [vmem:[#allocation29_spill] sm:$0xff] %v4178_v56  ;;  %v4187_v20 = vpop.eup %2945  ;;  %2971 = vpow2.f32 %v2748_v18  ;;  %v4201_v18 = vpop.f32.mrf.mxu1  ;;  %5853 = vst [vmem:[#allocation36_spill] sm:$0xff] %v4213_v22 }
  0xf0   :  { %5848 = vst [vmem:[#allocation31_spill] sm:$0xff] %v4187_v20  ;;  %v4190_v6 = vpop.eup %2947  ;;  %2973 = vpow2.f32 %v2750_v44  ;;  %v1539_v20 = vadd.f32 1.0, %v2932_v7  ;;  %v4207_v44 = vadd.f32 %v4115_v19, %v4043_v37  ;;  %v4219_v7 = vadd.f32 %v4128_v63, %v4043_v37 }
  0xf1   :  { %5849 = vst [vmem:[#allocation32_spill] sm:$0xff] %v4190_v6  ;;  %v4193_v4 = vpop.eup %2949  ;;  %2975 = vpow2.f32 %v2749_v47  ;;  %v4229_v49 = vpop.f32.mrf.mxu1  ;;  %v2758_v63 = vmul.f32 -1.442695, %v4213_v22  ;;  %v2759_v37 = vmul.f32 -1.442695, %v4227_v12 }
  0xf2   :  { %5850 = vst [vmem:[#allocation33_spill] sm:$0xff] %v4193_v4  ;;  %v4198_v36 = vpop.eup %2951  ;;  %2977 = vpow2.f32 %v2751_v41  ;;  %5852 = vst [vmem:[#allocation35_spill] sm:$0xff] %v4207_v44  ;;  %v1542_v4 = vadd.f32 1.0, %v2938_v17  ;;  %v2756_v40 = vmul.f32 -1.442695, %v4207_v44  ;;  %v4376_v22 = vpop.permute.xlu1 %255 }
  0xf3   :  { %v4203_v48 = vpop.eup %2953  ;;  %2979 = vpow2.f32 %v2752_v24  ;;  %5855 = vst [vmem:[#allocation38_spill] sm:$0xff] %v4219_v7  ;;  %v4221_v24 = vpop.f32.mrf.mxu0  ;;  %v2757_v17 = vmul.f32 -1.442695, %v4219_v7  ;;  %5888 = vst [vmem:[#allocation71_spill] sm:$0xff] %v4376_v22 }
  0xf4   :  { %5851 = vst [vmem:[#allocation34_spill] sm:$0xff] %v4203_v48  ;;  %v4209_v47 = vpop.eup %2955  ;;  %2981 = vpow2.f32 %v2754_v38  ;;  %v4239_v5 = vpop.f32.mrf.mxu1 }
  0xf5   :  { %v4215_v41 = vpop.eup %2957  ;;  %2983 = vpow2.f32 %v2753_v15  ;;  %v4325_v51 = vadd.f32 %v4239_v5, %v4033_v32  ;;  %v4379_v22 = vpop.permute.xlu0 %260 }
  0xf6   :  { %5854 = vst [vmem:[#allocation37_spill] sm:$0xff] %v4215_v41  ;;  %v4223_v19 = vpop.eup %2959  ;;  %2985 = vpow2.f32 %v2755_v11  ;;  %v4236_v11 = vpop.f32.mrf.mxu0  ;;  %5889 = vst [vmem:[#allocation72_spill] sm:$0xff] %v4379_v22 }
  0xf7   :  { %v4231_v38 = vpop.eup %2961  ;;  %2987 = vrcp.f32 %v1539_v20  ;;  %v4243_v8 = vpop.f32.mrf.mxu1  ;;  %5875 = vst [vmem:[#allocation58_spill] sm:$0xff] %v4325_v51 }
  0xf8   :  { %5857 = vst [vmem:[#allocation40_spill] sm:$0xff] %v4231_v38  ;;  %v2964_v15 = vpop.eup %2963  ;;  %2989 = vrcp.f32 %v1541_v53 }
  0xf9   :  { %v2966_v59 = vpop.eup %2965  ;;  %2991 = vrcp.f32 %v1540_v45  ;;  %v1543_v20 = vadd.f32 1.0, %v2964_v15  ;;  %v4241_v45 = vpop.f32.mrf.mxu0 }
  0xfa   :  { %v2968_v56 = vpop.eup %2967  ;;  %2993 = vrcp.f32 %v1542_v4  ;;  %v1545_v1 = vadd.f32 1.0, %v2966_v59  ;;  %v4247_v26 = vpop.f32.mrf.mxu1 }
  0xfb   :  { %v2970_v50 = vpop.eup %2969  ;;  %2995 = vpow2.f32 %v2756_v40  ;;  %v1544_v6 = vadd.f32 1.0, %v2968_v56  ;;  %v4420_v22 = vpop.permute.xlu0 %250 }
  0xfc   :  { %v2972_v48 = vpop.eup %2971  ;;  %2997 = vpow2.f32 %v2758_v63  ;;  %v1546_v41 = vadd.f32 1.0, %v2970_v50  ;;  %v4245_v63 = vpop.f32.mrf.mxu0  ;;  %5895 = vst [vmem:[#allocation78_spill] sm:$0xff] %v4420_v22 }
  0xfd   :  { %v2974_v53 = vpop.eup %2973  ;;  %2999 = vpow2.f32 %v2757_v17  ;;  %v1547_v38 = vadd.f32 1.0, %v2972_v48 }
  0xfe   :  { %v2976_v55 = vpop.eup %2975  ;;  %3001 = vpow2.f32 %v2759_v37  ;;  %v1549_v15 = vadd.f32 1.0, %v2974_v53 }
  0xff   :  { %v2978_v4 = vpop.eup %2977  ;;  %3003 = vrcp.f32 %v1543_v20  ;;  %v1548_v59 = vadd.f32 1.0, %v2976_v55  ;;  %v4251_v20 = vadd.f32 %v4149_v13, %v4037_v34  ;;  %v4257_v55 = vadd.f32 %v4156_v42, %v4037_v34  ;;  %v4273_v42 = vpop.f32.mrf.mxu1 }
 0x100   :  { %v2980_v14 = vpop.eup %2979  ;;  %3005 = vrcp.f32 %v1545_v1  ;;  %v1550_v17 = vadd.f32 1.0, %v2978_v4  ;;  %v4271_v4 = vadd.f32 %v4185_v60, %v4037_v34 }
 0x101   :  { %v2982_v40 = vpop.eup %2981  ;;  %3007 = vrcp.f32 %v1544_v6  ;;  %v1551_v37 = vadd.f32 1.0, %v2980_v14  ;;  %5858 = vst [vmem:[#allocation41_spill] sm:$0xff] %v4251_v20  ;;  %5859 = vst [vmem:[#allocation42_spill] sm:$0xff] %v4257_v55  ;;  %v4265_v14 = vpop.f32.mrf.mxu0 }
 0x102   :  { %v2984_v56 = vpop.eup %2983  ;;  %3009 = vrcp.f32 %v1546_v41  ;;  %v1553_v1 = vadd.f32 1.0, %v2982_v40  ;;  %5863 = vst [vmem:[#allocation46_spill] sm:$0xff] %v4271_v4  ;;  %v2760_v40 = vmul.f32 -1.442695, %v4251_v20 }
 0x103   :  { %v2986_v50 = vpop.eup %2985  ;;  %3011 = vrcp.f32 %v1547_v38  ;;  %v1552_v41 = vadd.f32 1.0, %v2984_v56  ;;  %v4263_v38 = vadd.f32 %v4176_v57, %v4037_v34  ;;  %v4280_v57 = vadd.f32 %v4196_v39, %v4039_v35 }
 0x104   :  { %v4253_v48 = vpop.eup %2987  ;;  %3013 = vrcp.f32 %v1549_v15  ;;  %v1554_v53 = vadd.f32 1.0, %v2986_v50  ;;  %v2762_v56 = vmul.f32 -1.442695, %v4257_v55  ;;  %v4290_v50 = vadd.f32 %v4221_v24, %v4039_v35 }
 0x105   :  { %v4259_v6 = vpop.eup %2989  ;;  %3015 = vrcp.f32 %v1548_v59  ;;  %5861 = vst [vmem:[#allocation44_spill] sm:$0xff] %v4263_v38  ;;  %5865 = vst [vmem:[#allocation48_spill] sm:$0xff] %v4280_v57  ;;  %v2761_v60 = vmul.f32 -1.442695, %v4263_v38 }
 0x106   :  { %5860 = vst [vmem:[#allocation43_spill] sm:$0xff] %v4259_v6  ;;  %v4267_v13 = vpop.eup %2991  ;;  %3017 = vrcp.f32 %v1550_v17  ;;  %v4285_v17 = vadd.f32 %v4201_v18, %v4039_v35  ;;  %5867 = vst [vmem:[#allocation50_spill] sm:$0xff] %v4290_v50  ;;  %v4297_v6 = vadd.f32 %v4229_v49, %v4039_v35  ;;  %v4299_v18 = vpop.f32.mrf.mxu1 }
 0x107   :  { %5862 = vst [vmem:[#allocation45_spill] sm:$0xff] %v4267_v13  ;;  %v4275_v15 = vpop.eup %2993  ;;  %3019 = vrcp.f32 %v1551_v37  ;;  %v4292_v37 = vpop.f32.mrf.mxu0 }
 0x108   :  { %5864 = vst [vmem:[#allocation47_spill] sm:$0xff] %v4275_v15  ;;  %v2996_v59 = vpop.eup %2995  ;;  %3021 = vrcp.f32 %v1553_v1  ;;  %5866 = vst [vmem:[#allocation49_spill] sm:$0xff] %v4285_v17  ;;  %v2763_v1 = vmul.f32 -1.442695, %v4271_v4  ;;  %v2766_v24 = vmul.f32 -1.442695, %v4285_v17 }
 0x109   :  { %v2998_v34 = vpop.eup %2997  ;;  %3023 = vrcp.f32 %v1552_v41  ;;  %5868 = vst [vmem:[#allocation51_spill] sm:$0xff] %v4297_v6  ;;  %v2764_v41 = vmul.f32 -1.442695, %v4280_v57  ;;  %v4308_v2 = vpop.f32.mrf.mxu0  ;;  %v2767_v49 = vmul.f32 -1.442695, %v4297_v6  ;;  %v1555_v16 = vadd.f32 1.0, %v2996_v59 }
 0x10a   :  { %v3000_v39 = vpop.eup %2999  ;;  %3025 = vrcp.f32 %v1554_v53  ;;  %v2765_v53 = vmul.f32 -1.442695, %v4290_v50  ;;  %v4331_v59 = vadd.f32 %v4241_v45, %v4033_v32  ;;  %v4348_v45 = vadd.f32 %v4245_v63, %v4035_v33  ;;  %v4460_v6 = vpop.permute.xlu0 %240 }
 0x10b   :  { %v3002_v15 = vpop.eup %3001  ;;  %3027 = vpow2.f32 %v2760_v40  ;;  %v4313_v40 = vpop.f32.mrf.mxu1  ;;  %v1556_v25 = vadd.f32 1.0, %v3000_v39  ;;  %5897 = vst [vmem:[#allocation80_spill] sm:$0xff] %v4460_v6 }
 0x10c   :  { %v4302_v43 = vpop.eup %3003  ;;  %3029 = vpow2.f32 %v2762_v56  ;;  %v4319_v56 = vadd.f32 %v4236_v11, %v4033_v32  ;;  %5877 = vst [vmem:[#allocation60_spill] sm:$0xff] %v4331_v59  ;;  %5881 = vst [vmem:[#allocation64_spill] sm:$0xff] %v4348_v45 }
 0x10d   :  { %5869 = vst [vmem:[#allocation52_spill] sm:$0xff] %v4302_v43  ;;  %v4305_v58 = vpop.eup %3005  ;;  %3031 = vpow2.f32 %v2761_v60  ;;  %v4341_v5 = vpop.f32.mrf.mxu1 }
 0x10e   :  { %5870 = vst [vmem:[#allocation53_spill] sm:$0xff] %v4305_v58  ;;  %v4310_v35 = vpop.eup %3007  ;;  %3033 = vpow2.f32 %v2763_v1  ;;  %5873 = vst [vmem:[#allocation56_spill] sm:$0xff] %v4319_v56  ;;  %v1557_v58 = vadd.f32 1.0, %v2998_v34  ;;  %v4339_v34 = vadd.f32 %v4243_v8, %v4033_v32  ;;  %v2768_v39 = vmul.f32 -1.442695, %v4319_v56 }
 0x10f   :  { %5871 = vst [vmem:[#allocation54_spill] sm:$0xff] %v4310_v35  ;;  %v4315_v9 = vpop.eup %3009  ;;  %3035 = vpow2.f32 %v2764_v41  ;;  %v4333_v41 = vpop.f32.mrf.mxu0  ;;  %v4355_v32 = vadd.f32 %v4247_v26, %v4035_v33 }
 0x110   :  { %5872 = vst [vmem:[#allocation55_spill] sm:$0xff] %v4315_v9  ;;  %v4321_v60 = vpop.eup %3011  ;;  %3037 = vpow2.f32 %v2766_v24  ;;  %v1558_v9 = vadd.f32 1.0, %v3002_v15  ;;  %5879 = vst [vmem:[#allocation62_spill] sm:$0xff] %v4339_v34  ;;  %v2770_v15 = vmul.f32 -1.442695, %v4325_v51  ;;  %v888_v26 = vpop.f32.mrf.mxu1 }
 0x111   :  { %5874 = vst [vmem:[#allocation57_spill] sm:$0xff] %v4321_v60  ;;  %v4327_v1 = vpop.eup %3013  ;;  %3039 = vpow2.f32 %v2765_v53  ;;  %5883 = vst [vmem:[#allocation66_spill] sm:$0xff] %v4355_v32  ;;  %v583_v63 = vpop.f32.mrf.mxu0 }
 0x112   :  { %5876 = vst [vmem:[#allocation59_spill] sm:$0xff] %v4327_v1  ;;  %v4335_v11 = vpop.eup %3015  ;;  %3041 = vpow2.f32 %v2767_v49  ;;  %v4362_v49 = vadd.f32 %v4265_v14, %v4035_v33  ;;  %v2774_v14 = vmul.f32 -1.442695, %v4355_v32 }
 0x113   :  { %5878 = vst [vmem:[#allocation61_spill] sm:$0xff] %v4335_v11  ;;  %v4343_v24 = vpop.eup %3017  ;;  %3043 = vrcp.f32 %v1555_v16  ;;  %v2769_v16 = vmul.f32 -1.442695, %v4331_v59 }
 0x114   :  { %5880 = vst [vmem:[#allocation63_spill] sm:$0xff] %v4343_v24  ;;  %v4350_v53 = vpop.eup %3019  ;;  %3045 = vrcp.f32 %v1557_v58  ;;  %v2771_v58 = vmul.f32 -1.442695, %v4339_v34  ;;  %v4369_v24 = vadd.f32 %v4273_v42, %v4035_v33  ;;  %v892_v42 = vpop.f32.mrf.mxu1 }
 0x115   :  { %5882 = vst [vmem:[#allocation65_spill] sm:$0xff] %v4350_v53  ;;  %v4357_v8 = vpop.eup %3021  ;;  %3047 = vrcp.f32 %v1556_v25  ;;  %v2772_v25 = vmul.f32 -1.442695, %v4348_v45  ;;  %v587_v53 = vpop.f32.mrf.mxu0 }
 0x116   :  { %5884 = vst [vmem:[#allocation67_spill] sm:$0xff] %v4357_v8  ;;  %v4364_v1 = vpop.eup %3023  ;;  %3049 = vrcp.f32 %v1558_v9  ;;  %5886 = vst [vmem:[#allocation69_spill] sm:$0xff] %v4369_v24  ;;  %v2773_v9 = vmul.f32 -1.442695, %v4362_v49  ;;  %v2775_v33 = vmul.f32 -1.442695, %v4369_v24  ;;  %v894_v7 = vpop.f32.mrf.mxu1 }
 0x117   :  { %5885 = vst [vmem:[#allocation68_spill] sm:$0xff] %v4364_v1  ;;  %v4371_v11 = vpop.eup %3025  ;;  %3051 = vpow2.f32 %v2768_v39  ;;  %v4448_v20 = vadd.f32 %v894_v7, %v4031_v31 }
 0x118   :  { %5887 = vst [vmem:[#allocation70_spill] sm:$0xff] %v4371_v11  ;;  %v3028_v8 = vpop.eup %3027  ;;  %3053 = vpow2.f32 %v2770_v15 }
 0x119   :  { %v3030_v0 = vpop.eup %3029  ;;  %3055 = vpow2.f32 %v2769_v16  ;;  %v1559_v39 = vadd.f32 1.0, %v3028_v8  ;;  %v589_v16 = vpop.f32.mrf.mxu0  ;;  %v4383_v8 = vadd.f32 %v4292_v37, %v4027_v30 }
 0x11a   :  { %v3032_v46 = vpop.eup %3031  ;;  %3057 = vpow2.f32 %v2771_v58  ;;  %v1561_v52 = vadd.f32 1.0, %v3030_v0  ;;  %v4387_v0 = vpop.permute.xlu1 %245 }
 0x11b   :  { %v3034_v11 = vpop.eup %3033  ;;  %3059 = vpow2.f32 %v2772_v25  ;;  %v1560_v12 = vadd.f32 1.0, %v3032_v46  ;;  %5891 = vst [vmem:[#allocation74_spill] sm:$0xff] %v4387_v0  ;;  %v593_v37 = vpop.f32.mrf.mxu0  ;;  %v4424_v0 = vadd.f32 %v888_v26, %v4016_v27 }
 0x11c   :  { %v3036_v1 = vpop.eup %3035  ;;  %3061 = vpow2.f32 %v2774_v14  ;;  %v1562_v55 = vadd.f32 1.0, %v3034_v11  ;;  %v4391_v11 = vadd.f32 %v4308_v2, %v4027_v30 }
 0x11d   :  { %v3038_v15 = vpop.eup %3037  ;;  %3063 = vpow2.f32 %v2773_v9  ;;  %v1563_v58 = vadd.f32 1.0, %v3036_v1  ;;  %v4397_v1 = vadd.f32 %v4313_v40, %v4027_v30 }
 0x11e   :  { %v3040_v44 = vpop.eup %3039  ;;  %3065 = vpow2.f32 %v2775_v33  ;;  %v1565_v46 = vadd.f32 1.0, %v3038_v15  ;;  %v898_v15 = vpop.f32.mrf.mxu1 }
 0x11f   :  { %v3042_v4 = vpop.eup %3041  ;;  %3067 = vrcp.f32 %v1559_v39  ;;  %v1564_v9 = vadd.f32 1.0, %v3040_v44  ;;  %v4410_v44 = vadd.f32 %v4341_v5, %v4016_v27  ;;  %v595_v5 = vpop.f32.mrf.mxu0 }
 0x120   :  { %v4385_v25 = vpop.eup %3043  ;;  %3069 = vrcp.f32 %v1561_v52  ;;  %v1566_v39 = vadd.f32 1.0, %v3042_v4  ;;  %v4403_v52 = vadd.f32 %v4333_v41, %v4016_v27  ;;  %v4416_v4 = vadd.f32 %v583_v63, %v4016_v27 }
 0x121   :  { %5890 = vst [vmem:[#allocation73_spill] sm:$0xff] %v4385_v25  ;;  %v4393_v14 = vpop.eup %3045  ;;  %3071 = vrcp.f32 %v1560_v12  ;;  %v2776_v12 = vmul.f32 -1.442695, %v4383_v8  ;;  %v4432_v63 = vadd.f32 %v587_v53, %v4031_v31  ;;  %v900_v25 = vpop.f32.mrf.mxu1  ;;  %v4438_v27 = vadd.f32 %v892_v42, %v4031_v31 }
 0x122   :  { %5892 = vst [vmem:[#allocation75_spill] sm:$0xff] %v4393_v14  ;;  %v4399_v33 = vpop.eup %3047  ;;  %3073 = vrcp.f32 %v1562_v55  ;;  %v2777_v55 = vmul.f32 -1.442695, %v4391_v11  ;;  %v2781_v22 = vmul.f32 -1.442695, %v4416_v4  ;;  %v4472_v57 = vadd.f32 %v595_v5, %v4025_v29 }
 0x123   :  { %5893 = vst [vmem:[#allocation76_spill] sm:$0xff] %v4399_v33  ;;  %v4405_v2 = vpop.eup %3049  ;;  %3075 = vrcp.f32 %v1563_v58  ;;  %v2779_v58 = vmul.f32 -1.442695, %v4397_v1  ;;  %v2783_v53 = vmul.f32 -1.442695, %v4424_v0  ;;  %v4456_v38 = vpop.f32.mrf.mxu1  ;;  %v4478_v6 = vadd.f32 %v900_v25, %v4025_v29 }
 0x124   :  { %5894 = vst [vmem:[#allocation77_spill] sm:$0xff] %v4405_v2  ;;  %v4412_v40 = vpop.eup %3051  ;;  %3077 = vrcp.f32 %v1565_v46  ;;  %v4428_v2 = vpop.permute.xlu1 %235  ;;  %v2780_v46 = vmul.f32 -1.442695, %v4403_v52  ;;  %v2784_v42 = vmul.f32 -1.442695, %v4432_v63 }
 0x125   :  { %v4418_v41 = vpop.eup %3053  ;;  %3079 = vrcp.f32 %v1564_v9  ;;  %5896 = vst [vmem:[#allocation79_spill] sm:$0xff] %v4428_v2  ;;  %v2782_v9 = vmul.f32 -1.442695, %v4410_v44  ;;  %v2789_v25 = vmul.f32 -1.442695, %v4472_v57 }
 0x126   :  { %v4426_v14 = vpop.eup %3055  ;;  %3081 = vrcp.f32 %v1566_v39  ;;  %v4442_v39 = vadd.f32 %v589_v16, %v4031_v31  ;;  %v4464_v31 = vadd.f32 %v898_v15, %v4025_v29 }
 0x127   :  { %v4434_v33 = vpop.eup %3057  ;;  %3083 = vpow2.f32 %v2776_v12  ;;  %v4450_v12 = vpop.f32.mrf.mxu0 }
 0x128   :  { %v3060_v26 = vpop.eup %3059  ;;  %3085 = vpow2.f32 %v2777_v55  ;;  %v4454_v55 = vadd.f32 %v593_v37, %v4025_v29  ;;  %v2785_v37 = vmul.f32 -1.442695, %v4442_v39 }
 0x129   :  { %v4444_v2 = vpop.eup %3061  ;;  %3087 = vpow2.f32 %v2779_v58  ;;  %v2786_v58 = vmul.f32 -1.442695, %v4438_v27  ;;  %v4480_v15 = vpop.f32.mrf.mxu0  ;;  %v1571_v21 = vadd.f32 1.0, %v3060_v26 }
 0x12a   :  { %v3064_v17 = vpop.eup %3063  ;;  %3089 = vpow2.f32 %v2780_v46  ;;  %v4468_v46 = vpop.permute.xlu1 %225  ;;  %v2788_v5 = vmul.f32 -1.442695, %v4454_v55 }
 0x12b   :  { %v4458_v16 = vpop.eup %3065  ;;  %3091 = vpow2.f32 %v2782_v9  ;;  %5899 = vst [vmem:[#allocation82_spill] sm:$0xff] %v4468_v46  ;;  %v2787_v9 = vmul.f32 -1.442695, %v4448_v20  ;;  %v4489_v46 = vpop.f32.mrf.mxu1  ;;  %v1572_v34 = vadd.f32 1.0, %v3064_v17 }
 0x12c   :  { %v4466_v7 = vpop.eup %3067  ;;  %3093 = vpow2.f32 %v2781_v22  ;;  %v4486_v22 = vadd.f32 %v4299_v18, %v4027_v30  ;;  %v2791_v30 = vmul.f32 -1.442695, %v4478_v6  ;;  %v4502_v18 = vpop.f32.mrf.mxu0 }
 0x12d   :  { %5898 = vst [vmem:[#allocation81_spill] sm:$0xff] %v4466_v7  ;;  %v4474_v51 = vpop.eup %3069  ;;  %3095 = vpow2.f32 %v2783_v53  ;;  %v2790_v53 = vmul.f32 -1.442695, %v4464_v31 }
 0x12e   :  { %5900 = vst [vmem:[#allocation83_spill] sm:$0xff] %v4474_v51  ;;  %v4482_v50 = vpop.eup %3071  ;;  %3097 = vpow2.f32 %v2784_v42 }
 0x12f   :  { %5901 = vst [vmem:[#allocation84_spill] sm:$0xff] %v4482_v50  ;;  %v4491_v51 = vpop.eup %3073  ;;  %3099 = vpow2.f32 %v2786_v58  ;;  %v4499_v50 = vpop.permute.xlu0 %230  ;;  %v2778_v58 = vmul.f32 -1.442695, %v4486_v22 }
 0x130   :  { %5902 = vst [vmem:[#allocation85_spill] sm:$0xff] %v4491_v51  ;;  %v4494_v29 = vpop.eup %3075  ;;  %3101 = vpow2.f32 %v2785_v37  ;;  %5905 = vst [vmem:[#allocation88_spill] sm:$0xff] %v4499_v50  ;;  %v4506_v51 = vpop.permute.xlu1 %215 }
 0x131   :  { %5903 = vst [vmem:[#allocation86_spill] sm:$0xff] %v4494_v29  ;;  %v4497_v7 = vpop.eup %3077  ;;  %3103 = vpow2.f32 %v2787_v9  ;;  %5907 = vst [vmem:[#allocation90_spill] sm:$0xff] %v4506_v51  ;;  %v4509_v29 = vpop.f32.mrf.mxu1  ;;  %v1568_v9 = vadd.f32 1.0, %v4426_v14 }
 0x132   :  { %5904 = vst [vmem:[#allocation87_spill] sm:$0xff] %v4497_v7  ;;  %v4504_v42 = vpop.eup %3079  ;;  %3105 = vpow2.f32 %v2788_v5  ;;  %v1567_v7 = vadd.f32 1.0, %v4412_v40 }
 0x133   :  { %5906 = vst [vmem:[#allocation89_spill] sm:$0xff] %v4504_v42  ;;  %v4511_v37 = vpop.eup %3081  ;;  %3107 = vpow2.f32 %v2790_v53  ;;  %v4515_v42 = vpop.f32.mrf.mxu0 }
 0x134   :  { %5908 = vst [vmem:[#allocation91_spill] sm:$0xff] %v4511_v37  ;;  %v3084_v50 = vpop.eup %3083  ;;  %3109 = vpow2.f32 %v2789_v25  ;;  %v4517_v5 = vpop.f32.mrf.mxu1 }
 0x135   :  { %v3086_v60 = vpop.eup %3085  ;;  %3111 = vpow2.f32 %v2791_v30  ;;  %v4519_v35 = vpop.permute.xlu0 %220  ;;  %v1575_v40 = vadd.f32 1.0, %v3084_v50 }
 0x136   :  { %v3088_v51 = vpop.eup %3087  ;;  %3113 = vpow2.f32 %v2778_v58  ;;  %5909 = vst [vmem:[#allocation92_spill] sm:$0xff] %v4519_v35  ;;  %v4521_v37 = vpop.permute.xlu1 %205  ;;  %v1576_v14 = vadd.f32 1.0, %v3086_v60 }
 0x137   :  { %v3090_v56 = vpop.eup %3089  ;;  %3115 = vrcp.f32 %v1567_v7  ;;  %5910 = vst [vmem:[#allocation93_spill] sm:$0xff] %v4521_v37  ;;  %v4523_v30 = vpop.f32.mrf.mxu0 }
 0x138   :  { %v3092_v53 = vpop.eup %3091  ;;  %3117 = vrcp.f32 %v1568_v9  ;;  %v1579_v26 = vadd.f32 1.0, %v3090_v56  ;;  %v4525_v58 = vpop.f32.mrf.mxu1 }
 0x139   :  { %v3094_v25 = vpop.eup %3093  ;;  %3119 = vrcp.f32 %v1571_v21  ;;  %v4527_v59 = vpop.permute.xlu0 %210 }
 0x13a   :  { %v3096_v62 = vpop.eup %3095  ;;  %3121 = vrcp.f32 %v1572_v34  ;;  %v1580_v17 = vadd.f32 1.0, %v3094_v25  ;;  %5911 = vst [vmem:[#allocation94_spill] sm:$0xff] %v4527_v59  ;;  %v4529_v60 = vpop.f32.mrf.mxu0 }
 0x13b   :  { %v3098_v32 = vpop.eup %3097  ;;  %3123 = vrcp.f32 %v1575_v40  ;;  %v4531_v56 = vpop.permute.xlu1 %195 }
 0x13c   :  { %v3100_v35 = vpop.eup %3099  ;;  %3125 = vrcp.f32 %v1576_v14  ;;  %v1583_v50 = vadd.f32 1.0, %v3098_v32  ;;  %v4533_v34 = vpop.f32.mrf.mxu1 }
 0x13d   :  { %v3102_v7 = vpop.eup %3101  ;;  %3127 = vrcp.f32 %v1579_v26  ;;  %v4535_v59 = vpop.f32.mrf.mxu0  ;;  %v1585_v54 = vadd.f32 1.0, %v3100_v35 }
 0x13e   :  { %v3104_v21 = vpop.eup %3103  ;;  %3129 = vrcp.f32 %v1580_v17  ;;  %v1584_v9 = vadd.f32 1.0, %v3102_v7  ;;  %v4537_v45 = vpop.f32.mrf.mxu1  ;;  %v1582_v7 = vadd.f32 1.0, %v3096_v62 }
 0x13f   :  { %v3106_v25 = vpop.eup %3105  ;;  %3131 = vrcp.f32 %v1583_v50  ;;  %v1586_v37 = vadd.f32 1.0, %v3104_v21  ;;  %v4541_v21 = vpop.permute.xlu0 %200 }
 0x140   :  { %v3108_v40 = vpop.eup %3107  ;;  %3133 = vrcp.f32 %v1584_v9  ;;  %v1587_v14 = vadd.f32 1.0, %v3106_v25  ;;  %v186_v9 = vpop.permute.xlu1 %185  ;;  %v1581_v25 = vadd.f32 1.0, %v3092_v53 }
 0x141   :  { %v3110_v32 = vpop.eup %3109  ;;  %3135 = vrcp.f32 %v1586_v37  ;;  %v1589_v43 = vadd.f32 1.0, %v3108_v40  ;;  %v1578_v40 = vadd.f32 1.0, %v3088_v51  ;;  %v4545_v35 = vpop.f32.mrf.mxu0  ;;  %v4555_v53 = vadd.f32 %v4450_v12, %v186_v9 }
 0x142   :  { %v3112_v26 = vpop.eup %3111  ;;  %3137 = vrcp.f32 %v1587_v14  ;;  %v1588_v24 = vadd.f32 1.0, %v3110_v32  ;;  %v4549_v62 = vpop.f32.mrf.mxu1  ;;  %v1573_v51 = vadd.f32 1.0, %v4444_v2  ;;  %v4575_v2 = vadd.f32 %v4489_v46, %v186_v9 }
 0x143   :  { %v3114_v17 = vpop.eup %3113  ;;  %3139 = vrcp.f32 %v1589_v43  ;;  %v1590_v13 = vadd.f32 1.0, %v3112_v26  ;;  %v1574_v26 = vadd.f32 1.0, %v4458_v16  ;;  %5915 = vst [vmem:[#allocation98_spill] sm:$0xff] %v4555_v53  ;;  %v4569_v16 = vpop.f32.mrf.mxu0 }
 0x144   :  { %v4539_v50 = vpop.eup %3115  ;;  %3141 = vrcp.f32 %v1588_v24  ;;  %v1577_v32 = vadd.f32 1.0, %v3114_v17  ;;  %5918 = vst [vmem:[#allocation101_spill] sm:$0xff] %v4569_v16  ;;  %5919 = vst [vmem:[#allocation102_spill] sm:$0xff] %v4575_v2 }
 0x145   :  { %5912 = vst [vmem:[#allocation95_spill] sm:$0xff] %v4539_v50  ;;  %v4543_v37 = vpop.eup %3117  ;;  %3143 = vrcp.f32 %v1590_v13  ;;  %v4561_v13 = vadd.f32 %v4456_v38, %v186_v9  ;;  %v4567_v50 = vadd.f32 %v4480_v15, %v186_v9  ;;  %v4577_v38 = vpop.f32.mrf.mxu1 }
 0x146   :  { %5913 = vst [vmem:[#allocation96_spill] sm:$0xff] %v4543_v37  ;;  %v4547_v14 = vpop.eup %3119  ;;  %3145 = vrcp.f32 %v1585_v54  ;;  %v1570_v54 = vadd.f32 1.0, %v4434_v33  ;;  %v1569_v37 = vadd.f32 1.0, %v4418_v41  ;;  %v2792_v33 = vmul.f32 -1.442695, %v4555_v53 }
 0x147   :  { %5914 = vst [vmem:[#allocation97_spill] sm:$0xff] %v4547_v14  ;;  %v4551_v43 = vpop.eup %3121  ;;  %3147 = vrcp.f32 %v1582_v7  ;;  %5916 = vst [vmem:[#allocation99_spill] sm:$0xff] %v4561_v13  ;;  %v191_v7 = vpop.permute.xlu0 %190  ;;  %v2794_v16 = vmul.f32 -1.442695, %v4561_v13  ;;  %v2793_v46 = vmul.f32 -1.442695, %v4567_v50 }
 0x148   :  { %v4557_v24 = vpop.eup %3123  ;;  %3149 = vrcp.f32 %v1581_v25  ;;  %5917 = vst [vmem:[#allocation100_spill] sm:$0xff] %v4567_v50  ;;  %v4581_v15 = vadd.f32 %v4502_v18, %v191_v7  ;;  %v4585_v14 = vadd.f32 %v4509_v29, %v191_v7  ;;  %v4589_v9 = vadd.f32 %v4515_v42, %v191_v7  ;;  %v4601_v13 = vpop.f32.mrf.mxu1 }
 0x149   :  { %v4563_v17 = vpop.eup %3125  ;;  %3151 = vrcp.f32 %v1578_v40  ;;  %v4595_v18 = vmul.f32 %v4198_v36, %v4066_v61  ;;  %v4599_v29 = vadd.f32 %v4517_v5, %v191_v7  ;;  %v4605_v42 = vmul.f32 %v4209_v47, %v4072_v3 }
 0x14a   :  { %v4571_v12 = vpop.eup %3127  ;;  %3153 = vrcp.f32 %v1577_v32  ;;  %5920 = vst [vmem:[#allocation103_spill] sm:$0xff] %v4581_v15  ;;  %5921 = vst [vmem:[#allocation104_spill] sm:$0xff] %v4585_v14  ;;  %v4591_v32 = vpop.f32.mrf.mxu0  ;;  %v2796_v53 = vmul.f32 -1.442695, %v4581_v15  ;;  %v4610_v61 = vadd.f32 %v4523_v30, %v4531_v56  ;;  %v2798_v5 = vmul.f32 -1.442695, %v4585_v14 }
 0x14b   :  { %v3130_v25 = vpop.eup %3129  ;;  %3155 = vrcp.f32 %v1574_v26  ;;  %5922 = vst [vmem:[#allocation105_spill] sm:$0xff] %v4589_v9  ;;  %5923 = vst [vmem:[#allocation106_spill] sm:$0xff] %v4599_v29  ;;  %v4619_v7 = vadd.f32 %v4525_v58, %v4531_v56  ;;  %v4623_v47 = vmul.f32 %v4253_v48, %v4088_v23  ;;  %v2797_v30 = vmul.f32 -1.442695, %v4589_v9  ;;  %v4638_v23 = vpop.f32.mrf.mxu1 }
 0x14c   :  { %v3132_v40 = vpop.eup %3131  ;;  %3157 = vrcp.f32 %v1573_v51  ;;  %v2795_v51 = vmul.f32 -1.442695, %v4575_v2  ;;  %5924 = vst [vmem:[#allocation107_spill] sm:$0xff] %v4610_v61  ;;  %v2799_v58 = vmul.f32 -1.442695, %v4599_v29  ;;  %v4636_v2 = vadd.f32 %v4533_v34, %v4531_v56 }
 0x14d   :  { %v3134_v41 = vpop.eup %3133  ;;  %3159 = vrcp.f32 %v1570_v54  ;;  %5925 = vst [vmem:[#allocation108_spill] sm:$0xff] %v4619_v7  ;;  %v2800_v14 = vmul.f32 -1.442695, %v4610_v61  ;;  %v2063_v34 = vmul.f32 %v3132_v40, %v4432_v63  ;;  %v2059_v63 = vmul.f32 %v4571_v12, %v4403_v52  ;;  %v5933_v12 = vld [vmem:[#allocation64_spill] sm:$0xff] }
 0x14e   :  { %v3136_v26 = vpop.eup %3135  ;;  %3161 = vrcp.f32 %v1569_v37  ;;  %v4614_v37 = vmul.f32 %v4223_v19, %v4078_v10  ;;  %v4630_v10 = vpop.f32.mrf.mxu0  ;;  %5927 = vst [vmem:[#allocation110_spill] sm:$0xff] %v4636_v2 }
 0x14f   :  { %v3138_v54 = vpop.eup %3137  ;;  %3163 = vpow2.f32 %v2792_v33  ;;  %v4628_v33 = vadd.f32 %v4529_v60, %v4531_v56  ;;  %v2066_v29 = vmul.f32 %v3136_v26, %v4448_v20  ;;  %v4661_v26 = vadd.f32 %v4535_v59, %v4541_v21 }
 0x150   :  { %v3140_v36 = vpop.eup %3139  ;;  %3165 = vpow2.f32 %v2794_v16  ;;  %v2055_v59 = vmul.f32 %v4557_v24, %v4383_v8  ;;  %v4684_v8 = vadd.f32 %v4549_v62, %v4541_v21  ;;  %v5932_v24 = vld [vmem:[#allocation45_spill] sm:$0xff]  ;;  %v5936_v62 = vld [vmem:[#allocation16_spill] sm:$0xff] }
 0x151   :  { %v3142_v3 = vpop.eup %3141  ;;  %3167 = vpow2.f32 %v2793_v46  ;;  %5926 = vst [vmem:[#allocation109_spill] sm:$0xff] %v4628_v33  ;;  %v2067_v46 = vmul.f32 %v3138_v54, %v4454_v55  ;;  %v4649_v55 = vpop.f32.mrf.mxu0  ;;  %5928 = vst [vmem:[#allocation111_spill] sm:$0xff] %v4661_v26 }
 0x152   :  { %v3144_v19 = vpop.eup %3143  ;;  %v2068_v16 = vmul.f32 %v3142_v3, %v4472_v57  ;;  %3169 = vpow2.f32 %v2795_v51  ;;  %v2064_v57 = vmul.f32 %v3134_v41, %v4442_v39  ;;  %v2069_v51 = vmul.f32 %v3140_v36, %v4464_v31  ;;  %v4654_v54 = vpop.f32.mrf.mxu1  ;;  %5931 = vst [vmem:[#allocation114_spill] sm:$0xff] %v4684_v8 }
 0x153   :  { %v3146_v48 = vpop.eup %3145  ;;  %v2070_v60 = vmul.f32 %v3144_v19, %v4478_v6  ;;  %3171 = vpow2.f32 %v2796_v53  ;;  %v2802_v3 = vmul.f32 -1.442695, %v4619_v7  ;;  %v2801_v6 = vmul.f32 -1.442695, %v4628_v33 }
 0x154   :  { %v3148_v50 = vpop.eup %3147  ;;  %3173 = vpow2.f32 %v2798_v5  ;;  %2228 = vmatprep.subr.mxu1 %v2068_v16  ;;  %v2060_v39 = vmul.f32 %v3130_v25, %v4416_v4  ;;  %v2065_v31 = vmul.f32 %v3146_v48, %v4438_v27  ;;  %v2803_v41 = vmul.f32 -1.442695, %v4636_v2  ;;  %v5938_v16 = vld [vmem:[#allocation60_spill] sm:$0xff] }
 0x155   :  { %v3150_v56 = vpop.eup %3149  ;;  %3175 = vpow2.f32 %v2797_v30  ;;  %2418 = vmatprep.subr.mxu0 %v2070_v60  ;;  %2229 = vmatpush1.msra.mxu1 %v2067_v46  ;;  %v2062_v40 = vmul.f32 %v3148_v50, %v4424_v0  ;;  %v2056_v27 = vmul.f32 %v4563_v17, %v4391_v11  ;;  %v4668_v36 = vadd.f32 %v4537_v45, %v4541_v21  ;;  %v4677_v11 = vpop.f32.mrf.mxu0  ;;  %v5937_v30 = vld [vmem:[#allocation52_spill] sm:$0xff]  ;;  %v5940_v46 = vld [vmem:[#allocation66_spill] sm:$0xff] }
 0x156   :  { %v3152_v53 = vpop.eup %3151  ;;  %3177 = vpow2.f32 %v2799_v58  ;;  %2419 = vmatpush1.msra.mxu0 %v2069_v51  ;;  %2230 = vmatprep.subr.mxu1 %v2064_v57  ;;  %v2061_v25 = vmul.f32 %v3150_v56, %v4410_v44  ;;  %v4675_v50 = vadd.f32 %v4545_v35, %v4541_v21  ;;  %v2052_v45 = vmul.f32 %v4551_v43, %v4362_v49  ;;  %v5935_v49 = vld [vmem:[#allocation69_spill] sm:$0xff]  ;;  %v5939_v58 = vld [vmem:[#allocation96_spill] sm:$0xff]  ;;  %v5941_v51 = vld [vmem:[#allocation18_spill] sm:$0xff] }
 0x157   :  { %v3154_v20 = vpop.eup %3153  ;;  %3179 = vpow2.f32 %v2800_v14  ;;  %2420 = vmatprep.subr.mxu0 %v2066_v29  ;;  %2231 = vmatpush1.msra.mxu1 %v2063_v34  ;;  %5929 = vst [vmem:[#allocation112_spill] sm:$0xff] %v4668_v36  ;;  %v2058_v52 = vmul.f32 %v3152_v53, %v4397_v1  ;;  %v4686_v1 = vpop.f32.mrf.mxu1  ;;  %v4690_v17 = vmul.f32 %v5932_v24, %v4094_v28  ;;  %v5934_v29 = vld [vmem:[#allocation97_spill] sm:$0xff]  ;;  %v2806_v60 = vmul.f32 -1.442695, %v4668_v36  ;;  %v5943_v34 = vld [vmem:[#allocation56_spill] sm:$0xff] }
 0x158   :  { %v3156_v4 = vpop.eup %3155  ;;  %3181 = vpow2.f32 %v2802_v3  ;;  %2421 = vmatpush1.msra.mxu0 %v2065_v31  ;;  %2232 = vmatprep.subr.mxu1 %v2060_v39  ;;  %5930 = vst [vmem:[#allocation113_spill] sm:$0xff] %v4675_v50  ;;  %v2057_v14 = vmul.f32 %v3154_v20, %v4486_v22  ;;  %v2051_v5 = vmul.f32 %v5934_v29, %v5933_v12  ;;  %v2804_v22 = vmul.f32 -1.442695, %v4661_v26  ;;  %v5942_v3 = vld [vmem:[#allocation54_spill] sm:$0xff]  ;;  %v4712_v20 = vpop.f32.mrf.mxu0  ;;  %v5951_v12 = vld [vmem:[#allocation48_spill] sm:$0xff] }
 0x159   :  { %v3158_v0 = vpop.eup %3157  ;;  %3183 = vpow2.f32 %v2801_v6  ;;  %2422 = vmatprep.subr.mxu0 %v2062_v40  ;;  %2233 = vmatpush1.msra.mxu1 %v2059_v63  ;;  %v2054_v43 = vmul.f32 %v3156_v4, %v5935_v49  ;;  %v4698_v19 = vmul.f32 %v5937_v30, %v5936_v62  ;;  %v2048_v48 = vmul.f32 %v5939_v58, %v5938_v16  ;;  %v5944_v6 = vld [vmem:[#allocation95_spill] sm:$0xff]  ;;  %v5945_v39 = vld [vmem:[#allocation62_spill] sm:$0xff]  ;;  %v5946_v40 = vld [vmem:[#allocation20_spill] sm:$0xff]  ;;  %v4722_v24 = vpop.f32.mrf.mxu1 }
 0x15a   :  { %v3160_v44 = vpop.eup %3159  ;;  %3185 = vpow2.f32 %v2803_v41  ;;  %2423 = vmatpush1.msra.mxu0 %v2061_v25  ;;  %2234 = vmatprep.subr.mxu1 %v2056_v27  ;;  %v2053_v28 = vmul.f32 %v3158_v0, %v5940_v46  ;;  %v4706_v56 = vmul.f32 %v5942_v3, %v5941_v51  ;;  %v2047_v53 = vmul.f32 %v5944_v6, %v5943_v34  ;;  %v5947_v4 = vld [vmem:[#allocation57_spill] sm:$0xff]  ;;  %v5948_v25 = vld [vmem:[#allocation50_spill] sm:$0xff]  ;;  %v5953_v49 = vld [vmem:[#allocation51_spill] sm:$0xff] }
 0x15b   :  { %v3162_v35 = vpop.eup %3161  ;;  %2424 = vmatprep.subr.mxu0 %v2058_v52  ;;  %2235 = vmatpush1.msra.mxu1 %v2055_v59  ;;  %v2050_v31 = vmul.f32 %v3160_v44, %v5945_v39  ;;  %v2805_v41 = vmul.f32 -1.442695, %v4675_v50  ;;  %v4716_v27 = vmul.f32 %v5947_v4, %v5946_v40  ;;  %v5949_v0 = vld [vmem:[#allocation89_spill] sm:$0xff]  ;;  %v5950_v52 = vld [vmem:[#allocation58_spill] sm:$0xff]  ;;  %3187 = vpow2.f32 %v2804_v22  ;;  %v5955_v58 = vld [vmem:[#allocation44_spill] sm:$0xff] }
 0x15c   :  { %v3164_v21 = vpop.eup %3163  ;;  %2425 = vmatpush1.msra.mxu0 %v2057_v14  ;;  %2236 = vmatprep.subr.mxu1 %v2052_v45  ;;  %v2044_v59 = vmul.f32 %v5949_v0, %v5948_v25  ;;  %v2049_v45 = vmul.f32 %v3162_v35, %v5950_v52  ;;  %v2807_v14 = vmul.f32 -1.442695, %v4684_v8  ;;  %v5952_v29 = vld [vmem:[#allocation86_spill] sm:$0xff]  ;;  %v5956_v35 = vld [vmem:[#allocation84_spill] sm:$0xff]  ;;  %v5957_v51 = vld [vmem:[#allocation49_spill] sm:$0xff]  ;;  %3189 = vpow2.f32 %v2806_v60 }
 0x15d   :  { %v3166_v57 = vpop.eup %3165  ;;  %2426 = vmatprep.subr.mxu0 %v2054_v43  ;;  %2237 = vmatpush1.msra.mxu1 %v2051_v5  ;;  %v2043_v5 = vmul.f32 %v5952_v29, %v5951_v12  ;;  %v5954_v43 = vld [vmem:[#allocation91_spill] sm:$0xff]  ;;  %v1591_v30 = vadd.f32 1.0, %v3164_v21  ;;  %v2040_v46 = vmul.f32 %v5956_v35, %v5955_v58  ;;  %v5959_v6 = vld [vmem:[#allocation41_spill] sm:$0xff]  ;;  %v5961_v4 = vld [vmem:[#allocation46_spill] sm:$0xff]  ;;  %3191 = vpow2.f32 %v2805_v41  ;;  %v4742_v29 = vpop.f32.mrf.mxu1 }
 0x15e   :  { %v3168_v63 = vpop.eup %3167  ;;  %2427 = vmatpush1.msra.mxu0 %v2053_v28  ;;  %2238 = vmatprep.subr.mxu1 %v2048_v48  ;;  %v2046_v62 = vmul.f32 %v5954_v43, %v5953_v49  ;;  %v5958_v3 = vld [vmem:[#allocation87_spill] sm:$0xff]  ;;  %v1593_v28 = vadd.f32 1.0, %v3166_v57  ;;  %v5960_v39 = vld [vmem:[#allocation81_spill] sm:$0xff]  ;;  %v5963_v0 = vld [vmem:[#allocation38_spill] sm:$0xff]  ;;  %3193 = vpow2.f32 %v2807_v14 }
 0x15f   :  { %v3170_v44 = vpop.eup %3169  ;;  %2428 = vmatprep.subr.mxu0 %v2050_v31  ;;  %2239 = vmatpush1.msra.mxu1 %v2047_v53  ;;  %v2045_v34 = vmul.f32 %v5958_v3, %v5957_v51  ;;  %v2039_v40 = vmul.f32 %v5960_v39, %v5959_v6  ;;  %v5962_v21 = vld [vmem:[#allocation85_spill] sm:$0xff]  ;;  %v1592_v31 = vadd.f32 1.0, %v3168_v63  ;;  %v4736_v53 = vpop.f32.mrf.mxu0  ;;  %v5964_v52 = vld [vmem:[#allocation76_spill] sm:$0xff]  ;;  %v5965_v60 = vld [vmem:[#allocation42_spill] sm:$0xff]  ;;  %3195 = vrcp.f32 %v1591_v30 }
 0x160   :  { %v3172_v16 = vpop.eup %3171  ;;  %2429 = vmatpush1.msra.mxu0 %v2049_v45  ;;  %2240 = vmatprep.subr.mxu1 %v2044_v59  ;;  %v2042_v22 = vmul.f32 %v5962_v21, %v5961_v4  ;;  %v2036_v57 = vmul.f32 %v5964_v52, %v5963_v0  ;;  %v5966_v45 = vld [vmem:[#allocation83_spill] sm:$0xff]  ;;  %v1594_v12 = vadd.f32 1.0, %v3170_v44  ;;  %v5968_v41 = vld [vmem:[#allocation73_spill] sm:$0xff]  ;;  %v5971_v3 = vld [vmem:[#allocation28_spill] sm:$0xff]  ;;  %3197 = vrcp.f32 %v1593_v28 }
 0x161   :  { %v3174_v48 = vpop.eup %3173  ;;  %2430 = vmatprep.subr.mxu0 %v2046_v62  ;;  %2241 = vmatpush1.msra.mxu1 %v2043_v5  ;;  %v2041_v59 = vmul.f32 %v5966_v45, %v5965_v60  ;;  %v5967_v63 = vld [vmem:[#allocation35_spill] sm:$0xff]  ;;  %v5970_v62 = vld [vmem:[#allocation77_spill] sm:$0xff]  ;;  %v1595_v35 = vadd.f32 1.0, %v3172_v16  ;;  %v5972_v6 = vld [vmem:[#allocation68_spill] sm:$0xff]  ;;  %3199 = vrcp.f32 %v1592_v31 }
 0x162   :  { %v3176_v25 = vpop.eup %3175  ;;  %2431 = vmatpush1.msra.mxu0 %v2045_v34  ;;  %2242 = vmatprep.subr.mxu1 %v2040_v46  ;;  %v2035_v43 = vmul.f32 %v5968_v41, %v5967_v63  ;;  %v5969_v58 = vld [vmem:[#allocation39_spill] sm:$0xff]  ;;  %v2032_v44 = vmul.f32 %v5972_v6, %v5971_v3  ;;  %v5973_v14 = vld [vmem:[#allocation36_spill] sm:$0xff]  ;;  %v1597_v46 = vadd.f32 1.0, %v3174_v48  ;;  %v5976_v0 = vld [vmem:[#allocation65_spill] sm:$0xff]  ;;  %3201 = vrcp.f32 %v1594_v12 }
 0x163   :  { %v3178_v49 = vpop.eup %3177  ;;  %v2038_v5 = vmul.f32 %v5970_v62, %v5969_v58  ;;  %2432 = vmatprep.subr.mxu0 %v2042_v22  ;;  %2243 = vmatpush1.msra.mxu1 %v2039_v40  ;;  %v5974_v39 = vld [vmem:[#allocation75_spill] sm:$0xff]  ;;  %v5975_v21 = vld [vmem:[#allocation24_spill] sm:$0xff]  ;;  %v5977_v60 = vld [vmem:[#allocation30_spill] sm:$0xff]  ;;  %v1596_v40 = vadd.f32 1.0, %v3176_v25  ;;  %v4756_v22 = vpop.f32.mrf.mxu0  ;;  %3203 = vrcp.f32 %v1595_v35 }
 0x164   :  { %v3180_v51 = vpop.eup %3179  ;;  %v2037_v4 = vmul.f32 %v5974_v39, %v5973_v14  ;;  %2433 = vmatpush1.msra.mxu0 %v2041_v59  ;;  %2244 = vmatprep.subr.mxu1 %v2036_v57  ;;  %v2031_v52 = vmul.f32 %v5976_v0, %v5975_v21  ;;  %v5978_v30 = vld [vmem:[#allocation70_spill] sm:$0xff]  ;;  %v5980_v41 = vld [vmem:[#allocation61_spill] sm:$0xff]  ;;  %v5982_v59 = vld [vmem:[#allocation67_spill] sm:$0xff]  ;;  %v1598_v58 = vadd.f32 1.0, %v3178_v49  ;;  %v4762_v62 = vpop.f32.mrf.mxu1  ;;  %3205 = vrcp.f32 %v1597_v46 }
 0x165   :  { %v3182_v34 = vpop.eup %3181  ;;  %v2034_v16 = vmul.f32 %v5978_v30, %v5977_v60  ;;  %2434 = vmatprep.subr.mxu0 %v2038_v5  ;;  %2245 = vmatpush1.msra.mxu1 %v2035_v43  ;;  %v5979_v63 = vld [vmem:[#allocation22_spill] sm:$0xff]  ;;  %v5983_v31 = vld [vmem:[#allocation23_spill] sm:$0xff]  ;;  %v1599_v5 = vadd.f32 1.0, %v3180_v51  ;;  %v5985_v43 = vld [vmem:[#allocation93_spill] sm:$0xff]  ;;  %3207 = vrcp.f32 %v1596_v40 }
 0x166   :  { %v3184_v45 = vpop.eup %3183  ;;  %v2028_v28 = vmul.f32 %v5980_v41, %v5979_v63  ;;  %v5981_v48 = vld [vmem:[#allocation26_spill] sm:$0xff]  ;;  %2435 = vmatpush1.msra.mxu0 %v2037_v4  ;;  %2246 = vmatprep.subr.mxu1 %v2032_v44  ;;  %v5984_v25 = vld [vmem:[#allocation63_spill] sm:$0xff]  ;;  %v5986_v14 = vld [vmem:[#allocation101_spill] sm:$0xff]  ;;  %v1601_v49 = vadd.f32 1.0, %v3182_v34  ;;  %v4774_v44 = vadd.f32 %v4577_v38, %v5985_v43  ;;  %v4780_v30 = vadd.f32 %v4591_v32, %v5985_v43  ;;  %v4791_v40 = vpop.f32.mrf.mxu1 }
 0x167   :  { %v2033_v57 = vmul.f32 %v5982_v59, %v5981_v48  ;;  %v3186_v3 = vpop.eup %3185  ;;  %v2030_v6 = vmul.f32 %v5984_v25, %v5983_v31  ;;  %v4768_v39 = vadd.f32 %v5986_v14, %v5985_v43  ;;  %2436 = vmatprep.subr.mxu0 %v2034_v16  ;;  %2247 = vmatpush1.msra.mxu1 %v2031_v52  ;;  %v5988_v21 = vld [vmem:[#allocation21_spill] sm:$0xff]  ;;  %v5989_v0 = vld [vmem:[#allocation59_spill] sm:$0xff]  ;;  %v1600_v60 = vadd.f32 1.0, %v3184_v45  ;;  %v4782_v52 = vpop.f32.mrf.mxu0  ;;  %v6001_v59 = vld [vmem:[#allocation14_spill] sm:$0xff] }
 0x168   :  { %v2029_v12 = vmul.f32 %v5989_v0, %v5988_v21  ;;  %5990 = vst [vmem:[#allocation64_spill] sm:$0xff] %v4774_v44  ;;  %2248 = vmatprep.subr.mxu1 %v2028_v28  ;;  %v5991_v4 = vld [vmem:[#allocation19_spill] sm:$0xff]  ;;  %5993 = vst [vmem:[#allocation97_spill] sm:$0xff] %v4780_v30  ;;  %v5994_v46 = vld [vmem:[#allocation17_spill] sm:$0xff]  ;;  %3209 = vrcp.f32 %v1598_v58  ;;  %v1602_v16 = vadd.f32 1.0, %v3186_v3  ;;  %v4789_v63 = vadd.f32 %v4601_v13, %v5985_v43  ;;  %v3188_v13 = vpop.eup %3187 }
 0x169   :  { %5987 = vst [vmem:[#allocation45_spill] sm:$0xff] %v4768_v39  ;;  %2437 = vmatpush1.msra.mxu0 %v2033_v57  ;;  %v5992_v35 = vld [vmem:[#allocation55_spill] sm:$0xff]  ;;  %2249 = vmatpush1.msra.mxu1 %v4716_v27  ;;  %v5995_v34 = vld [vmem:[#allocation53_spill] sm:$0xff]  ;;  %3211 = vrcp.f32 %v1599_v5  ;;  %v2808_v27 = vmul.f32 -1.442695, %v4768_v39  ;;  %v5999_v28 = vld [vmem:[#allocation94_spill] sm:$0xff]  ;;  %v3190_v31 = vpop.eup %3189  ;;  %v4817_v43 = vpop.f32.mrf.mxu0 }
 0x16a   :  { %v2026_v51 = vmul.f32 %v5992_v35, %v5991_v4  ;;  %2438 = vmatprep.subr.mxu0 %v2030_v6  ;;  %v2025_v38 = vmul.f32 %v5995_v34, %v5994_v46  ;;  %5996 = vst [vmem:[#allocation69_spill] sm:$0xff] %v4789_v63  ;;  %2250 = vmatprep.subr.mxu1 %v4706_v56  ;;  %v5997_v32 = vld [vmem:[#allocation15_spill] sm:$0xff]  ;;  %3213 = vrcp.f32 %v1601_v49  ;;  %v2810_v56 = vmul.f32 -1.442695, %v4774_v44  ;;  %v6005_v25 = vld [vmem:[#allocation40_spill] sm:$0xff]  ;;  %v6008_v21 = vld [vmem:[#allocation37_spill] sm:$0xff]  ;;  %v4827_v49 = vpop.f32.mrf.mxu1 }
 0x16b   :  { %2439 = vmatpush1.msra.mxu0 %v2029_v12  ;;  %v5998_v45 = vld [vmem:[#allocation47_spill] sm:$0xff]  ;;  %v4799_v48 = vadd.f32 %v4630_v10, %v5999_v28  ;;  %2251 = vmatpush1.msra.mxu1 %v4698_v19  ;;  %v4807_v3 = vadd.f32 %v4638_v23, %v5999_v28  ;;  %v6004_v10 = vld [vmem:[#allocation13_spill] sm:$0xff]  ;;  %3215 = vrcp.f32 %v1600_v60  ;;  %v2809_v19 = vmul.f32 -1.442695, %v4780_v30  ;;  %v3192_v23 = vpop.eup %3191  ;;  %v6007_v14 = vld [vmem:[#allocation12_spill] sm:$0xff] }
 0x16c   :  { %v2022_v41 = vmul.f32 %v5998_v45, %v5997_v32  ;;  %2440 = vmatprep.subr.mxu0 %v2026_v51  ;;  %v6002_v57 = vld [vmem:[#allocation43_spill] sm:$0xff]  ;;  %2252 = vmatprep.subr.mxu1 %v4690_v17  ;;  %v2018_v6 = vmul.f32 %v6005_v25, %v6004_v10  ;;  %v4815_v5 = vadd.f32 %v4649_v55, %v5999_v28  ;;  %3217 = vrcp.f32 %v1602_v16  ;;  %v3194_v55 = vpop.eup %3193  ;;  %v6010_v4 = vld [vmem:[#allocation9_spill] sm:$0xff]  ;;  %v6011_v35 = vld [vmem:[#allocation32_spill] sm:$0xff] }
 0x16d   :  { %6000 = vst [vmem:[#allocation16_spill] sm:$0xff] %v4799_v48  ;;  %v2021_v58 = vmul.f32 %v6002_v57, %v6001_v59  ;;  %6003 = vst [vmem:[#allocation52_spill] sm:$0xff] %v4807_v3  ;;  %2441 = vmatpush1.msra.mxu0 %v2025_v38  ;;  %2253 = vmatpush1.msra.mxu1 %v4623_v47  ;;  %v2017_v17 = vmul.f32 %v6008_v21, %v6007_v14  ;;  %v2811_v0 = vmul.f32 -1.442695, %v4789_v63  ;;  %v6012_v51 = vld [vmem:[#allocation11_spill] sm:$0xff]  ;;  %v6013_v60 = vld [vmem:[#allocation34_spill] sm:$0xff]  ;;  %v4851_v14 = vpop.f32.mrf.mxu0 }
 0x16e   :  { %6006 = vst [vmem:[#allocation60_spill] sm:$0xff] %v4815_v5  ;;  %2442 = vmatprep.subr.mxu0 %v2022_v41  ;;  %v4825_v12 = vadd.f32 %v4654_v54, %v5999_v28  ;;  %2254 = vmatprep.subr.mxu1 %v4614_v37  ;;  %v2011_v47 = vmul.f32 %v6011_v35, %v6010_v4  ;;  %3219 = vpow2.f32 %v2808_v27  ;;  %v2812_v34 = vmul.f32 -1.442695, %v4799_v48  ;;  %v4836_v54 = vpop.eup %3195  ;;  %v6015_v38 = vld [vmem:[#allocation7_spill] sm:$0xff]  ;;  %v6016_v16 = vld [vmem:[#allocation29_spill] sm:$0xff]  ;;  %v6017_v45 = vld [vmem:[#allocation10_spill] sm:$0xff]  ;;  %v4858_v35 = vpop.f32.mrf.mxu1 }
 0x16f   :  { %2443 = vmatpush1.msra.mxu0 %v2021_v58  ;;  %v2014_v46 = vmul.f32 %v6013_v60, %v6012_v51  ;;  %2255 = vmatpush1.msra.mxu1 %v4605_v42  ;;  %6014 = vst [vmem:[#allocation66_spill] sm:$0xff] %v4836_v54  ;;  %v2008_v32 = vmul.f32 %v6016_v16, %v6015_v38  ;;  %v6018_v37 = vld [vmem:[#allocation33_spill] sm:$0xff]  ;;  %3221 = vpow2.f32 %v2810_v56  ;;  %v2814_v28 = vmul.f32 -1.442695, %v4807_v3  ;;  %v4844_v27 = vpop.eup %3197  ;;  %v6022_v42 = vld [vmem:[#allocation8_spill] sm:$0xff]  ;;  %v6023_v10 = vld [vmem:[#allocation31_spill] sm:$0xff] }
 0x170   :  { %6009 = vst [vmem:[#allocation96_spill] sm:$0xff] %v4825_v12  ;;  %2444 = vmatprep.subr.mxu0 %v2018_v6  ;;  %v2013_v41 = vmul.f32 %v6018_v37, %v6017_v45  ;;  %2256 = vmatprep.subr.mxu1 %v4595_v18  ;;  %6019 = vst [vmem:[#allocation18_spill] sm:$0xff] %v4844_v27  ;;  %v6020_v59 = vld [vmem:[#allocation5_spill] sm:$0xff]  ;;  %v2010_v25 = vmul.f32 %v6023_v10, %v6022_v42  ;;  %3223 = vpow2.f32 %v2809_v19  ;;  %v4853_v56 = vpop.eup %3199  ;;  %v6025_v21 = vld [vmem:[#allocation6_spill] sm:$0xff] }
 0x171   :  { %2445 = vmatpush1.msra.mxu0 %v2017_v17  ;;  %v6021_v57 = vld [vmem:[#allocation25_spill] sm:$0xff]  ;;  %v2813_v6 = vmul.f32 -1.442695, %v4815_v5  ;;  %2257 = vmatpush1.msra.mxu1 %v2011_v47  ;;  %6024 = vst [vmem:[#allocation54_spill] sm:$0xff] %v4853_v56  ;;  %v6026_v17 = vld [vmem:[#allocation27_spill] sm:$0xff]  ;;  %3225 = vpow2.f32 %v2811_v0  ;;  %v4860_v51 = vpop.eup %3201  ;;  %v1603_v19 = vadd.f32 1.0, %v3188_v13 }
 0x172   :  { %v2007_v58 = vmul.f32 %v6021_v57, %v6020_v59  ;;  %2446 = vmatprep.subr.mxu0 %v2014_v46  ;;  %v2009_v18 = vmul.f32 %v6026_v17, %v6025_v21  ;;  %v2815_v4 = vmul.f32 -1.442695, %v4825_v12  ;;  %2258 = vmatprep.subr.mxu1 %v2008_v32  ;;  %6027 = vst [vmem:[#allocation56_spill] sm:$0xff] %v4860_v51  ;;  %3227 = vpow2.f32 %v2812_v34  ;;  %v6028_v60 = vld [vmem:[#allocation90_spill] sm:$0xff]  ;;  %v4866_v47 = vpop.eup %3203 }
 0x173   :  { %2447 = vmatpush1.msra.mxu0 %v2013_v41  ;;  %v4864_v46 = vadd.f32 %v4677_v11, %v6028_v60  ;;  %6030 = vst [vmem:[#allocation62_spill] sm:$0xff] %v4866_v47  ;;  %v1605_v38 = vadd.f32 1.0, %v3190_v31  ;;  %3229 = vpow2.f32 %v2814_v28  ;;  %v4870_v0 = vadd.f32 %v4686_v1, %v6028_v60  ;;  %v4872_v16 = vpop.eup %3205  ;;  %v4878_v11 = vpop.f32.mrf.mxu0  ;;  %v6037_v41 = vld [vmem:[#allocation92_spill] sm:$0xff]  ;;  %v6076_v48 = vld [vmem:[#allocation74_spill] sm:$0xff] }
 0x174   :  { %2448 = vmatprep.subr.mxu0 %v2010_v25  ;;  %2259 = vmatpush1.msra.mxu1 %v2007_v58  ;;  %6032 = vst [vmem:[#allocation57_spill] sm:$0xff] %v4872_v16  ;;  %v1604_v32 = vadd.f32 1.0, %v3192_v23  ;;  %3231 = vpow2.f32 %v2813_v6  ;;  %v4876_v13 = vadd.f32 %v4712_v20, %v6028_v60  ;;  %v4880_v34 = vpop.eup %3207  ;;  %v1606_v45 = vadd.f32 1.0, %v3194_v55  ;;  %v4886_v1 = vpop.f32.mrf.mxu1 }
 0x175   :  { %6029 = vst [vmem:[#allocation95_spill] sm:$0xff] %v4864_v46  ;;  %6031 = vst [vmem:[#allocation20_spill] sm:$0xff] %v4870_v0  ;;  %2449 = vmatpush1.msra.mxu0 %v2009_v18  ;;  %3233 = vpow2.f32 %v2815_v4  ;;  %v4884_v31 = vadd.f32 %v4722_v24, %v6028_v60  ;;  %v4888_v37 = vpop.eup %3209  ;;  %v2816_v23 = vmul.f32 -1.442695, %v4864_v46  ;;  %v4893_v20 = vadd.f32 %v4736_v53, %v6037_v41  ;;  %v4909_v53 = vpop.f32.mrf.mxu0 }
 0x176   :  { %6033 = vst [vmem:[#allocation50_spill] sm:$0xff] %v4876_v13  ;;  %6034 = vst [vmem:[#allocation89_spill] sm:$0xff] %v4880_v34  ;;  %3235 = vrcp.f32 %v1603_v19  ;;  %v4895_v28 = vpop.eup %3211  ;;  %v2818_v55 = vmul.f32 -1.442695, %v4870_v0  ;;  %v4900_v24 = vadd.f32 %v4742_v29, %v6037_v41  ;;  %v2817_v57 = vmul.f32 -1.442695, %v4876_v13  ;;  %v4918_v25 = vpop.f32.mrf.mxu1 }
 0x177   :  { %6035 = vst [vmem:[#allocation58_spill] sm:$0xff] %v4884_v31  ;;  %6036 = vst [vmem:[#allocation48_spill] sm:$0xff] %v4888_v37  ;;  %3237 = vrcp.f32 %v1605_v38  ;;  %v4902_v59 = vpop.eup %3213  ;;  %v4907_v58 = vadd.f32 %v4756_v22, %v6037_v41  ;;  %v2819_v10 = vmul.f32 -1.442695, %v4884_v31  ;;  %v4916_v29 = vadd.f32 %v4762_v62, %v6037_v41  ;;  %v4925_v19 = vpop.f32.mrf.mxu0  ;;  %v6046_v37 = vld [vmem:[#allocation82_spill] sm:$0xff] }
 0x178   :  { %6038 = vst [vmem:[#allocation86_spill] sm:$0xff] %v4893_v20  ;;  %6039 = vst [vmem:[#allocation51_spill] sm:$0xff] %v4895_v28  ;;  %3239 = vrcp.f32 %v1604_v32  ;;  %v4911_v42 = vpop.eup %3215  ;;  %v2820_v21 = vmul.f32 -1.442695, %v4893_v20  ;;  %v2822_v17 = vmul.f32 -1.442695, %v4900_v24  ;;  %v4928_v38 = vpop.f32.mrf.mxu1 }
 0x179   :  { %6040 = vst [vmem:[#allocation91_spill] sm:$0xff] %v4900_v24  ;;  %6041 = vst [vmem:[#allocation44_spill] sm:$0xff] %v4902_v59  ;;  %3241 = vrcp.f32 %v1606_v45  ;;  %v4920_v6 = vpop.eup %3217  ;;  %v2821_v4 = vmul.f32 -1.442695, %v4907_v58  ;;  %v2823_v62 = vmul.f32 -1.442695, %v4916_v29 }
 0x17a   :  { %6042 = vst [vmem:[#allocation84_spill] sm:$0xff] %v4907_v58  ;;  %6043 = vst [vmem:[#allocation49_spill] sm:$0xff] %v4911_v42  ;;  %3243 = vpow2.f32 %v2816_v23  ;;  %v4932_v16 = vpop.f32.mrf.mxu1 }
 0x17b   :  { %6044 = vst [vmem:[#allocation87_spill] sm:$0xff] %v4916_v29  ;;  %6045 = vst [vmem:[#allocation41_spill] sm:$0xff] %v4920_v6  ;;  %v3220_v22 = vpop.eup %3219  ;;  %3245 = vpow2.f32 %v2818_v55 }
 0x17c   :  { %v3222_v18 = vpop.eup %3221  ;;  %3247 = vpow2.f32 %v2817_v57  ;;  %v1607_v45 = vadd.f32 1.0, %v3220_v22  ;;  %v4930_v57 = vpop.f32.mrf.mxu0  ;;  %v4936_v22 = vadd.f32 %v4782_v52, %v6046_v37 }
 0x17d   :  { %v3224_v60 = vpop.eup %3223  ;;  %3249 = vpow2.f32 %v2819_v10  ;;  %v1609_v41 = vadd.f32 1.0, %v3222_v18  ;;  %v4942_v18 = vadd.f32 %v4791_v40, %v6046_v37  ;;  %v4958_v40 = vpop.f32.mrf.mxu1 }
 0x17e   :  { %v3226_v32 = vpop.eup %3225  ;;  %3251 = vpow2.f32 %v2820_v21  ;;  %v1608_v27 = vadd.f32 1.0, %v3224_v60  ;;  %6047 = vst [vmem:[#allocation81_spill] sm:$0xff] %v4936_v22 }
 0x17f   :  { %v3228_v23 = vpop.eup %3227  ;;  %3253 = vpow2.f32 %v2822_v17  ;;  %v1610_v54 = vadd.f32 1.0, %v3226_v32  ;;  %6049 = vst [vmem:[#allocation85_spill] sm:$0xff] %v4942_v18  ;;  %v4950_v32 = vpop.f32.mrf.mxu0 }
 0x180   :  { %v3230_v55 = vpop.eup %3229  ;;  %3255 = vpow2.f32 %v2821_v4  ;;  %v1611_v56 = vadd.f32 1.0, %v3228_v23  ;;  %v4956_v23 = vadd.f32 %v4827_v49, %v6046_v37 }
 0x181   :  { %v3232_v51 = vpop.eup %3231  ;;  %3257 = vpow2.f32 %v2823_v62  ;;  %v1613_v17 = vadd.f32 1.0, %v3230_v55  ;;  %v4948_v62 = vadd.f32 %v4817_v43, %v6046_v37  ;;  %v4979_v47 = vpop.f32.mrf.mxu0 }
 0x182   :  { %v3234_v10 = vpop.eup %3233  ;;  %3259 = vrcp.f32 %v1607_v45  ;;  %v1612_v60 = vadd.f32 1.0, %v3232_v51  ;;  %6053 = vst [vmem:[#allocation83_spill] sm:$0xff] %v4956_v23  ;;  %v6055_v51 = vld [vmem:[#allocation88_spill] sm:$0xff]  ;;  %v5067_v42 = vadd.f32 %v4979_v47, %v6076_v48 }
 0x183   :  { %v4938_v21 = vpop.eup %3235  ;;  %3261 = vrcp.f32 %v1609_v41  ;;  %6051 = vst [vmem:[#allocation76_spill] sm:$0xff] %v4948_v62  ;;  %v1614_v45 = vadd.f32 1.0, %v3234_v10  ;;  %v4965_v43 = vadd.f32 %v4851_v14, %v6055_v51  ;;  %v4970_v10 = vadd.f32 %v4858_v35, %v6055_v51  ;;  %v4986_v35 = vpop.f32.mrf.mxu1 }
 0x184   :  { %6048 = vst [vmem:[#allocation46_spill] sm:$0xff] %v4938_v21  ;;  %v4944_v4 = vpop.eup %3237  ;;  %3263 = vrcp.f32 %v1608_v27  ;;  %v2824_v27 = vmul.f32 -1.442695, %v4936_v22  ;;  %v2825_v37 = vmul.f32 -1.442695, %v4948_v62  ;;  %v4984_v15 = vadd.f32 %v4886_v1, %v6055_v51  ;;  %v4995_v9 = vpop.f32.mrf.mxu0 }
 0x185   :  { %6050 = vst [vmem:[#allocation38_spill] sm:$0xff] %v4944_v4  ;;  %v4952_v52 = vpop.eup %3239  ;;  %3265 = vrcp.f32 %v1610_v54  ;;  %6056 = vst [vmem:[#allocation73_spill] sm:$0xff] %v4965_v43  ;;  %v2826_v54 = vmul.f32 -1.442695, %v4942_v18  ;;  %v4998_v6 = vpop.f32.mrf.mxu1 }
 0x186   :  { %6052 = vst [vmem:[#allocation42_spill] sm:$0xff] %v4952_v52  ;;  %v4960_v41 = vpop.eup %3241  ;;  %3267 = vrcp.f32 %v1611_v56  ;;  %6057 = vst [vmem:[#allocation39_spill] sm:$0xff] %v4970_v10  ;;  %v4977_v56 = vadd.f32 %v4878_v11, %v6055_v51  ;;  %v2830_v11 = vmul.f32 -1.442695, %v4970_v10  ;;  %v2831_v51 = vmul.f32 -1.442695, %v4984_v15 }
 0x187   :  { %6054 = vst [vmem:[#allocation35_spill] sm:$0xff] %v4960_v41  ;;  %v3244_v55 = vpop.eup %3243  ;;  %3269 = vrcp.f32 %v1613_v17  ;;  %v2827_v17 = vmul.f32 -1.442695, %v4956_v23  ;;  %6059 = vst [vmem:[#allocation28_spill] sm:$0xff] %v4984_v15 }
 0x188   :  { %v4972_v49 = vpop.eup %3245  ;;  %3271 = vrcp.f32 %v1612_v60  ;;  %6058 = vst [vmem:[#allocation77_spill] sm:$0xff] %v4977_v56  ;;  %v2828_v60 = vmul.f32 -1.442695, %v4965_v43  ;;  %v1615_v2 = vadd.f32 1.0, %v3244_v55 }
 0x189   :  { %v3248_v14 = vpop.eup %3247  ;;  %3273 = vrcp.f32 %v1614_v45  ;;  %v2829_v45 = vmul.f32 -1.442695, %v4977_v56 }
 0x18a   :  { %v4988_v59 = vpop.eup %3249  ;;  %3275 = vpow2.f32 %v2824_v27 }
 0x18b   :  { %v3252_v7 = vpop.eup %3251  ;;  %3277 = vpow2.f32 %v2826_v54  ;;  %v6060_v54 = vld [vmem:[#allocation79_spill] sm:$0xff] }
 0x18c   :  { %v4992_v34 = vpop.eup %3253  ;;  %3279 = vpow2.f32 %v2825_v37  ;;  %v5004_v4 = vadd.f32 %v4909_v53, %v6060_v54  ;;  %v1616_v37 = vadd.f32 1.0, %v3248_v14  ;;  %v5010_v41 = vadd.f32 %v4918_v25, %v6060_v54  ;;  %v5026_v25 = vpop.f32.mrf.mxu1 }
 0x18d   :  { %v3256_v1 = vpop.eup %3255  ;;  %3281 = vpow2.f32 %v2827_v17  ;;  %v1619_v8 = vadd.f32 1.0, %v3252_v7  ;;  %v5016_v55 = vadd.f32 %v4925_v19, %v6060_v54  ;;  %v5024_v14 = vadd.f32 %v4928_v38, %v6060_v54 }
 0x18e   :  { %v5000_v27 = vpop.eup %3257  ;;  %3283 = vpow2.f32 %v2828_v60  ;;  %6061 = vst [vmem:[#allocation68_spill] sm:$0xff] %v5004_v4  ;;  %6063 = vst [vmem:[#allocation75_spill] sm:$0xff] %v5010_v41  ;;  %v5018_v60 = vpop.f32.mrf.mxu0  ;;  %v1620_v21 = vadd.f32 1.0, %v3256_v1  ;;  %v2832_v7 = vmul.f32 -1.442695, %v5004_v4  ;;  %v2168_v1 = vld [vmem:[%s5699_s3 + $0x8] sm:$0xff] }
 0x18f   :  { %v5006_v36 = vpop.eup %3259  ;;  %3285 = vpow2.f32 %v2830_v11  ;;  %6065 = vst [vmem:[#allocation65_spill] sm:$0xff] %v5016_v55  ;;  %6067 = vst [vmem:[#allocation70_spill] sm:$0xff] %v5024_v14  ;;  %v2834_v38 = vmul.f32 -1.442695, %v5010_v41  ;;  %2292 = vmatprep.mubr.f32.mxu1 %v2168_v1  ;;  %2482 = vmatprep.mubr.f32.mxu0 %v2168_v1  ;;  %v984_v1 = vpop.f32.mrf.mxu1 }
 0x190   :  { %6062 = vst [vmem:[#allocation36_spill] sm:$0xff] %v5006_v36  ;;  %v5012_v17 = vpop.eup %3261  ;;  %3287 = vpow2.f32 %v2829_v45  ;;  %v6069_v45 = vld [vmem:[#allocation80_spill] sm:$0xff] }
 0x191   :  { %6064 = vst [vmem:[#allocation24_spill] sm:$0xff] %v5012_v17  ;;  %v5020_v53 = vpop.eup %3263  ;;  %3289 = vpow2.f32 %v2831_v51  ;;  %v5033_v19 = vadd.f32 %v4930_v57, %v6069_v45  ;;  %v5043_v54 = vadd.f32 %v4932_v16, %v6069_v45  ;;  %v2833_v57 = vmul.f32 -1.442695, %v5016_v55  ;;  %v679_v17 = vpop.f32.mrf.mxu0 }
 0x192   :  { %6066 = vst [vmem:[#allocation30_spill] sm:$0xff] %v5020_v53  ;;  %v5028_v11 = vpop.eup %3265  ;;  %3291 = vrcp.f32 %v1615_v2  ;;  %v5050_v26 = vadd.f32 %v4950_v32, %v6069_v45  ;;  %v5057_v16 = vadd.f32 %v4958_v40, %v6069_v45  ;;  %v988_v45 = vpop.f32.mrf.mxu1 }
 0x193   :  { %6068 = vst [vmem:[#allocation22_spill] sm:$0xff] %v5028_v11  ;;  %v5038_v51 = vpop.eup %3267  ;;  %3293 = vrcp.f32 %v1616_v37  ;;  %6071 = vst [vmem:[#allocation26_spill] sm:$0xff] %v5043_v54  ;;  %v2835_v37 = vmul.f32 -1.442695, %v5024_v14  ;;  %v2838_v32 = vmul.f32 -1.442695, %v5043_v54  ;;  %v683_v63 = vpop.f32.mrf.mxu0 }
 0x194   :  { %6070 = vst [vmem:[#allocation61_spill] sm:$0xff] %v5038_v51  ;;  %v5045_v2 = vpop.eup %3269  ;;  %3295 = vrcp.f32 %v1619_v8  ;;  %6074 = vst [vmem:[#allocation63_spill] sm:$0xff] %v5057_v16  ;;  %v2836_v8 = vmul.f32 -1.442695, %v5033_v19  ;;  %v2839_v40 = vmul.f32 -1.442695, %v5057_v16  ;;  %v990_v12 = vpop.f32.mrf.mxu1 }
 0x195   :  { %6072 = vst [vmem:[#allocation67_spill] sm:$0xff] %v5045_v2  ;;  %v5052_v44 = vpop.eup %3271  ;;  %3297 = vrcp.f32 %v1620_v21  ;;  %v2837_v21 = vmul.f32 -1.442695, %v5050_v26  ;;  %v685_v30 = vpop.f32.mrf.mxu0 }
 0x196   :  { %6073 = vst [vmem:[#allocation23_spill] sm:$0xff] %v5052_v44  ;;  %v5059_v52 = vpop.eup %3273  ;;  %3299 = vpow2.f32 %v2832_v7  ;;  %v6082_v44 = vld [vmem:[#allocation71_spill] sm:$0xff] }
 0x197   :  { %6075 = vst [vmem:[#allocation93_spill] sm:$0xff] %v5059_v52  ;;  %v3276_v50 = vpop.eup %3275  ;;  %3301 = vpow2.f32 %v2834_v38  ;;  %v5124_v46 = vadd.f32 %v990_v12, %v6082_v44 }
 0x198   :  { %v3278_v11 = vpop.eup %3277  ;;  %3303 = vpow2.f32 %v2833_v57  ;;  %v1623_v2 = vadd.f32 1.0, %v3276_v50 }
 0x199   :  { %v3280_v36 = vpop.eup %3279  ;;  %3305 = vpow2.f32 %v2835_v37  ;;  %v1625_v3 = vadd.f32 1.0, %v3278_v11 }
 0x19a   :  { %v3282_v39 = vpop.eup %3281  ;;  %3307 = vpow2.f32 %v2836_v8  ;;  %v1624_v38 = vadd.f32 1.0, %v3280_v36  ;;  %v5073_v36 = vadd.f32 %v4995_v9, %v6076_v48 }
 0x19b   :  { %v3284_v7 = vpop.eup %3283  ;;  %3309 = vpow2.f32 %v2838_v32  ;;  %v1626_v57 = vadd.f32 1.0, %v3282_v39  ;;  %v689_v32 = vpop.f32.mrf.mxu0 }
 0x19c   :  { %v3286_v53 = vpop.eup %3285  ;;  %3311 = vpow2.f32 %v2837_v21  ;;  %v1627_v37 = vadd.f32 1.0, %v3284_v7  ;;  %v2840_v7 = vmul.f32 -1.442695, %v5067_v42 }
 0x19d   :  { %v3288_v52 = vpop.eup %3287  ;;  %3313 = vpow2.f32 %v2839_v40  ;;  %v1629_v11 = vadd.f32 1.0, %v3286_v53  ;;  %v6080_v40 = vld [vmem:[#allocation78_spill] sm:$0xff]  ;;  %v994_v53 = vpop.f32.mrf.mxu1 }
 0x19e   :  { %v3290_v51 = vpop.eup %3289  ;;  %3315 = vrcp.f32 %v1623_v2  ;;  %v1628_v39 = vadd.f32 1.0, %v3288_v52  ;;  %v5079_v2 = vadd.f32 %v4998_v6, %v6076_v48  ;;  %v5092_v52 = vadd.f32 %v5026_v25, %v6080_v40  ;;  %v691_v33 = vpop.f32.mrf.mxu0 }
 0x19f   :  { %v5069_v50 = vpop.eup %3291  ;;  %3317 = vrcp.f32 %v1625_v3  ;;  %v1630_v47 = vadd.f32 1.0, %v3290_v51  ;;  %v5085_v3 = vadd.f32 %v5018_v60, %v6080_v40  ;;  %v5098_v51 = vadd.f32 %v679_v17, %v6080_v40  ;;  %v996_v5 = vpop.f32.mrf.mxu1 }
 0x1a0   :  { %6077 = vst [vmem:[#allocation101_spill] sm:$0xff] %v5069_v50  ;;  %v5075_v8 = vpop.eup %3293  ;;  %3319 = vrcp.f32 %v1624_v38  ;;  %v2841_v38 = vmul.f32 -1.442695, %v5073_v36  ;;  %v2846_v17 = vmul.f32 -1.442695, %v5092_v52 }
 0x1a1   :  { %6078 = vst [vmem:[#allocation21_spill] sm:$0xff] %v5075_v8  ;;  %v5081_v21 = vpop.eup %3295  ;;  %3321 = vrcp.f32 %v1626_v57  ;;  %v2843_v57 = vmul.f32 -1.442695, %v5079_v2  ;;  %v2844_v25 = vmul.f32 -1.442695, %v5085_v3  ;;  %v5132_v13 = vpop.f32.mrf.mxu1 }
 0x1a2   :  { %6079 = vst [vmem:[#allocation59_spill] sm:$0xff] %v5081_v21  ;;  %v5087_v9 = vpop.eup %3297  ;;  %3323 = vrcp.f32 %v1627_v37  ;;  %v5104_v37 = vadd.f32 %v984_v1, %v6080_v40  ;;  %v2845_v1 = vmul.f32 -1.442695, %v5098_v51  ;;  %v5148_v21 = vpop.permute.xlu1 %295 }
 0x1a3   :  { %6081 = vst [vmem:[#allocation19_spill] sm:$0xff] %v5087_v9  ;;  %v5094_v6 = vpop.eup %3299  ;;  %3325 = vrcp.f32 %v1629_v11  ;;  %v5108_v11 = vadd.f32 %v683_v63, %v6082_v44  ;;  %6086 = vst [vmem:[#allocation53_spill] sm:$0xff] %v5148_v21 }
 0x1a4   :  { %v5100_v60 = vpop.eup %3301  ;;  %3327 = vrcp.f32 %v1628_v39  ;;  %v5114_v39 = vadd.f32 %v988_v45, %v6082_v44  ;;  %v2847_v63 = vmul.f32 -1.442695, %v5104_v37 }
 0x1a5   :  { %v3304_v0 = vpop.eup %3303  ;;  %3329 = vrcp.f32 %v1630_v47  ;;  %v5118_v47 = vadd.f32 %v685_v30, %v6082_v44  ;;  %v2848_v45 = vmul.f32 -1.442695, %v5108_v11 }
 0x1a6   :  { %v5110_v31 = vpop.eup %3305  ;;  %3331 = vpow2.f32 %v2840_v7  ;;  %v5126_v7 = vpop.f32.mrf.mxu0 }
 0x1a7   :  { %v3308_v50 = vpop.eup %3307  ;;  %3333 = vpow2.f32 %v2841_v38  ;;  %v6083_v38 = vld [vmem:[#allocation72_spill] sm:$0xff]  ;;  %v2849_v12 = vmul.f32 -1.442695, %v5118_v47 }
 0x1a8   :  { %v5120_v40 = vpop.eup %3309  ;;  %3335 = vpow2.f32 %v2843_v57  ;;  %v5130_v8 = vadd.f32 %v689_v32, %v6083_v38  ;;  %v2850_v57 = vmul.f32 -1.442695, %v5114_v39  ;;  %v5138_v29 = vadd.f32 %v994_v53, %v6083_v38  ;;  %v5154_v53 = vpop.f32.mrf.mxu0 }
 0x1a9   :  { %v3312_v24 = vpop.eup %3311  ;;  %3337 = vpow2.f32 %v2844_v25  ;;  %v5144_v25 = vadd.f32 %v691_v33, %v6083_v38  ;;  %v5152_v20 = vadd.f32 %v996_v5, %v6083_v38  ;;  %v5170_v38 = vpop.permute.xlu0 %300 }
 0x1aa   :  { %v5134_v30 = vpop.eup %3313  ;;  %3339 = vpow2.f32 %v2846_v17  ;;  %v2851_v17 = vmul.f32 -1.442695, %v5124_v46  ;;  %v2852_v33 = vmul.f32 -1.442695, %v5130_v8  ;;  %6090 = vst [vmem:[#allocation14_spill] sm:$0xff] %v5170_v38  ;;  %v5185_v38 = vpop.permute.xlu1 %285 }
 0x1ab   :  { %v5140_v44 = vpop.eup %3315  ;;  %3341 = vpow2.f32 %v2845_v1  ;;  %v5160_v1 = vadd.f32 %v4986_v35, %v6076_v48  ;;  %v2853_v9 = vmul.f32 -1.442695, %v5144_v25  ;;  %v2855_v48 = vmul.f32 -1.442695, %v5152_v20  ;;  %v5176_v35 = vpop.f32.mrf.mxu0 }
 0x1ac   :  { %6084 = vst [vmem:[#allocation55_spill] sm:$0xff] %v5140_v44  ;;  %v5146_v32 = vpop.eup %3317  ;;  %3343 = vpow2.f32 %v2847_v63  ;;  %v2854_v63 = vmul.f32 -1.442695, %v5138_v29 }
 0x1ad   :  { %6085 = vst [vmem:[#allocation17_spill] sm:$0xff] %v5146_v32  ;;  %v5156_v18 = vpop.eup %3319  ;;  %3345 = vpow2.f32 %v2848_v45  ;;  %v5163_v32 = vpop.f32.mrf.mxu1 }
 0x1ae   :  { %6087 = vst [vmem:[#allocation15_spill] sm:$0xff] %v5156_v18  ;;  %v5165_v21 = vpop.eup %3321  ;;  %3347 = vpow2.f32 %v2850_v57  ;;  %v2842_v57 = vmul.f32 -1.442695, %v5160_v1  ;;  %v5188_v10 = vpop.f32.mrf.mxu0 }
 0x1af   :  { %6088 = vst [vmem:[#allocation47_spill] sm:$0xff] %v5165_v21  ;;  %v5168_v5 = vpop.eup %3323  ;;  %3349 = vpow2.f32 %v2849_v12  ;;  %v5181_v21 = vpop.f32.mrf.mxu1  ;;  %v1631_v12 = vadd.f32 1.0, %v5094_v6 }
 0x1b0   :  { %6089 = vst [vmem:[#allocation94_spill] sm:$0xff] %v5168_v5  ;;  %v5173_v58 = vpop.eup %3325  ;;  %3351 = vpow2.f32 %v2851_v17  ;;  %v1632_v17 = vadd.f32 1.0, %v3304_v0  ;;  %v5190_v62 = vpop.permute.xlu0 %290 }
 0x1b1   :  { %6091 = vst [vmem:[#allocation43_spill] sm:$0xff] %v5173_v58  ;;  %v5178_v45 = vpop.eup %3327  ;;  %3353 = vpow2.f32 %v2852_v33  ;;  %v1635_v58 = vadd.f32 1.0, %v3308_v50  ;;  %v1636_v33 = vadd.f32 1.0, %v3312_v24  ;;  %v5192_v15 = vpop.f32.mrf.mxu1 }
 0x1b2   :  { %6092 = vst [vmem:[#allocation13_spill] sm:$0xff] %v5178_v45  ;;  %v5183_v23 = vpop.eup %3329  ;;  %3355 = vpow2.f32 %v2854_v63 }
 0x1b3   :  { %6093 = vst [vmem:[#allocation40_spill] sm:$0xff] %v5183_v23  ;;  %v3332_v44 = vpop.eup %3331  ;;  %3357 = vpow2.f32 %v2853_v9  ;;  %v5194_v9 = vpop.permute.xlu1 %275 }
 0x1b4   :  { %v3334_v22 = vpop.eup %3333  ;;  %3359 = vpow2.f32 %v2855_v48  ;;  %v1639_v5 = vadd.f32 1.0, %v3332_v44  ;;  %v5196_v48 = vpop.f32.mrf.mxu0 }
 0x1b5   :  { %v3336_v18 = vpop.eup %3335  ;;  %3361 = vpow2.f32 %v2842_v57  ;;  %v1640_v63 = vadd.f32 1.0, %v3334_v22  ;;  %v5198_v24 = vpop.f32.mrf.mxu1 }
 0x1b6   :  { %v3338_v23 = vpop.eup %3337  ;;  %3363 = vrcp.f32 %v1631_v12  ;;  %v5200_v12 = vpop.permute.xlu0 %280 }
 0x1b7   :  { %v3340_v6 = vpop.eup %3339  ;;  %3365 = vrcp.f32 %v1632_v17  ;;  %v1643_v50 = vadd.f32 1.0, %v3338_v23  ;;  %v5202_v17 = vpop.f32.mrf.mxu0 }
 0x1b8   :  { %v3342_v0 = vpop.eup %3341  ;;  %3367 = vrcp.f32 %v1635_v58  ;;  %v1014_v56 = vpop.f32.mrf.mxu1 }
 0x1b9   :  { %v3344_v43 = vpop.eup %3343  ;;  %3369 = vrcp.f32 %v1636_v33  ;;  %v1644_v41 = vadd.f32 1.0, %v3342_v0  ;;  %v266_v33 = vpop.permute.xlu1 %265 }
 0x1ba   :  { %v3346_v57 = vpop.eup %3345  ;;  %3371 = vrcp.f32 %v1639_v5  ;;  %v5205_v14 = vadd.f32 %v5126_v7, %v266_v33  ;;  %v271_v54 = vpop.permute.xlu0 %270  ;;  %v1646_v55 = vadd.f32 1.0, %v3344_v43 }
 0x1bb   :  { %v3348_v45 = vpop.eup %3347  ;;  %3373 = vrcp.f32 %v1640_v63  ;;  %v1647_v44 = vadd.f32 1.0, %v3346_v57  ;;  %v1018_v7 = vpop.f32.mrf.mxu1 }
 0x1bc   :  { %v3350_v22 = vpop.eup %3349  ;;  %3375 = vrcp.f32 %v1643_v50  ;;  %6094 = vst [vmem:[#allocation12_spill] sm:$0xff] %v5205_v14  ;;  %v5208_v50 = vadd.f32 %v5132_v13, %v266_v33  ;;  %v5217_v13 = vadd.f32 %v5176_v35, %v271_v54 }
 0x1bd   :  { %v3352_v58 = vpop.eup %3351  ;;  %3377 = vrcp.f32 %v1644_v41  ;;  %v1648_v23 = vadd.f32 1.0, %v3350_v22  ;;  %v5211_v41 = vadd.f32 %v5154_v53, %v266_v33  ;;  %v713_v22 = vpop.f32.mrf.mxu0  ;;  %v1645_v53 = vadd.f32 1.0, %v3340_v6 }
 0x1be   :  { %v3354_v28 = vpop.eup %3353  ;;  %3379 = vrcp.f32 %v1647_v44  ;;  %v1650_v0 = vadd.f32 1.0, %v3352_v58  ;;  %6095 = vst [vmem:[#allocation37_spill] sm:$0xff] %v5208_v50  ;;  %v1649_v44 = vadd.f32 1.0, %v3348_v45  ;;  %6098 = vst [vmem:[#allocation11_spill] sm:$0xff] %v5217_v13  ;;  %v1642_v45 = vadd.f32 1.0, %v3336_v18  ;;  %v1020_v6 = vpop.f32.mrf.mxu1 }
 0x1bf   :  { %v3356_v61 = vpop.eup %3355  ;;  %3381 = vrcp.f32 %v1648_v23  ;;  %v1651_v5 = vadd.f32 1.0, %v3354_v28  ;;  %6096 = vst [vmem:[#allocation9_spill] sm:$0xff] %v5211_v41  ;;  %v5214_v28 = vadd.f32 %v5163_v32, %v266_v33  ;;  %v5225_v32 = vmul.f32 -1.442695, %v5208_v50  ;;  %v715_v33 = vpop.f32.mrf.mxu0 }
 0x1c0   :  { %v3358_v63 = vpop.eup %3357  ;;  %3383 = vrcp.f32 %v1650_v0  ;;  %v1653_v57 = vadd.f32 1.0, %v3356_v61  ;;  %v2857_v35 = vmul.f32 -1.442695, %v5211_v41  ;;  %v1638_v18 = vadd.f32 1.0, %v5134_v30 }
 0x1c1   :  { %v3360_v4 = vpop.eup %3359  ;;  %3385 = vrcp.f32 %v1651_v5  ;;  %v1652_v58 = vadd.f32 1.0, %v3358_v63  ;;  %6097 = vst [vmem:[#allocation32_spill] sm:$0xff] %v5214_v28  ;;  %v2856_v5 = vmul.f32 -1.442695, %v5205_v14  ;;  %v5231_v63 = vmul.f32 -1.442695, %v5214_v28 }
 0x1c2   :  { %v3362_v23 = vpop.eup %3361  ;;  %3387 = vrcp.f32 %v1653_v57  ;;  %v1654_v61 = vadd.f32 1.0, %v3360_v4  ;;  %v5247_v28 = vadd.f32 %v5192_v15, %v271_v54  ;;  %v5258_v30 = vadd.f32 %v5198_v24, %v5194_v9 }
 0x1c3   :  { %v5219_v0 = vpop.eup %3363  ;;  %3389 = vrcp.f32 %v1652_v58  ;;  %v1641_v4 = vadd.f32 1.0, %v3362_v23  ;;  %v2860_v58 = vmul.f32 -1.442695, %v5217_v13  ;;  %v5244_v23 = vadd.f32 %v5188_v10, %v271_v54 }
 0x1c4   :  { %v5221_v16 = vpop.eup %3365  ;;  %3391 = vrcp.f32 %v1654_v61  ;;  %v5238_v61 = vadd.f32 %v5181_v21, %v271_v54  ;;  %6101 = vst [vmem:[#allocation29_spill] sm:$0xff] %v5247_v28  ;;  %v5254_v21 = vadd.f32 %v5196_v48, %v5194_v9  ;;  %6103 = vst [vmem:[#allocation33_spill] sm:$0xff] %v5258_v30  ;;  %v1633_v10 = vadd.f32 1.0, %v5100_v60  ;;  %v1024_v54 = vpop.f32.mrf.mxu1 }
 0x1c5   :  { %v5227_v43 = vpop.eup %3367  ;;  %3393 = vrcp.f32 %v1649_v44  ;;  %v1637_v44 = vadd.f32 1.0, %v5120_v40  ;;  %6100 = vst [vmem:[#allocation7_spill] sm:$0xff] %v5244_v23  ;;  %v719_v40 = vpop.f32.mrf.mxu0  ;;  %v5265_v15 = vadd.f32 %v5202_v17, %v5194_v9  ;;  %v5279_v60 = vadd.f32 %v1018_v7, %v5200_v12 }
 0x1c6   :  { %v5233_v57 = vpop.eup %3369  ;;  %3395 = vrcp.f32 %v1646_v55  ;;  %6099 = vst [vmem:[#allocation34_spill] sm:$0xff] %v5238_v61  ;;  %v1634_v55 = vadd.f32 1.0, %v5110_v31  ;;  %6102 = vst [vmem:[#allocation10_spill] sm:$0xff] %v5254_v21  ;;  %v5268_v31 = vadd.f32 %v1014_v56, %v5194_v9  ;;  %v5273_v24 = vmul.f32 -1.442695, %v5238_v61  ;;  %v1026_v13 = vpop.f32.mrf.mxu1 }
 0x1c7   :  { %v5240_v50 = vpop.eup %3371  ;;  %3397 = vrcp.f32 %v1645_v53  ;;  %6104 = vst [vmem:[#allocation5_spill] sm:$0xff] %v5265_v15  ;;  %6107 = vst [vmem:[#allocation31_spill] sm:$0xff] %v5279_v60  ;;  %v2861_v17 = vmul.f32 -1.442695, %v5244_v23  ;;  %v5283_v56 = vmul.f32 -1.442695, %v5247_v28  ;;  %v5286_v9 = vadd.f32 %v715_v33, %v5200_v12 }
 0x1c8   :  { %v5249_v14 = vpop.eup %3373  ;;  %3399 = vrcp.f32 %v1642_v45  ;;  %6105 = vst [vmem:[#allocation25_spill] sm:$0xff] %v5268_v31  ;;  %v5276_v45 = vadd.f32 %v713_v22, %v5200_v12  ;;  %v5289_v61 = vmul.f32 -1.442695, %v5254_v21  ;;  %v5292_v22 = vmul.f32 -1.442695, %v5258_v30 }
 0x1c9   :  { %v5260_v53 = vpop.eup %3375  ;;  %3401 = vrcp.f32 %v1641_v4  ;;  %6108 = vst [vmem:[#allocation6_spill] sm:$0xff] %v5286_v9  ;;  %v5295_v7 = vadd.f32 %v1020_v6, %v5200_v12  ;;  %v5298_v28 = vmul.f32 -1.442695, %v5265_v15  ;;  %v5301_v33 = vmul.f32 -1.442695, %v5268_v31 }
 0x1ca   :  { %v5270_v48 = vpop.eup %3377  ;;  %3403 = vrcp.f32 %v1638_v18  ;;  %6106 = vst [vmem:[#allocation8_spill] sm:$0xff] %v5276_v45  ;;  %v1622_v30 = vadd.f32 1.0, %v5000_v27  ;;  %v5308_v12 = vmul.f32 -1.442695, %v5276_v45  ;;  %v5311_v6 = vmul.f32 -1.442695, %v5279_v60 }
 0x1cb   :  { %v3380_v4 = vpop.eup %3379  ;;  %3405 = vrcp.f32 %v1637_v44  ;;  %6109 = vst [vmem:[#allocation27_spill] sm:$0xff] %v5295_v7  ;;  %v721_v44 = vpop.f32.mrf.mxu0  ;;  %v1621_v21 = vadd.f32 1.0, %v4992_v34  ;;  %v5315_v31 = vmul.f32 -1.442695, %v5286_v9  ;;  %v1618_v27 = vadd.f32 1.0, %v4988_v59 }
 0x1cc   :  { %v3382_v18 = vpop.eup %3381  ;;  %3407 = vrcp.f32 %v1634_v55  ;;  %v5304_v55 = vadd.f32 %v719_v40, %v5185_v38  ;;  %6110 = vst [vmem:[#allocation90_spill] sm:$0xff] %v5311_v6  ;;  %v5318_v40 = vadd.f32 %v721_v44, %v5185_v38  ;;  %v5325_v60 = vadd.f32 %v1026_v13, %v5185_v38  ;;  %v1030_v9 = vpop.f32.mrf.mxu1 }
 0x1cd   :  { %v3384_v41 = vpop.eup %3383  ;;  %3409 = vrcp.f32 %v1633_v10  ;;  %6111 = vst [vmem:[#allocation92_spill] sm:$0xff] %v5315_v31  ;;  %v725_v45 = vpop.f32.mrf.mxu0  ;;  %v1617_v34 = vadd.f32 1.0, %v4972_v49  ;;  %v5335_v13 = vadd.f32 %v1024_v54, %v5185_v38  ;;  %v2128_v49 = vmul.f32 %v3382_v18, %v5118_v47  ;;  %v6116_v18 = vld [vmem:[#allocation70_spill] sm:$0xff] }
 0x1ce   :  { %v3386_v23 = vpop.eup %3385  ;;  %3411 = vpow2.f32 %v2856_v5  ;;  %v5322_v5 = vmul.f32 -1.442695, %v5295_v7  ;;  %v5330_v44 = vmul.f32 -1.442695, %v5304_v55  ;;  %v1032_v54 = vpop.f32.mrf.mxu1 }
 0x1cf   :  { %v3388_v10 = vpop.eup %3387  ;;  %3413 = vpow2.f32 %v2857_v35  ;;  %v2131_v59 = vmul.f32 %v3386_v23, %v5130_v8  ;;  %v2130_v8 = vmul.f32 %v3384_v41, %v5124_v46  ;;  %v727_v38 = vpop.f32.mrf.mxu0 }
 0x1d0   :  { %v3390_v15 = vpop.eup %3389  ;;  %3415 = vpow2.f32 %v2860_v58 }
 0x1d1   :  { %v3392_v6 = vpop.eup %3391  ;;  %v2132_v35 = vmul.f32 %v3390_v15, %v5144_v25  ;;  %3417 = vpow2.f32 %v2861_v17  ;;  %v2133_v25 = vmul.f32 %v3388_v10, %v5138_v29  ;;  %v5340_v15 = vmul.f32 -1.442695, %v5318_v40  ;;  %v6117_v10 = vld [vmem:[#allocation107_spill] sm:$0xff] }
 0x1d2   :  { %v3394_v31 = vpop.eup %3393  ;;  %3419 = vrcp.f32 %v1622_v30  ;;  %v2134_v58 = vmul.f32 %v3392_v6, %v5152_v20  ;;  %v2127_v30 = vmul.f32 %v3380_v4, %v5108_v11  ;;  %v5345_v20 = vmul.f32 -1.442695, %v5325_v60 }
 0x1d3   :  { %v3396_v7 = vpop.eup %3395  ;;  %3421 = vrcp.f32 %v1621_v21  ;;  %2260 = vmatprep.subr.mxu1 %v2132_v35  ;;  %v2124_v29 = vmul.f32 %v5270_v48, %v5098_v51  ;;  %v2129_v47 = vmul.f32 %v3394_v31, %v5114_v39  ;;  %v5351_v21 = vadd.f32 %v725_v45, %v5190_v62  ;;  %v6114_v45 = vld [vmem:[#allocation26_spill] sm:$0xff]  ;;  %v6119_v35 = vld [vmem:[#allocation77_spill] sm:$0xff] }
 0x1d4   :  { %v3398_v17 = vpop.eup %3397  ;;  %3423 = vrcp.f32 %v1618_v27  ;;  %2450 = vmatprep.subr.mxu0 %v2134_v58  ;;  %2261 = vmatpush2.msra.mxu1 %v2131_v59  ;;  %v2123_v11 = vmul.f32 %v5260_v53, %v5085_v3  ;;  %v2126_v41 = vmul.f32 %v3396_v7, %v5104_v37  ;;  %v5358_v4 = vadd.f32 %v1030_v9, %v5190_v62  ;;  %v6118_v27 = vld [vmem:[#allocation51_spill] sm:$0xff]  ;;  %v6120_v59 = vld [vmem:[#allocation13_spill] sm:$0xff] }
 0x1d5   :  { %v3400_v23 = vpop.eup %3399  ;;  %3425 = vrcp.f32 %v1617_v34  ;;  %2451 = vmatpush2.msra.mxu0 %v2133_v25  ;;  %2262 = vmatprep.subr.mxu1 %v2128_v49  ;;  %v2120_v39 = vmul.f32 %v5249_v14, %v5073_v36  ;;  %v2125_v31 = vmul.f32 %v3398_v17, %v5092_v52  ;;  %v5365_v48 = vadd.f32 %v727_v38, %v5190_v62  ;;  %v6121_v49 = vld [vmem:[#allocation75_spill] sm:$0xff]  ;;  %v1036_v25 = vpop.f32.mrf.mxu1  ;;  %v6122_v17 = vld [vmem:[#allocation73_spill] sm:$0xff]  ;;  %v6124_v38 = vld [vmem:[#allocation28_spill] sm:$0xff] }
 0x1d6   :  { %v3402_v46 = vpop.eup %3401  ;;  %3427 = vpow2.f32 %v5225_v32  ;;  %2452 = vmatprep.subr.mxu0 %v2130_v8  ;;  %2263 = vmatpush2.msra.mxu1 %v2127_v30  ;;  %v2119_v37 = vmul.f32 %v5240_v50, %v5067_v42  ;;  %v2122_v32 = vmul.f32 %v3400_v23, %v5079_v2  ;;  %v5372_v53 = vadd.f32 %v1032_v54, %v5190_v62  ;;  %v6112_v2 = vld [vmem:[#allocation63_spill] sm:$0xff]  ;;  %v6123_v30 = vld [vmem:[#allocation94_spill] sm:$0xff]  ;;  %v6125_v23 = vld [vmem:[#allocation40_spill] sm:$0xff] }
 0x1d7   :  { %v3404_v51 = vpop.eup %3403  ;;  %3429 = vpow2.f32 %v5231_v63  ;;  %2453 = vmatpush2.msra.mxu0 %v2129_v47  ;;  %2264 = vmatprep.subr.mxu1 %v2124_v29  ;;  %v2116_v36 = vmul.f32 %v5233_v57, %v5050_v26  ;;  %v2121_v52 = vmul.f32 %v3402_v46, %v5160_v1  ;;  %v5379_v63 = vmul.f32 -1.442695, %v5351_v21  ;;  %v6113_v1 = vld [vmem:[#allocation65_spill] sm:$0xff]  ;;  %v6126_v46 = vld [vmem:[#allocation76_spill] sm:$0xff] }
 0x1d8   :  { %v3406_v3 = vpop.eup %3405  ;;  %3431 = vpow2.f32 %v5273_v24  ;;  %2454 = vmatprep.subr.mxu0 %v2126_v41  ;;  %2265 = vmatpush2.msra.mxu1 %v2123_v11  ;;  %v2115_v62 = vmul.f32 %v5227_v43, %v5033_v19  ;;  %v2118_v50 = vmul.f32 %v3404_v51, %v6112_v2  ;;  %v5386_v24 = vmul.f32 -1.442695, %v5358_v4  ;;  %v6115_v43 = vld [vmem:[#allocation68_spill] sm:$0xff]  ;;  %v6127_v11 = vld [vmem:[#allocation15_spill] sm:$0xff] }
 0x1d9   :  { %v3408_v14 = vpop.eup %3407  ;;  %3433 = vpow2.f32 %v5283_v56  ;;  %2455 = vmatpush2.msra.mxu0 %v2125_v31  ;;  %2266 = vmatprep.subr.mxu1 %v2120_v39  ;;  %v2112_v57 = vmul.f32 %v5221_v16, %v6113_v1  ;;  %v2117_v56 = vmul.f32 %v3406_v3, %v6114_v45  ;;  %v5393_v9 = vmul.f32 -1.442695, %v5365_v48  ;;  %v731_v16 = vpop.f32.mrf.mxu0  ;;  %v6129_v51 = vld [vmem:[#allocation43_spill] sm:$0xff]  ;;  %v6130_v3 = vld [vmem:[#allocation90_spill] sm:$0xff]  ;;  %v6135_v2 = vld [vmem:[#allocation92_spill] sm:$0xff] }
 0x1da   :  { %v3410_v42 = vpop.eup %3409  ;;  %3435 = vpow2.f32 %v5289_v61  ;;  %2456 = vmatprep.subr.mxu0 %v2122_v32  ;;  %2267 = vmatpush2.msra.mxu1 %v2119_v37  ;;  %v2111_v61 = vmul.f32 %v5219_v0, %v6115_v43  ;;  %v2114_v7 = vmul.f32 %v3408_v14, %v6116_v18  ;;  %v5400_v6 = vmul.f32 -1.442695, %v5372_v53  ;;  %v6131_v32 = vld [vmem:[#allocation81_spill] sm:$0xff]  ;;  %v6132_v14 = vld [vmem:[#allocation55_spill] sm:$0xff]  ;;  %v6136_v1 = vld [vmem:[#allocation84_spill] sm:$0xff]  ;;  %v1038_v18 = vpop.f32.mrf.mxu1 }
 0x1db   :  { %v3412_v26 = vpop.eup %3411  ;;  %3437 = vpow2.f32 %v5292_v22  ;;  %2457 = vmatpush2.msra.mxu0 %v2121_v52  ;;  %2268 = vmatprep.subr.mxu1 %v2116_v36  ;;  %v5404_v34 = vmul.f32 %v6118_v27, %v6117_v10  ;;  %v2108_v58 = vmul.f32 %v6120_v59, %v6119_v35  ;;  %v2113_v0 = vmul.f32 %v3410_v42, %v6121_v49  ;;  %v6133_v52 = vld [vmem:[#allocation83_spill] sm:$0xff] }
 0x1dc   :  { %v3414_v19 = vpop.eup %3413  ;;  %3439 = vpow2.f32 %v5298_v28  ;;  %2458 = vmatprep.subr.mxu0 %v2118_v50  ;;  %2269 = vmatpush2.msra.mxu1 %v2115_v62  ;;  %v2107_v8 = vmul.f32 %v6123_v30, %v6122_v17  ;;  %v2110_v29 = vmul.f32 %v6125_v23, %v6124_v38  ;;  %v1655_v47 = vadd.f32 1.0, %v3412_v26  ;;  %v733_v50 = vpop.f32.mrf.mxu0  ;;  %v6141_v10 = vld [vmem:[#allocation59_spill] sm:$0xff]  ;;  %v6145_v17 = vld [vmem:[#allocation21_spill] sm:$0xff] }
 0x1dd   :  { %v3416_v22 = vpop.eup %3415  ;;  %3441 = vpow2.f32 %v5301_v33  ;;  %2459 = vmatpush2.msra.mxu0 %v2117_v56  ;;  %2270 = vmatprep.subr.mxu1 %v2112_v57  ;;  %v2104_v41 = vmul.f32 %v6127_v11, %v6126_v46  ;;  %v6128_v33 = vld [vmem:[#allocation39_spill] sm:$0xff]  ;;  %v1656_v31 = vadd.f32 1.0, %v3414_v19  ;;  %v2103_v36 = vmul.f32 %v6132_v14, %v6131_v32  ;;  %v6138_v56 = vld [vmem:[#allocation85_spill] sm:$0xff]  ;;  %v1042_v32 = vpop.f32.mrf.mxu1 }
 0x1de   :  { %v3418_v28 = vpop.eup %3417  ;;  %3443 = vpow2.f32 %v5308_v12  ;;  %2460 = vmatprep.subr.mxu0 %v2114_v7  ;;  %2271 = vmatpush2.msra.mxu1 %v2111_v61  ;;  %v2109_v39 = vmul.f32 %v6129_v51, %v6128_v33  ;;  %v6134_v12 = vld [vmem:[#allocation47_spill] sm:$0xff]  ;;  %v1659_v62 = vadd.f32 1.0, %v3416_v22  ;;  %v6139_v19 = vld [vmem:[#allocation17_spill] sm:$0xff]  ;;  %v6140_v22 = vld [vmem:[#allocation86_spill] sm:$0xff] }
 0x1df   :  { %v3420_v54 = vpop.eup %3419  ;;  %3445 = vpow2.f32 %v6130_v3  ;;  %2461 = vmatpush2.msra.mxu0 %v2113_v0  ;;  %2272 = vmatprep.subr.mxu1 %v2108_v58  ;;  %v2106_v42 = vmul.f32 %v6134_v12, %v6133_v52  ;;  %v6137_v57 = vld [vmem:[#allocation19_spill] sm:$0xff]  ;;  %v2105_v43 = vmul.f32 %v6139_v19, %v6138_v56  ;;  %v1660_v61 = vadd.f32 1.0, %v3418_v28  ;;  %v6143_v58 = vld [vmem:[#allocation53_spill] sm:$0xff]  ;;  %v6144_v28 = vld [vmem:[#allocation50_spill] sm:$0xff] }
 0x1e0   :  { %v3422_v37 = vpop.eup %3421  ;;  %3447 = vpow2.f32 %v6135_v2  ;;  %2462 = vmatprep.subr.mxu0 %v2110_v29  ;;  %2273 = vmatpush2.msra.mxu1 %v2107_v8  ;;  %v2100_v45 = vmul.f32 %v6137_v57, %v6136_v1  ;;  %v2099_v27 = vmul.f32 %v6141_v10, %v6140_v22  ;;  %v6142_v35 = vld [vmem:[#allocation87_spill] sm:$0xff]  ;;  %v5434_v49 = vadd.f32 %v731_v16, %v6143_v58  ;;  %v6148_v16 = vld [vmem:[#allocation101_spill] sm:$0xff]  ;;  %v6160_v56 = vld [vmem:[#allocation30_spill] sm:$0xff] }
 0x1e1   :  { %v3424_v26 = vpop.eup %3423  ;;  %3449 = vpow2.f32 %v5322_v5  ;;  %2463 = vmatpush2.msra.mxu0 %v2109_v39  ;;  %2274 = vmatprep.subr.mxu1 %v2104_v41  ;;  %v2102_v59 = vmul.f32 %v3420_v54, %v6142_v35  ;;  %v2096_v5 = vmul.f32 %v6145_v17, %v6144_v28  ;;  %v6146_v30 = vld [vmem:[#allocation91_spill] sm:$0xff]  ;;  %v5442_v38 = vadd.f32 %v1036_v25, %v6143_v58  ;;  %v6149_v54 = vld [vmem:[#allocation58_spill] sm:$0xff]  ;;  %v737_v41 = vpop.f32.mrf.mxu0  ;;  %v6150_v25 = vld [vmem:[#allocation60_spill] sm:$0xff] }
 0x1e2   :  { %v3426_v7 = vpop.eup %3425  ;;  %3451 = vrcp.f32 %v1655_v47  ;;  %2464 = vmatprep.subr.mxu0 %v2106_v42  ;;  %2275 = vmatpush2.msra.mxu1 %v2103_v36  ;;  %v2101_v8 = vmul.f32 %v3422_v37, %v6146_v30  ;;  %v6147_v29 = vld [vmem:[#allocation95_spill] sm:$0xff]  ;;  %v2098_v46 = vmul.f32 %v3424_v26, %v6149_v54  ;;  %v5450_v11 = vadd.f32 %v733_v50, %v6143_v58  ;;  %v6153_v36 = vld [vmem:[#allocation109_spill] sm:$0xff]  ;;  %v6155_v42 = vld [vmem:[#allocation16_spill] sm:$0xff] }
 0x1e3   :  { %v5436_v0 = vpop.eup %3427  ;;  %3453 = vrcp.f32 %v1656_v31  ;;  %2465 = vmatpush2.msra.mxu0 %v2105_v43  ;;  %2276 = vmatprep.subr.mxu1 %v2100_v45  ;;  %v2095_v47 = vmul.f32 %v6148_v16, %v6147_v29  ;;  %v6151_v51 = vld [vmem:[#allocation23_spill] sm:$0xff]  ;;  %v6152_v31 = vld [vmem:[#allocation20_spill] sm:$0xff]  ;;  %v5458_v37 = vadd.f32 %v1038_v18, %v6143_v58  ;;  %v6154_v52 = vld [vmem:[#allocation49_spill] sm:$0xff]  ;;  %v2882_v28 = vmul.f32 -1.442695, %v5442_v38  ;;  %v739_v17 = vpop.f32.mrf.mxu0 }
 0x1e4   :  { %v5444_v23 = vpop.eup %3429  ;;  %3455 = vrcp.f32 %v1659_v62  ;;  %2466 = vmatprep.subr.mxu0 %v2102_v59  ;;  %2277 = vmatpush2.msra.mxu1 %v2099_v27  ;;  %v2092_v39 = vmul.f32 %v6151_v51, %v6150_v25  ;;  %v2097_v3 = vmul.f32 %v3426_v7, %v6152_v31  ;;  %v2080_v12 = vmul.f32 %v6154_v52, %v6153_v36  ;;  %v6156_v62 = vld [vmem:[#allocation61_spill] sm:$0xff]  ;;  %v6157_v50 = vld [vmem:[#allocation96_spill] sm:$0xff]  ;;  %v6166_v59 = vld [vmem:[#allocation22_spill] sm:$0xff]  ;;  %v1044_v25 = vpop.f32.mrf.mxu1 }
 0x1e5   :  { %v5452_v33 = vpop.eup %3431  ;;  %3457 = vrcp.f32 %v1660_v61  ;;  %2467 = vmatpush2.msra.mxu0 %v2101_v8  ;;  %2278 = vmatprep.subr.mxu1 %v2096_v5  ;;  %v2091_v2 = vmul.f32 %v6156_v62, %v6155_v42  ;;  %v6158_v26 = vld [vmem:[#allocation93_spill] sm:$0xff]  ;;  %v6161_v43 = vld [vmem:[#allocation52_spill] sm:$0xff]  ;;  %v6162_v61 = vld [vmem:[#allocation67_spill] sm:$0xff]  ;;  %v2880_v7 = vmul.f32 -1.442695, %v5434_v49 }
 0x1e6   :  { %v5460_v14 = vpop.eup %3433  ;;  %v2094_v1 = vmul.f32 %v6158_v26, %v6157_v50  ;;  %3459 = vpow2.f32 %v5330_v44  ;;  %2468 = vmatprep.subr.mxu0 %v2098_v46  ;;  %2279 = vmatpush2.msra.mxu1 %v2095_v47  ;;  %v6159_v45 = vld [vmem:[#allocation97_spill] sm:$0xff]  ;;  %v2093_v18 = vmul.f32 %v6162_v61, %v6161_v43  ;;  %v6164_v44 = vld [vmem:[#allocation36_spill] sm:$0xff]  ;;  %v6168_v30 = vld [vmem:[#allocation42_spill] sm:$0xff]  ;;  %v2881_v50 = vmul.f32 -1.442695, %v5450_v11 }
 0x1e7   :  { %v5469_v57 = vpop.eup %3435  ;;  %v2088_v19 = vmul.f32 %v6160_v56, %v6159_v45  ;;  %3461 = vpow2.f32 %v5340_v15  ;;  %2469 = vmatpush2.msra.mxu0 %v2097_v3  ;;  %2280 = vmatprep.subr.mxu1 %v2092_v39  ;;  %v6163_v10 = vld [vmem:[#allocation45_spill] sm:$0xff]  ;;  %v6169_v29 = vld [vmem:[#allocation64_spill] sm:$0xff]  ;;  %v6171_v54 = vld [vmem:[#allocation14_spill] sm:$0xff]  ;;  %v2883_v56 = vmul.f32 -1.442695, %v5458_v37 }
 0x1e8   :  { %v5477_v22 = vpop.eup %3437  ;;  %v2087_v27 = vmul.f32 %v6164_v44, %v6163_v10  ;;  %v6165_v35 = vld [vmem:[#allocation69_spill] sm:$0xff]  ;;  %3463 = vpow2.f32 %v5345_v20  ;;  %2470 = vmatprep.subr.mxu0 %v2094_v1  ;;  %2281 = vmatpush2.msra.mxu1 %v2091_v2  ;;  %v6170_v16 = vld [vmem:[#allocation24_spill] sm:$0xff]  ;;  %v5493_v46 = vadd.f32 %v737_v41, %v6171_v54  ;;  %v6172_v51 = vld [vmem:[#allocation111_spill] sm:$0xff]  ;;  %v5503_v42 = vadd.f32 %v1042_v32, %v6171_v54 }
 0x1e9   :  { %v2090_v58 = vmul.f32 %v6166_v59, %v6165_v35  ;;  %v5485_v15 = vpop.eup %3439  ;;  %v6167_v5 = vld [vmem:[#allocation113_spill] sm:$0xff]  ;;  %v2089_v47 = vmul.f32 %v6170_v16, %v6169_v29  ;;  %3465 = vpow2.f32 %v5379_v63  ;;  %2471 = vmatpush2.msra.mxu0 %v2093_v18  ;;  %2282 = vmatprep.subr.mxu1 %v2088_v19  ;;  %v6173_v39 = vld [vmem:[#allocation46_spill] sm:$0xff]  ;;  %v6175_v36 = vld [vmem:[#allocation35_spill] sm:$0xff]  ;;  %v5510_v26 = vadd.f32 %v739_v17, %v6171_v54 }
 0x1ea   :  { %v2084_v8 = vmul.f32 %v6168_v30, %v6167_v5  ;;  %v5495_v20 = vpop.eup %3441  ;;  %v2083_v31 = vmul.f32 %v6173_v39, %v6172_v51  ;;  %v6174_v3 = vld [vmem:[#allocation114_spill] sm:$0xff]  ;;  %3467 = vpow2.f32 %v5386_v24  ;;  %2283 = vmatpush2.msra.mxu1 %v2087_v27  ;;  %v6176_v41 = vld [vmem:[#allocation112_spill] sm:$0xff]  ;;  %v6179_v32 = vld [vmem:[#allocation41_spill] sm:$0xff]  ;;  %v5519_v19 = vadd.f32 %v1044_v25, %v6171_v54 }
 0x1eb   :  { %v2086_v52 = vmul.f32 %v6175_v36, %v6174_v3  ;;  %2472 = vmatprep.subr.mxu0 %v2090_v58  ;;  %v3444_v63 = vpop.eup %3443  ;;  %v6177_v62 = vld [vmem:[#allocation38_spill] sm:$0xff]  ;;  %3469 = vpow2.f32 %v5393_v9  ;;  %v6180_v43 = vld [vmem:[#allocation105_spill] sm:$0xff]  ;;  %v6182_v10 = vld [vmem:[#allocation108_spill] sm:$0xff]  ;;  %v2884_v35 = vmul.f32 -1.442695, %v5493_v46 }
 0x1ec   :  { %v2085_v2 = vmul.f32 %v6177_v62, %v6176_v41  ;;  %2473 = vmatpush2.msra.mxu0 %v2089_v47  ;;  %2284 = vmatprep.subr.mxu1 %v2084_v8  ;;  %v5512_v1 = vpop.eup %3445  ;;  %v6178_v24 = vld [vmem:[#allocation110_spill] sm:$0xff]  ;;  %3471 = vpow2.f32 %v5400_v6  ;;  %v6181_v61 = vld [vmem:[#allocation89_spill] sm:$0xff]  ;;  %v6183_v44 = vld [vmem:[#allocation44_spill] sm:$0xff]  ;;  %v2886_v29 = vmul.f32 -1.442695, %v5503_v42 }
 0x1ed   :  { %v2082_v45 = vmul.f32 %v6179_v32, %v6178_v24  ;;  %2474 = vmatprep.subr.mxu0 %v2086_v52  ;;  %2285 = vmatpush2.msra.mxu1 %v2083_v31  ;;  %v3448_v9 = vpop.eup %3447  ;;  %v2076_v18 = vmul.f32 %v6181_v61, %v6180_v43  ;;  %v2081_v27 = vmul.f32 %v6183_v44, %v6182_v10  ;;  %3473 = vpow2.f32 %v2880_v7  ;;  %v6184_v59 = vld [vmem:[#allocation103_spill] sm:$0xff]  ;;  %v6185_v58 = vld [vmem:[#allocation62_spill] sm:$0xff]  ;;  %v6187_v30 = vld [vmem:[#allocation48_spill] sm:$0xff] }
 0x1ee   :  { %2475 = vmatpush2.msra.mxu0 %v2085_v2  ;;  %2286 = vmatprep.subr.mxu1 %v2080_v12  ;;  %v5526_v6 = vpop.eup %3449  ;;  %v2075_v17 = vmul.f32 %v6185_v58, %v6184_v59  ;;  %v6186_v5 = vld [vmem:[#allocation106_spill] sm:$0xff]  ;;  %3475 = vpow2.f32 %v2882_v28  ;;  %v6188_v7 = vld [vmem:[#allocation100_spill] sm:$0xff]  ;;  %v6191_v25 = vld [vmem:[#allocation57_spill] sm:$0xff]  ;;  %v2885_v39 = vmul.f32 -1.442695, %v5510_v26  ;;  %v1664_v44 = vadd.f32 1.0, %v5485_v15 }
 0x1ef   :  { %v2078_v8 = vmul.f32 %v6187_v30, %v6186_v5  ;;  %2476 = vmatprep.subr.mxu0 %v2082_v45  ;;  %2287 = vmatpush2.msra.mxu1 %v5404_v34  ;;  %v5534_v16 = vpop.eup %3451  ;;  %v6189_v47 = vld [vmem:[#allocation54_spill] sm:$0xff]  ;;  %v6190_v12 = vld [vmem:[#allocation104_spill] sm:$0xff]  ;;  %3477 = vpow2.f32 %v2881_v50  ;;  %v2887_v62 = vmul.f32 -1.442695, %v5519_v19  ;;  %v2167_v2 = vld [vmem:[%s5699_s3] sm:$0xff] }
 0x1f0   :  { %v2072_v54 = vmul.f32 %v6189_v47, %v6188_v7  ;;  %v2077_v51 = vmul.f32 %v6191_v25, %v6190_v12  ;;  %2477 = vmatpush2.msra.mxu0 %v2081_v27  ;;  %2288 = vmatprep.subr.mxu1 %v2076_v18  ;;  %v5541_v31 = vpop.eup %3453  ;;  %v6192_v28 = vld [vmem:[#allocation98_spill] sm:$0xff]  ;;  %v6195_v34 = vld [vmem:[#allocation56_spill] sm:$0xff]  ;;  %3479 = vpow2.f32 %v2883_v56  ;;  %v6196_v24 = vld [vmem:[#allocation99_spill] sm:$0xff]  ;;  %v2874_v43 = vmul.f32 -1.442695, %v5335_v13 }
 0x1f1   :  { %v6193_v3 = vld [vmem:[#allocation66_spill] sm:$0xff]  ;;  %2478 = vmatprep.subr.mxu0 %v2078_v8  ;;  %2289 = vmatpush2.msra.mxu1 %v2075_v17  ;;  %v5551_v50 = vpop.eup %3455  ;;  %3481 = vpow2.f32 %v2884_v35  ;;  %v2171_v56 = vld [vmem:[%s5699_s3 + $0x20] sm:$0xff]  ;;  %v1663_v18 = vadd.f32 1.0, %v5469_v57  ;;  %v1667_v35 = vadd.f32 1.0, %v3444_v63  ;;  %v2170_v59 = vld [vmem:[%s5699_s3 + $0x18] sm:$0xff]  ;;  %v1668_v57 = vadd.f32 1.0, %v3448_v9 }
 0x1f2   :  { %v2071_v36 = vmul.f32 %v6193_v3, %v6192_v28  ;;  %v6194_v52 = vld [vmem:[#allocation102_spill] sm:$0xff]  ;;  %2479 = vmatpush2.msra.mxu0 %v2077_v51  ;;  %2290 = vmatprep.subr.mxu1 %v2072_v54  ;;  %v5559_v61 = vpop.eup %3457  ;;  %3483 = vpow2.f32 %v2886_v29  ;;  %v2174_v15 = vld [vmem:[%s5699_s3 + $0x38] sm:$0xff]  ;;  %v2173_v9 = vld [vmem:[%s5699_s3 + $0x30] sm:$0xff] }
 0x1f3   :  { %v2074_v41 = vmul.f32 %v6195_v34, %v6194_v52  ;;  %v6197_v32 = vld [vmem:[#allocation18_spill] sm:$0xff]  ;;  %v3460_v10 = vpop.eup %3459  ;;  %3485 = vpow2.f32 %v2885_v39  ;;  %v2177_v54 = vld [vmem:[%s5699_s3 + $0x50] sm:$0xff] }
 0x1f4   :  { %v2073_v45 = vmul.f32 %v6197_v32, %v6196_v24  ;;  %2291 = vmatpush2.msra.mxu1 %v2071_v36  ;;  %v3462_v27 = vpop.eup %3461  ;;  %3487 = vpow2.f32 %v2887_v62  ;;  %v1671_v5 = vadd.f32 1.0, %v3460_v10  ;;  %v2176_v28 = vld [vmem:[%s5699_s3 + $0x48] sm:$0xff] }
 0x1f5   :  { %2480 = vmatprep.subr.mxu0 %v2074_v41  ;;  %2293 = vmatmul.mubr.f32.vlgmr.msra.gmra.mxu1 %v2167_v2  ;;  %v5566_v58 = vpop.eup %3463  ;;  %3489 = vpow2.f32 %v2874_v43  ;;  %v1672_v30 = vadd.f32 1.0, %v3462_v27  ;;  %v2180_v52 = vld [vmem:[%s5699_s3 + $0x68] sm:$0xff] }
 0x1f6   :  { %2481 = vmatpush2.msra.mxu0 %v2073_v45  ;;  %2298 = vmatprep.mubr.f32.mxu1 %v2171_v56  ;;  %v3466_v17 = vpop.eup %3465  ;;  %3491 = vrcp.f32 %v1663_v18  ;;  %v2179_v45 = vld [vmem:[%s5699_s3 + $0x60] sm:$0xff] }
 0x1f7   :  { %2483 = vmatmul.mubr.f32.vlgmr.msra.gmra.mxu0 %v2167_v2  ;;  %v3468_v63 = vpop.eup %3467  ;;  %3493 = vrcp.f32 %v1664_v44  ;;  %v1675_v29 = vadd.f32 1.0, %v3466_v17  ;;  %v6198_v17 = vmov 0.0  }
 0x1f8   :  { %2488 = vmatprep.mubr.f32.mxu0 %v2171_v56  ;;  %v3470_v8 = vpop.eup %3469  ;;  %3495 = vrcp.f32 %v1667_v35 }
 0x1f9   :  { %2299 = vmatmul.mubr.f32.gmra.mxu1 %v2170_v59  ;;  %v3472_v7 = vpop.eup %3471  ;;  %3497 = vrcp.f32 %v1668_v57  ;;  %v1676_v47 = vadd.f32 1.0, %v3470_v8 }
 0x1fa   :  { %2304 = vmatprep.mubr.f32.mxu1 %v2174_v15  ;;  %v3474_v12 = vpop.eup %3473  ;;  %3499 = vrcp.f32 %v1671_v5  ;;  %v1678_v44 = vadd.f32 1.0, %v3472_v7  ;;  %v1666_v7 = vadd.f32 1.0, %v5495_v20  ;;  %v1657_v20 = vadd.f32 1.0, %v5436_v0 }
 0x1fb   :  { %2489 = vmatmul.mubr.f32.gmra.mxu0 %v2170_v59  ;;  %v3476_v25 = vpop.eup %3475  ;;  %3501 = vrcp.f32 %v1672_v30  ;;  %v1679_v51 = vadd.f32 1.0, %v3474_v12  ;;  %v1677_v59 = vadd.f32 1.0, %v3468_v63  ;;  %v1670_v63 = vadd.f32 1.0, %v5526_v6 }
 0x1fc   :  { %2494 = vmatprep.mubr.f32.mxu0 %v2174_v15  ;;  %v3478_v39 = vpop.eup %3477  ;;  %3503 = vrcp.f32 %v1675_v29  ;;  %v1681_v56 = vadd.f32 1.0, %v3476_v25  ;;  %v1674_v15 = vadd.f32 1.0, %v5566_v58  ;;  %v1662_v25 = vadd.f32 1.0, %v5460_v14 }
 0x1fd   :  { %2305 = vmatmul.mubr.f32.gmra.mxu1 %v2173_v9  ;;  %v3480_v3 = vpop.eup %3479  ;;  %3505 = vrcp.f32 %v1676_v47  ;;  %v1680_v36 = vadd.f32 1.0, %v3478_v39  ;;  %v1661_v6 = vadd.f32 1.0, %v5452_v33 }
 0x1fe   :  { %2310 = vmatprep.mubr.f32.mxu1 %v2177_v54  ;;  %v3482_v34 = vpop.eup %3481  ;;  %3507 = vrcp.f32 %v1679_v51  ;;  %v1682_v41 = vadd.f32 1.0, %v3480_v3 }
 0x1ff   :  { %2495 = vmatmul.mubr.f32.gmra.mxu0 %v2173_v9  ;;  %v3484_v62 = vpop.eup %3483  ;;  %3509 = vrcp.f32 %v1680_v36  ;;  %v1683_v2 = vadd.f32 1.0, %v3482_v34  ;;  %v1669_v9 = vadd.f32 1.0, %v5512_v1  ;;  %v1658_v1 = vadd.f32 1.0, %v5444_v23 }
 0x200   :  { %2500 = vmatprep.mubr.f32.mxu0 %v2177_v54  ;;  %v3486_v24 = vpop.eup %3485  ;;  %3511 = vrcp.f32 %v1682_v41  ;;  %v1685_v32 = vadd.f32 1.0, %v3484_v62  ;;  %v1665_v54 = vadd.f32 1.0, %v5477_v22 }
 0x201   :  { %2311 = vmatmul.mubr.f32.gmra.mxu1 %v2176_v28  ;;  %v3488_v43 = vpop.eup %3487  ;;  %3513 = vrcp.f32 %v1683_v2  ;;  %v1684_v18 = vadd.f32 1.0, %v3486_v24 }
 0x202   :  { %2316 = vmatprep.mubr.f32.mxu1 %v2180_v52  ;;  %v3490_v10 = vpop.eup %3489  ;;  %3515 = vrcp.f32 %v1685_v32  ;;  %v1686_v27 = vadd.f32 1.0, %v3488_v43 }
 0x203   :  { %2501 = vmatmul.mubr.f32.gmra.mxu0 %v2176_v28  ;;  %v5586_v35 = vpop.eup %3491  ;;  %3517 = vrcp.f32 %v1684_v18  ;;  %v1673_v30 = vadd.f32 1.0, %v3490_v10 }
 0x204   :  { %2506 = vmatprep.mubr.f32.mxu0 %v2180_v52  ;;  %v5588_v57 = vpop.eup %3493  ;;  %3519 = vrcp.f32 %v1686_v27  ;;  %v6201_v27 = vld [vmem:[#allocation27_spill] sm:$0xff] }
 0x205   :  { %2317 = vmatmul.mubr.f32.gmra.mxu1 %v2179_v45  ;;  %v5592_v5 = vpop.eup %3495  ;;  %3521 = vrcp.f32 %v1681_v56 }
 0x206   :  { %2387 = vmatprep.mubr.f32.mxu1 %v6198_v17  ;;  %v5595_v8 = vpop.eup %3497  ;;  %3523 = vrcp.f32 %v1678_v44  ;;  %v6200_v44 = vld [vmem:[#allocation8_spill] sm:$0xff] }
 0x207   :  { %2507 = vmatmul.mubr.f32.gmra.mxu0 %v2179_v45  ;;  %v3500_v29 = vpop.eup %3499  ;;  %3525 = vrcp.f32 %v1677_v59 }
 0x208   :  { %2577 = vmatprep.mubr.f32.mxu0 %v6198_v17  ;;  %v3502_v58 = vpop.eup %3501  ;;  %3527 = vrcp.f32 %v1674_v15 }
 0x209   :  { %v3504_v47 = vpop.eup %3503  ;;  %3529 = vrcp.f32 %v1673_v30  ;;  %v6203_v30 = vld [vmem:[#allocation31_spill] sm:$0xff] }
 0x20a   :  { %v3506_v12 = vpop.eup %3505  ;;  %3531 = vrcp.f32 %v1670_v63 }
 0x20b   :  { %v3508_v51 = vpop.eup %3507  ;;  %3533 = vrcp.f32 %v1669_v9  ;;  %v6205_v9 = vld [vmem:[#allocation25_spill] sm:$0xff] }
 0x20c   :  { %v3510_v39 = vpop.eup %3509  ;;  %3535 = vrcp.f32 %v1666_v7  ;;  %v2159_v24 = vmul.f32 %v3508_v51, %v5434_v49  ;;  %v2152_v49 = vmul.f32 %v3502_v58, %v5318_v40  ;;  %v6206_v7 = vld [vmem:[#allocation7_spill] sm:$0xff] }
 0x20d   :  { %v3512_v28 = vpop.eup %3511  ;;  %3537 = vrcp.f32 %v1665_v54  ;;  %v2160_v62 = vmul.f32 %v3510_v39, %v5450_v11  ;;  %v2155_v11 = vmul.f32 %v3504_v47, %v5351_v21  ;;  %v6199_v21 = vld [vmem:[#allocation6_spill] sm:$0xff]  ;;  %v2140_v47 = vmul.f32 %v5559_v61, %v6206_v7  ;;  %v6207_v54 = vld [vmem:[#allocation33_spill] sm:$0xff]  ;;  %v6212_v61 = vld [vmem:[#allocation12_spill] sm:$0xff] }
 0x20e   :  { %v3514_v3 = vpop.eup %3513  ;;  %3539 = vrcp.f32 %v1662_v25  ;;  %v2162_v32 = vmul.f32 %v3512_v28, %v5458_v37  ;;  %v6208_v25 = vld [vmem:[#allocation11_spill] sm:$0xff]  ;;  %v6211_v28 = vld [vmem:[#allocation34_spill] sm:$0xff] }
 0x20f   :  { %v3516_v22 = vpop.eup %3515  ;;  %3541 = vrcp.f32 %v1661_v6  ;;  %v2163_v34 = vmul.f32 %v3514_v3, %v5493_v46  ;;  %v2139_v51 = vmul.f32 %v5551_v50, %v6208_v25  ;;  %v6209_v6 = vld [vmem:[#allocation29_spill] sm:$0xff]  ;;  %v2135_v3 = vmul.f32 %v5534_v16, %v6212_v61  ;;  %v2169_v50 = vld [vmem:[%s5699_s3 + $0x10] sm:$0xff]  ;;  %v2172_v16 = vld [vmem:[%s5699_s3 + $0x28] sm:$0xff] }
 0x210   :  { %v3518_v36 = vpop.eup %3517  ;;  %3543 = vrcp.f32 %v1658_v1  ;;  %v2165_v0 = vmul.f32 %v3516_v22, %v5503_v42  ;;  %v6213_v22 = vld [vmem:[#allocation32_spill] sm:$0xff] }
 0x211   :  { %v3520_v14 = vpop.eup %3519  ;;  %3545 = vrcp.f32 %v1657_v20  ;;  %v2164_v52 = vmul.f32 %v3518_v36, %v5510_v26  ;;  %v2156_v26 = vmul.f32 %v3506_v12, %v5365_v48  ;;  %v2151_v48 = vmul.f32 %v3500_v29, %v5304_v55 }
 0x212   :  { %v3522_v33 = vpop.eup %3521  ;;  %v2166_v23 = vmul.f32 %v3520_v14, %v5519_v19  ;;  %v6214_v14 = vld [vmem:[#allocation37_spill] sm:$0xff] }
 0x213   :  { %v3524_v41 = vpop.eup %3523  ;;  %2339 = vmatprep.subr.mxu1 %v2164_v52  ;;  %v2161_v46 = vmul.f32 %v3522_v33, %v5442_v38  ;;  %v2178_v33 = vld [vmem:[%s5699_s3 + $0x58] sm:$0xff] }
 0x214   :  { %v3526_v2 = vpop.eup %3525  ;;  %2529 = vmatprep.subr.mxu0 %v2166_v23  ;;  %2340 = vmatpush1.msra.mxu1 %v2163_v34  ;;  %v2158_v42 = vmul.f32 %v3524_v41, %v5372_v53  ;;  %v2148_v53 = vmul.f32 %v5595_v8, %v6199_v21  ;;  %v2181_v34 = vld [vmem:[%s5699_s3 + $0x70] sm:$0xff] }
 0x215   :  { %v3528_v45 = vpop.eup %3527  ;;  %2530 = vmatpush1.msra.mxu0 %v2165_v0  ;;  %2341 = vmatprep.subr.mxu1 %v2160_v62  ;;  %v2157_v37 = vmul.f32 %v3526_v2, %v5358_v4  ;;  %v2147_v4 = vmul.f32 %v5592_v5, %v6200_v44 }
 0x216   :  { %v3530_v19 = vpop.eup %3529  ;;  %2531 = vmatprep.subr.mxu0 %v2162_v32  ;;  %2342 = vmatpush1.msra.mxu1 %v2159_v24  ;;  %v2154_v38 = vmul.f32 %v3528_v45, %v5325_v60  ;;  %v6202_v60 = vld [vmem:[#allocation5_spill] sm:$0xff] }
 0x217   :  { %v3532_v43 = vpop.eup %3531  ;;  %2532 = vmatpush1.msra.mxu0 %v2161_v46  ;;  %2343 = vmatprep.subr.mxu1 %v2156_v26  ;;  %v2153_v10 = vmul.f32 %v3530_v19, %v5335_v13  ;;  %v2144_v15 = vmul.f32 %v5588_v57, %v6202_v60  ;;  %v6204_v13 = vld [vmem:[#allocation10_spill] sm:$0xff] }
 0x218   :  { %v3534_v56 = vpop.eup %3533  ;;  %2533 = vmatprep.subr.mxu0 %v2158_v42  ;;  %2344 = vmatpush1.msra.mxu1 %v2155_v11  ;;  %v2150_v59 = vmul.f32 %v3532_v43, %v6201_v27  ;;  %v2143_v29 = vmul.f32 %v5586_v35, %v6204_v13  ;;  %v6210_v35 = vld [vmem:[#allocation9_spill] sm:$0xff]  ;;  %v2195_v27 = vpop.permute.xlu1 %2194 }
 0x219   :  { %v3536_v18 = vpop.eup %3535  ;;  %2534 = vmatpush1.msra.mxu0 %v2157_v37  ;;  %2345 = vmatprep.subr.mxu1 %v2152_v49  ;;  %v2149_v63 = vmul.f32 %v3534_v56, %v6203_v30  ;;  %v2136_v1 = vmul.f32 %v5541_v31, %v6210_v35  ;;  %v2175_v31 = vld [vmem:[%s5699_s3 + $0x40] sm:$0xff]  ;;  %s3571_s3 = smov [#allocation2]  }
 0x21a   :  { %v3538_v40 = vpop.eup %3537  ;;  %2535 = vmatprep.subr.mxu0 %v2154_v38  ;;  %2346 = vmatpush1.msra.mxu1 %v2151_v48  ;;  %v2146_v58 = vmul.f32 %v3536_v18, %v6205_v9  ;;  %v2190_v18 = vpop.permute.xlu0 %2189  ;;  %s2633_s6 = sshll.u32 %s3571_s3, 4  ;;  %s2634_s6 = int_to_ptr.vmem [resolvable:$true] %s2633_s6 }
 0x21b   :  { %v3540_v55 = vpop.eup %3539  ;;  %2536 = vmatpush1.msra.mxu0 %v2153_v10  ;;  %2347 = vmatprep.subr.mxu1 %v2148_v53  ;;  %v2145_v12 = vmul.f32 %v3538_v40, %v6207_v54  ;;  %s3547_s7 = scalar_lea.vmem %s2634_s6, 2560  ;;  %p3552_p1 = scmp.lt.s32.totalorder %s2634_s6, %s2634_s6 }
 0x21c   :  { %v3542_v8 = vpop.eup %3541  ;;  %2537 = vmatprep.subr.mxu0 %v2150_v59  ;;  %2348 = vmatpush1.msra.mxu1 %v2147_v4  ;;  %v2142_v39 = vmul.f32 %v3540_v55, %v6209_v6  ;;  %v2205_v61 = vpop.permute.xlu1 %2204  ;;  %p3548_p0 = scmp.ne.s32.totalorder %s2634_s6, %s3547_s7  ;;  %p3553_p2 = scmp.lt.s32.totalorder %s3547_s7, %s3547_s7 }
 0x21d   :  { %v3544_v5 = vpop.eup %3543  ;;  %2538 = vmatpush1.msra.mxu0 %v2149_v63  ;;  %2349 = vmatprep.subr.mxu1 %v2144_v15  ;;  %v2141_v20 = vmul.f32 %v3542_v8, %v6211_v28 }
 0x21e   :  { %v3546_v57 = vpop.eup %3545  ;;  %2539 = vmatprep.subr.mxu0 %v2146_v58  ;;  %2350 = vmatpush1.msra.mxu1 %v2143_v29  ;;  %v2138_v36 = vmul.f32 %v3544_v5, %v6213_v22  ;;  %v2200_v7 = vpop.permute.xlu0 %2199  ;;  %p3554_p3 = por %p3553_p2, %p3552_p1 }
 0x21f   :  { %2540 = vmatpush1.msra.mxu0 %v2145_v12  ;;  %2351 = vmatprep.subr.mxu1 %v2140_v47  ;;  %v2137_v52 = vmul.f32 %v3546_v57, %v6214_v14 }
 0x220   :  { %2541 = vmatprep.subr.mxu0 %v2142_v39  ;;  %2352 = vmatpush1.msra.mxu1 %v2139_v51  ;;  %p3555_p4 = pnand %p3554_p3, %p3548_p0 }
 0x221   :  { %2542 = vmatpush1.msra.mxu0 %v2141_v20  ;;  %2353 = vmatprep.subr.mxu1 %v2136_v1 }
 0x222   :  { %2543 = vmatprep.subr.mxu0 %v2138_v36  ;;  %2354 = vmatpush1.msra.mxu1 %v2135_v3 }
 0x223   :  { %2544 = vmatpush1.msra.mxu0 %v2137_v52  ;;  %2888 = vmatmul.mubr.msk.f32.vlgmr.msra.gmra.mxu1 %vm2212_vm2, %v2169_v50 }
 0x224   :  { %2893 = vmatmul.mubr.msk.f32.vlgmr.msra.gmra.mxu0 %vm2212_vm2, %v2169_v50  ;;  %2393 = vmatprep.mubr.f32.mxu1 %v6198_v17 }
 0x225   :  { %2583 = vmatprep.mubr.f32.mxu0 %v6198_v17 }
 0x227   :  { %2889 = vmatmul.mubr.msk.f32.gmra.mxu1 %vm2212_vm2, %v2172_v16 }
 0x228   :  { %2894 = vmatmul.mubr.msk.f32.gmra.mxu0 %vm2212_vm2, %v2172_v16  ;;  %2399 = vmatprep.mubr.f32.mxu1 %v6198_v17 }
 0x229   :  { %2589 = vmatprep.mubr.f32.mxu0 %v6198_v17 }
 0x22b   :  { %2890 = vmatmul.mubr.msk.f32.gmra.mxu1 %vm2212_vm2, %v2175_v31 }
 0x22c   :  { %2895 = vmatmul.mubr.msk.f32.gmra.mxu0 %vm2212_vm2, %v2175_v31  ;;  %2405 = vmatprep.mubr.f32.mxu1 %v6198_v17 }
 0x22d   :  { %2595 = vmatprep.mubr.f32.mxu0 %v6198_v17 }
 0x22f   :  { %2891 = vmatmul.mubr.msk.f32.gmra.mxu1 %vm2212_vm2, %v2178_v33 }
 0x230   :  { %2896 = vmatmul.mubr.msk.f32.gmra.mxu0 %vm2212_vm2, %v2178_v33  ;;  %2411 = vmatprep.mubr.f32.mxu1 %v6198_v17 }
 0x231   :  { %2601 = vmatprep.mubr.f32.mxu0 %v6198_v17 }
 0x233   :  { %2892 = vmatmul.mubr.msk.f32.gmra.mxu1 %vm2212_vm2, %v2181_v34 }
 0x234   :  { %2897 = vmatmul.mubr.msk.f32.gmra.mxu0 %vm2212_vm2, %v2181_v34 }
 0x2b5   :  { %v2294_v23 = vpop.f32.mrf.mxu1 }
 0x2b6   :  { %v2295_v21 = vadd.f32 %v2294_v23, %v2190_v18 }
 0x2b7   :  { %v2484_v41 = vpop.f32.mrf.mxu0  ;;  %v2296_v62 = vpop.f32.mrf.mxu1 }
 0x2b8   :  { %v2485_v53 = vadd.f32 %v2484_v41, %v2190_v18  ;;  %v2297_v40 = vadd.f32 %v2296_v62, %v2190_v18  ;;  %v2210_v62 = vpop.permute.xlu0 %2209 }
 0x2b9   :  { %v2486_v0 = vpop.f32.mrf.mxu0  ;;  %v2300_v2 = vpop.f32.mrf.mxu1 }
 0x2ba   :  { %v2487_v59 = vadd.f32 %v2486_v0, %v2190_v18  ;;  %v2301_v15 = vadd.f32 %v2300_v2, %v2195_v27 }
 0x2bb   :  { %v2490_v24 = vpop.f32.mrf.mxu0  ;;  %v2302_v32 = vpop.f32.mrf.mxu1 }
 0x2bc   :  { %v2491_v8 = vadd.f32 %v2490_v24, %v2195_v27  ;;  %v2303_v9 = vadd.f32 %v2302_v32, %v2195_v27 }
 0x2bd   :  { %v2492_v45 = vpop.f32.mrf.mxu0  ;;  %v2306_v26 = vpop.f32.mrf.mxu1 }
 0x2be   :  { %v2493_v47 = vadd.f32 %v2492_v45, %v2195_v27  ;;  %v2307_v57 = vadd.f32 %v2306_v26, %v2200_v7 }
 0x2bf   :  { %v2496_v46 = vpop.f32.mrf.mxu0  ;;  %v2308_v19 = vpop.f32.mrf.mxu1 }
 0x2c0   :  { %v2497_v6 = vadd.f32 %v2496_v46, %v2200_v7  ;;  %v2309_v1 = vadd.f32 %v2308_v19, %v2200_v7 }
 0x2c1   :  { %v2498_v11 = vpop.f32.mrf.mxu0  ;;  %v2312_v42 = vpop.f32.mrf.mxu1 }
 0x2c2   :  { %v2499_v3 = vadd.f32 %v2498_v11, %v2200_v7  ;;  %v2313_v50 = vadd.f32 %v2312_v42, %v2205_v61 }
 0x2c3   :  { %v2502_v43 = vpop.f32.mrf.mxu0  ;;  %v2314_v49 = vpop.f32.mrf.mxu1 }
 0x2c4   :  { %v2503_v16 = vadd.f32 %v2502_v43, %v2205_v61  ;;  %v2315_v34 = vadd.f32 %v2314_v49, %v2205_v61 }
 0x2c5   :  { %v5678_v17 = vpop.f32.mrf.mxu0  ;;  %v5680_v37 = vpop.f32.mrf.mxu1 }
 0x2c6   :  { %v2505_v0 = vadd.f32 %v5678_v17, %v2205_v61  ;;  %v2319_v32 = vadd.f32 %v5680_v37, %v2210_v62 }
 0x2c7   :  { %v5682_v56 = vpop.f32.mrf.mxu0  ;;  %v5684_v48 = vpop.f32.mrf.mxu1 }
 0x2c8   :  { %v2509_v46 = vadd.f32 %v5682_v56, %v2210_v62  ;;  %v2321_v42 = vadd.f32 %v5684_v48, %v2210_v62 }
 0x2c9   :  { %v5686_v38 = vpop.f32.mrf.mxu0 }
 0x2ca   :  { %v2511_v17 = vadd.f32 %v5686_v38, %v2210_v62 }
 0x2e3   :  { %v2389_v10 = vpop.f32.mrf.mxu1 }
 0x2e4   :  { %v2390_v44 = vadd.f32 %v2389_v10, %v2295_v21  ;;  %v2579_v4 = vpop.f32.mrf.mxu0 }
 0x2e5   :  { %v2580_v55 = vadd.f32 %v2579_v4, %v2485_v53  ;;  %v2391_v60 = vpop.f32.mrf.mxu1 }
 0x2e6   :  { %2608 = vst [vmem:[#allocation2] sm:$0xff] %v2390_v44  ;;  %v2392_v30 = vadd.f32 %v2391_v60, %v2297_v40  ;;  %v2581_v63 = vpop.f32.mrf.mxu0 }
 0x2e7   :  { %2610 = vst [vmem:[#allocation2 + $0x10] sm:$0xff] %v2580_v55  ;;  %v2582_v13 = vadd.f32 %v2581_v63, %v2487_v59  ;;  %v2395_v29 = vpop.f32.mrf.mxu1 }
 0x2e8   :  { %2609 = vst [vmem:[#allocation2 + $0x8] sm:$0xff] %v2392_v30  ;;  %v2396_v58 = vadd.f32 %v2395_v29, %v2301_v15  ;;  %v2585_v5 = vpop.f32.mrf.mxu0 }
 0x2e9   :  { %2611 = vst [vmem:[#allocation2 + $0x18] sm:$0xff] %v2582_v13  ;;  %v2586_v54 = vadd.f32 %v2585_v5, %v2491_v8  ;;  %v2397_v12 = vpop.f32.mrf.mxu1 }
 0x2ea   :  { %2612 = vst [vmem:[#allocation2 + $0x20] sm:$0xff] %v2396_v58  ;;  %v2398_v25 = vadd.f32 %v2397_v12, %v2303_v9  ;;  %v2587_v51 = vpop.f32.mrf.mxu0 }
 0x2eb   :  { %2614 = vst [vmem:[#allocation2 + $0x30] sm:$0xff] %v2586_v54  ;;  %v2588_v39 = vadd.f32 %v2587_v51, %v2493_v47  ;;  %v2401_v35 = vpop.f32.mrf.mxu1 }
 0x2ec   :  { %2613 = vst [vmem:[#allocation2 + $0x28] sm:$0xff] %v2398_v25  ;;  %v2402_v28 = vadd.f32 %v2401_v35, %v2307_v57  ;;  %v2591_v20 = vpop.f32.mrf.mxu0 }
 0x2ed   :  { %2615 = vst [vmem:[#allocation2 + $0x38] sm:$0xff] %v2588_v39  ;;  %v2592_v22 = vadd.f32 %v2591_v20, %v2497_v6  ;;  %v2403_v36 = vpop.f32.mrf.mxu1 }
 0x2ee   :  { %2616 = vst [vmem:[#allocation2 + $0x40] sm:$0xff] %v2402_v28  ;;  %v2404_v14 = vadd.f32 %v2403_v36, %v2309_v1  ;;  %v2593_v52 = vpop.f32.mrf.mxu0 }
 0x2ef   :  { %2618 = vst [vmem:[#allocation2 + $0x50] sm:$0xff] %v2592_v22  ;;  %v2594_v31 = vadd.f32 %v2593_v52, %v2499_v3  ;;  %v2407_v33 = vpop.f32.mrf.mxu1 }
 0x2f0   :  { %2617 = vst [vmem:[#allocation2 + $0x48] sm:$0xff] %v2404_v14  ;;  %v2408_v23 = vadd.f32 %v2407_v33, %v2313_v50  ;;  %v2597_v41 = vpop.f32.mrf.mxu0 }
 0x2f1   :  { %2619 = vst [vmem:[#allocation2 + $0x58] sm:$0xff] %v2594_v31  ;;  %v2598_v2 = vadd.f32 %v2597_v41, %v2503_v16  ;;  %v2409_v24 = vpop.f32.mrf.mxu1 }
 0x2f2   :  { %2620 = vst [vmem:[#allocation2 + $0x60] sm:$0xff] %v2408_v23  ;;  %v2410_v45 = vadd.f32 %v2409_v24, %v2315_v34  ;;  %v2599_v26 = vpop.f32.mrf.mxu0 }
 0x2f3   :  { %2622 = vst [vmem:[#allocation2 + $0x70] sm:$0xff] %v2598_v2  ;;  %v2600_v19 = vadd.f32 %v2599_v26, %v2505_v0  ;;  %v2413_v11 = vpop.f32.mrf.mxu1 }
 0x2f4   :  { %2621 = vst [vmem:[#allocation2 + $0x68] sm:$0xff] %v2410_v45  ;;  %v2414_v43 = vadd.f32 %v2413_v11, %v2319_v32  ;;  %v2603_v49 = vpop.f32.mrf.mxu0 }
 0x2f5   :  { %2623 = vst [vmem:[#allocation2 + $0x78] sm:$0xff] %v2600_v19  ;;  %v2604_v18 = vadd.f32 %v2603_v49, %v2509_v46  ;;  %v2415_v37 = vpop.f32.mrf.mxu1 }
 0x2f6   :  { %2624 = vst [vmem:[#allocation2 + $0x80] sm:$0xff] %v2414_v43  ;;  %v2416_v21 = vadd.f32 %v2415_v37, %v2321_v42  ;;  %v2605_v53 = vpop.f32.mrf.mxu0 }
 0x2f7   :  { %2626 = vst [vmem:[#allocation2 + $0x90] sm:$0xff] %v2604_v18  ;;  %v2606_v56 = vadd.f32 %v2605_v53, %v2511_v17 }
 0x2f8   :  { %2625 = vst [vmem:[#allocation2 + $0x88] sm:$0xff] %v2416_v21 }
 0x2f9   :  { %2627 = vst [vmem:[#allocation2 + $0x98] sm:$0xff] %v2606_v56 }
 0x2fa   :  { %3558 = shalt.err (!%p3555_p4)
}
 0x2fb   :  { %s3572_s8 = smov 512   ;;  %s3573_s9 = smov 32  }
 0x2fc   :  { %2639 = dma.vmem_to_hbm [thread:$0]  %s2634_s6, 2560, %s5701_s5, [#allocation3], %s3572_s8, %s3572_s8, %s3573_s9  }
 0x2fd   :  { %3567 = dma.done.wait [#allocation3], 2560  }
 0x2fe   :  { %3568 = vsyncadd [#allocation3], 4294964736 }
 0x2ff   :  { %2643 = vsyncpa [#allocation3], 1 }

</bundles_post_ra>
